<compile_context>
chip_gen: v6e
topology: v6e:2x2x1
jax: 0.10.0
libtpu: 0.0.40
codegen_flags: <defaults>
</compile_context>

<pallas_src>
import numpy as np
import jax
import jax.numpy as jnp
from jax import lax
from jax.experimental import pallas as pl
from jax.experimental.pallas import tpu as pltpu  # noqa: F401  (TPU backend assumed)

# ----------------------------- configuration --------------------------------
EMB = 32            # embedding_size
NHEAD = 4           # transformer_hparams['nhead']
DHEAD = EMB // NHEAD
DIM_FF = 64         # transformer_hparams['dim_feedforward']
LAYERS = 2          # transformer_hparams['layers']
LATENT = 16         # latent_size (forward arg, unused — matches PyTorch)
PTP = 8             # ptp_size
NUM_COND = 7        # num_conditional_frames -> sequence length 8 with the token
SEQ = NUM_COND + 1
MAX_POS = 64        # capacity of the learned position table
EPS = 1e-5          # LayerNorm eps
NEG_INF = -1e9


# ----------------------------- kernel helpers --------------------------------
def _layer_norm(x, g, b):
    mu = jnp.mean(x, axis=-1, keepdims=True)
    var = jnp.mean((x - mu) ** 2, axis=-1, keepdims=True)
    return (x - mu) * lax.rsqrt(var + EPS) * g + b


def _mlp3(x, w1, b1, w2, b2, w3, b3):
    h = jnp.maximum(jnp.dot(x, w1, preferred_element_type=jnp.float32) + b1, 0.0)
    h = jnp.maximum(jnp.dot(h, w2, preferred_element_type=jnp.float32) + b2, 0.0)
    return jnp.dot(h, w3, preferred_element_type=jnp.float32) + b3


# ----------------------------- fused kernel ----------------------------------
def make_fused_kernel(B, S, E, H, L):
    BS = B * S
    _NT = (((1,), (1,)), ((), ()))      # contract last dims: q @ k.T (no transpose op)

    def kernel(x_ref, ptp_ref, query_ref, pos_ref,
               sx_ref, stok_ref, ppos_ref, gsel_ref, bias_ref,
               pe_w1, pe_b1, pe_w2, pe_b2, pe_w3, pe_b3,
               wq_ref, bq_ref, wk_ref, bk_ref, wv_ref, bv_ref,
               wo_ref, bo_ref,
               wf1_ref, bf1_ref, wf2_ref, bf2_ref,
               ln1g_ref, ln1b_ref, ln2g_ref, ln2b_ref,
               lm_w1, lm_b1, lm_w2, lm_b2, lm_w3, lm_b3,
               o_ref):
        f32 = jnp.float32

        # ---- ptp expander MLP -> per-batch query token ----------------------
        tok = _mlp3(ptp_ref[...].astype(f32),
                    pe_w1[...], pe_b1[...], pe_w2[...], pe_b2[...],
                    pe_w3[...], pe_b3[...]) + query_ref[...]            # (B, E)

        # ---- assemble the (B*S, E) slab with three tiny constant matmuls -----
        #   slab rows: [frames(b=0) | token(b=0) | frames(b=1) | token(b=1) | ...]
        #   (no per-row masked adds, no sublane concatenation)
        xa = jnp.dot(sx_ref[...], x_ref[...].astype(f32),
                     preferred_element_type=f32)                        # frames
        xa = xa + jnp.dot(stok_ref[...], tok, preferred_element_type=f32)   # tokens
        xa = xa + jnp.dot(ppos_ref[...], pos_ref[...].astype(f32),
                          preferred_element_type=f32)                   # pos embed

        attn_bias = bias_ref[...]          # (BS, BS) block-diag 0 / -1e9 (hoisted)

        # ---- post-norm transformer encoder layers (static unroll) ------------
        for l in range(L):
            attn = jnp.zeros((BS, E), f32)
            for h in range(H):                                          # static unroll
                # per-head weights pre-split at prep time -> no lane slicing here
                qh = jnp.dot(xa, wq_ref[l, h],
                             preferred_element_type=f32) + bq_ref[l, h]     # (BS, Dh)
                kh = jnp.dot(xa, wk_ref[l, h],
                             preferred_element_type=f32) + bk_ref[l, h]
                vh = jnp.dot(xa, wv_ref[l, h],
                             preferred_element_type=f32) + bv_ref[l, h]
                sc = lax.dot_general(qh, kh, _NT,
                                     preferred_element_type=f32) + attn_bias  # (BS, BS)
                sc = sc - jnp.max(sc, axis=-1, keepdims=True)
                p = jnp.exp(sc)
                p = p * pl.reciprocal(jnp.sum(p, axis=-1, keepdims=True), approx=True)
                oh = jnp.dot(p, vh, preferred_element_type=f32)              # (BS, Dh)
                # combine heads by summing per-head output projections (no concat)
                attn = attn + jnp.dot(oh, wo_ref[l, h],
                                      preferred_element_type=f32)            # (BS, E)
            attn = attn + bo_ref[l]

            h1 = _layer_norm(xa + attn, ln1g_ref[l], ln1b_ref[l])
            ff = jnp.maximum(
                jnp.dot(h1, wf1_ref[l], preferred_element_type=f32) + bf1_ref[l], 0.0)
            ff = jnp.dot(ff, wf2_ref[l], preferred_element_type=f32) + bf2_ref[l]
            xa = _layer_norm(h1 + ff, ln2g_ref[l], ln2b_ref[l])

        # ---- gather last-token rows, run the final MLP on (B, E) only --------
        last = jnp.dot(gsel_ref[...], xa, preferred_element_type=f32)   # (B, E)
        out = _mlp3(last, lm_w1[...], lm_b1[...], lm_w2[...], lm_b2[...],
                    lm_w3[...], lm_b3[...])
        o_ref[...] = out.astype(o_ref.dtype)                            # single dense store

    return kernel


# ----------------------- constant scatter/gather matrices ---------------------
def _build_constants(B):
    """0/1 scatter & gather matrices + block-diagonal attention bias.
    Pure compile-time constants (numpy) — no runtime XLA prep ops."""
    S, NC, BS = SEQ, NUM_COND, B * SEQ
    r = np.arange(BS)
    blk = r // S
    pos = r % S
    is_frame = pos < NC

    S_x = np.zeros((BS, B * NC), np.float32)          # slab row <- conditional frame
    S_x[r[is_frame], (blk * NC + pos)[is_frame]] = 1.0

    S_tok = np.zeros((BS, B), np.float32)             # slab row <- per-batch token
    S_tok[r[~is_frame], blk[~is_frame]] = 1.0

    P_pos = np.zeros((BS, MAX_POS), np.float32)       # slab row <- learned pos table
    P_pos[r, pos] = 1.0

    G_sel = np.zeros((B, BS), np.float32)             # output row <- last-token slab row
    G_sel[np.arange(B), np.arange(B) * S + S - 1] = 1.0

    bias = np.where(blk[:, None] == blk[None, :], 0.0, NEG_INF).astype(np.float32)
    return (jnp.asarray(S_x), jnp.asarray(S_tok), jnp.asarray(P_pos),
            jnp.asarray(G_sel), jnp.asarray(bias))


# ----------------------------- parameter init --------------------------------
def init_linear(key, din, dout):
    kw, kb = jax.random.split(key)
    limit = (6.0 / (din + dout)) ** 0.5                 # xavier-uniform (matches module init)
    w = jax.random.uniform(kw, (din, dout), jnp.float32, -limit, limit)
    bound = 1.0 / (din ** 0.5)                          # PyTorch nn.Linear default bias init
    b = jax.random.uniform(kb, (1, dout), jnp.float32, -bound, bound)
    return w, b


def init_mlp3(key, din, dhid, dout):
    k1, k2, k3 = jax.random.split(key, 3)
    w1, b1 = init_linear(k1, din, dhid)
    w2, b2 = init_linear(k2, dhid, dhid)
    w3, b3 = init_linear(k3, dhid, dout)
    return dict(w1=w1, b1=b1, w2=w2, b2=b2, w3=w3, b3=b3)


def init_encoder_layer(key):
    k = jax.random.split(key, 4)
    wqkv, bqkv = init_linear(k[0], EMB, 3 * EMB)
    wo, bo = init_linear(k[1], EMB, EMB)
    wf1, bf1 = init_linear(k[2], EMB, DIM_FF)
    wf2, bf2 = init_linear(k[3], DIM_FF, EMB)
    return dict(wqkv=wqkv, bqkv=bqkv, wo=wo, bo=bo,
                wf1=wf1, bf1=bf1, wf2=wf2, bf2=bf2,
                ln1_g=jnp.ones((1, EMB), jnp.float32), ln1_b=jnp.zeros((1, EMB), jnp.float32),
                ln2_g=jnp.ones((1, EMB), jnp.float32), ln2_b=jnp.zeros((1, EMB), jnp.float32))


def _split_heads_in(w, b, scale=1.0):
    """(E, E)/(1, E) -> (H, E, Dh)/(H, 1, Dh); optional softmax scale folded in."""
    wh = (w * scale).reshape(EMB, NHEAD, DHEAD).transpose(1, 0, 2)
    bh = (b * scale).reshape(1, NHEAD, DHEAD).transpose(1, 0, 2)
    return wh, bh


def prepare_encoder_stack(layer_params):
    """Pre-split QKV / out-proj per head, fold 1/sqrt(Dh) into Q, and stack the
    per-layer weights on a leading dim so a single kernel argument carries all
    layers (done once at init — zero runtime cost)."""
    scale = 1.0 / (DHEAD ** 0.5)
    keys = ("wq", "bq", "wk", "bk", "wv", "bv", "wo", "bo",
            "wf1", "bf1", "wf2", "bf2", "ln1_g", "ln1_b", "ln2_g", "ln2_b")
    acc = {k: [] for k in keys}
    for p in layer_params:
        wqkv, bqkv = p["wqkv"], p["bqkv"]
        wq, bq = _split_heads_in(wqkv[:, 0 * EMB:1 * EMB], bqkv[:, 0 * EMB:1 * EMB], scale)
        wk, bk = _split_heads_in(wqkv[:, 1 * EMB:2 * EMB], bqkv[:, 1 * EMB:2 * EMB])
        wv, bv = _split_heads_in(wqkv[:, 2 * EMB:3 * EMB], bqkv[:, 2 * EMB:3 * EMB])
        wo_h = p["wo"].reshape(NHEAD, DHEAD, EMB)        # rows are head-major
        vals = dict(wq=wq, bq=bq, wk=wk, bk=bk, wv=wv, bv=bv, wo=wo_h, bo=p["bo"],
                    wf1=p["wf1"], bf1=p["bf1"], wf2=p["wf2"], bf2=p["bf2"],
                    ln1_g=p["ln1_g"], ln1_b=p["ln1_b"], ln2_g=p["ln2_g"], ln2_b=p["ln2_b"])
        for k in keys:
            acc[k].append(vals[k])
    return {k: jnp.stack(v, axis=0) for k, v in acc.items()}


def init_params(key):
    keys = jax.random.split(key, 4 + LAYERS)
    layers = [init_encoder_layer(keys[4 + i]) for i in range(LAYERS)]
    return dict(
        ptp_expander=init_mlp3(keys[0], PTP, EMB, EMB),
        last_mlp=init_mlp3(keys[1], EMB, EMB, EMB),
        query_embed=jax.random.normal(keys[2], (1, EMB), jnp.float32),
        # TODO(synk): PositionEmbeddingLearned assumed to be a learned per-position table.
        pos_table=jax.random.normal(keys[3], (MAX_POS, EMB), jnp.float32) * 0.02,
        encoder=prepare_encoder_stack(layers),
    )


# ----------------------------- forward pass ----------------------------------
@jax.jit
def forward(params, x, ptp, latent):
    """Mirror of TransformerHiddenPredictor2_ptp.forward (latent is unused)."""
    del latent                                   # unused, exactly like the PyTorch forward
    B = x.shape[0]
    consts = _build_constants(B)                 # compile-time constants
    x_flat = x.reshape(B * NUM_COND, EMB)        # free reshape; all layout work is in-kernel

    pe = params["ptp_expander"]
    enc = params["encoder"]
    lm = params["last_mlp"]
    kernel = make_fused_kernel(B, SEQ, EMB, NHEAD, LAYERS)

    return pl.pallas_call(
        kernel,
        out_shape=jax.ShapeDtypeStruct((B, EMB), x.dtype),
    )(x_flat, ptp, params["query_embed"], params["pos_table"],
      *consts,
      pe["w1"], pe["b1"], pe["w2"], pe["b2"], pe["w3"], pe["b3"],
      enc["wq"], enc["bq"], enc["wk"], enc["bk"], enc["wv"], enc["bv"],
      enc["wo"], enc["bo"],
      enc["wf1"], enc["bf1"], enc["wf2"], enc["bf2"],
      enc["ln1_g"], enc["ln1_b"], enc["ln2_g"], enc["ln2_b"],
      lm["w1"], lm["b1"], lm["w2"], lm["b2"], lm["w3"], lm["b3"])


# --------------------------- pure-JAX reference -------------------------------
def _mlp3_ref(v, p):
    h = jnp.maximum(v @ p["w1"] + p["b1"], 0.0)
    h = jnp.maximum(h @ p["w2"] + p["b2"], 0.0)
    return h @ p["w3"] + p["b3"]


def forward_ref(params, x, ptp, latent):
    """Reference using the same prepared params, standard batched attention."""
    del latent
    tok = _mlp3_ref(ptp, params["ptp_expander"]) + params["query_embed"]     # (B, E)
    xs = jnp.concatenate([x, tok[:, None, :]], axis=1)                       # (B, S, E)
    xs = xs + params["pos_table"][:SEQ][None]
    enc = params["encoder"]
    for l in range(LAYERS):
        attn = jnp.zeros_like(xs)
        for h in range(NHEAD):
            q = xs @ enc["wq"][l, h] + enc["bq"][l, h]     # scale already folded in
            k = xs @ enc["wk"][l, h] + enc["bk"][l, h]
            v = xs @ enc["wv"][l, h] + enc["bv"][l, h]
            p = jax.nn.softmax(jnp.einsum("bqd,bkd->bqk", q, k), axis=-1)
            attn = attn + jnp.einsum("bqk,bkd->bqd", p, v) @ enc["wo"][l, h]
        attn = attn + enc["bo"][l]
        h1 = _layer_norm(xs + attn, enc["ln1_g"][l], enc["ln1_b"][l])
        ff = (jnp.maximum(h1 @ enc["wf1"][l] + enc["bf1"][l], 0.0)
              @ enc["wf2"][l] + enc["bf2"][l])
        xs = _layer_norm(h1 + ff, enc["ln2_g"][l], enc["ln2_b"][l])
    return _mlp3_ref(xs[:, -1], params["last_mlp"])


# --------------------------------- main ---------------------------------------
if __name__ == "__main__":
    root = jax.random.PRNGKey(0)
    kp, kx, kptp, klat = jax.random.split(root, 4)

    params = init_params(kp)

    B = 2
    x = jax.random.normal(kx, (B, NUM_COND, EMB), jnp.float32)     # conditional frame embeddings
    ptp = jax.random.normal(kptp, (B, PTP), jnp.float32)           # expanded into the query token
    latent = jax.random.normal(klat, (B, LATENT), jnp.float32)     # accepted but unused (as in PyTorch)

    out = forward(params, x, ptp, latent)
    out = jax.block_until_ready(out)
    assert out.shape == (B, EMB)

    ref = forward_ref(params, x, ptp, latent)
    err = float(jnp.max(jnp.abs(out - ref)))
    assert err < 1e-2, f"kernel/reference mismatch: max abs err {err}"

    print("KERNEL_OK")
</pallas_src>

<mosaic_0001>
module attributes {stable_mosaic.version = 11 : i64} {
  func.func @kernel(%arg0: memref<14x32xf32, #tpu.memory_space<vmem>>, %arg1: memref<2x8xf32, #tpu.memory_space<vmem>>, %arg2: memref<1x32xf32, #tpu.memory_space<vmem>>, %arg3: memref<64x32xf32, #tpu.memory_space<vmem>>, %arg4: memref<16x14xf32, #tpu.memory_space<vmem>>, %arg5: memref<16x2xf32, #tpu.memory_space<vmem>>, %arg6: memref<16x64xf32, #tpu.memory_space<vmem>>, %arg7: memref<2x16xf32, #tpu.memory_space<vmem>>, %arg8: memref<16x16xf32, #tpu.memory_space<vmem>>, %arg9: memref<8x32xf32, #tpu.memory_space<vmem>>, %arg10: memref<1x32xf32, #tpu.memory_space<vmem>>, %arg11: memref<32x32xf32, #tpu.memory_space<vmem>>, %arg12: memref<1x32xf32, #tpu.memory_space<vmem>>, %arg13: memref<32x32xf32, #tpu.memory_space<vmem>>, %arg14: memref<1x32xf32, #tpu.memory_space<vmem>>, %arg15: memref<2x4x32x8xf32, #tpu.memory_space<vmem>>, %arg16: memref<2x4x1x8xf32, #tpu.memory_space<vmem>>, %arg17: memref<2x4x32x8xf32, #tpu.memory_space<vmem>>, %arg18: memref<2x4x1x8xf32, #tpu.memory_space<vmem>>, %arg19: memref<2x4x32x8xf32, #tpu.memory_space<vmem>>, %arg20: memref<2x4x1x8xf32, #tpu.memory_space<vmem>>, %arg21: memref<2x4x8x32xf32, #tpu.memory_space<vmem>>, %arg22: memref<2x1x32xf32, #tpu.memory_space<vmem>>, %arg23: memref<2x32x64xf32, #tpu.memory_space<vmem>>, %arg24: memref<2x1x64xf32, #tpu.memory_space<vmem>>, %arg25: memref<2x64x32xf32, #tpu.memory_space<vmem>>, %arg26: memref<2x1x32xf32, #tpu.memory_space<vmem>>, %arg27: memref<2x1x32xf32, #tpu.memory_space<vmem>>, %arg28: memref<2x1x32xf32, #tpu.memory_space<vmem>>, %arg29: memref<2x1x32xf32, #tpu.memory_space<vmem>>, %arg30: memref<2x1x32xf32, #tpu.memory_space<vmem>>, %arg31: memref<32x32xf32, #tpu.memory_space<vmem>>, %arg32: memref<1x32xf32, #tpu.memory_space<vmem>>, %arg33: memref<32x32xf32, #tpu.memory_space<vmem>>, %arg34: memref<1x32xf32, #tpu.memory_space<vmem>>, %arg35: memref<32x32xf32, #tpu.memory_space<vmem>>, %arg36: memref<1x32xf32, #tpu.memory_space<vmem>>, %arg37: memref<2x32xf32, #tpu.memory_space<vmem>>) attributes {dimension_semantics = [], scalar_prefetch = 0 : i64, scratch_operands = 0 : i64, tpu.core_type = #tpu.core_type<tc>} {
    %c0 = arith.constant 0 : index
    %c0_0 = arith.constant 0 : index
    %0 = vector.load %arg1[%c0, %c0_0] : memref<2x8xf32, #tpu.memory_space<vmem>>, vector<2x8xf32>
    %c0_1 = arith.constant 0 : index
    %c0_2 = arith.constant 0 : index
    %1 = vector.load %arg9[%c0_1, %c0_2] : memref<8x32xf32, #tpu.memory_space<vmem>>, vector<8x32xf32>
    %c0_3 = arith.constant 0 : index
    %c0_4 = arith.constant 0 : index
    %2 = vector.load %arg10[%c0_3, %c0_4] : memref<1x32xf32, #tpu.memory_space<vmem>>, vector<1x32xf32>
    %c0_5 = arith.constant 0 : index
    %c0_6 = arith.constant 0 : index
    %3 = vector.load %arg11[%c0_5, %c0_6] : memref<32x32xf32, #tpu.memory_space<vmem>>, vector<32x32xf32>
    %c0_7 = arith.constant 0 : index
    %c0_8 = arith.constant 0 : index
    %4 = vector.load %arg12[%c0_7, %c0_8] : memref<1x32xf32, #tpu.memory_space<vmem>>, vector<1x32xf32>
    %c0_9 = arith.constant 0 : index
    %c0_10 = arith.constant 0 : index
    %5 = vector.load %arg13[%c0_9, %c0_10] : memref<32x32xf32, #tpu.memory_space<vmem>>, vector<32x32xf32>
    %c0_11 = arith.constant 0 : index
    %c0_12 = arith.constant 0 : index
    %6 = vector.load %arg14[%c0_11, %c0_12] : memref<1x32xf32, #tpu.memory_space<vmem>>, vector<1x32xf32>
    %cst = arith.constant dense<0.000000e+00> : vector<2x32xf32>
    %7 = tpu.matmul %0, %1, %cst {dimension_numbers = #tpu.dot_dimension_numbers<[1], [0], [0], [1], [0, 0, 1, 1], [], []>} : vector<2x8xf32>, vector<8x32xf32>, vector<2x32xf32> -> vector<2x32xf32>
    %8 = vector.broadcast %2 : vector<1x32xf32> to vector<2x32xf32>
    %9 = arith.addf %7, %8 : vector<2x32xf32>
    %cst_13 = arith.constant 0.000000e+00 : f32
    %10 = vector.broadcast %cst_13 : f32 to vector<2x32xf32>
    %11 = arith.maximumf %9, %10 : vector<2x32xf32>
    %cst_14 = arith.constant dense<0.000000e+00> : vector<2x32xf32>
    %12 = tpu.matmul %11, %3, %cst_14 {dimension_numbers = #tpu.dot_dimension_numbers<[1], [0], [0], [1], [0, 0, 1, 1], [], []>} : vector<2x32xf32>, vector<32x32xf32>, vector<2x32xf32> -> vector<2x32xf32>
    %13 = vector.broadcast %4 : vector<1x32xf32> to vector<2x32xf32>
    %14 = arith.addf %12, %13 : vector<2x32xf32>
    %cst_15 = arith.constant 0.000000e+00 : f32
    %15 = vector.broadcast %cst_15 : f32 to vector<2x32xf32>
    %16 = arith.maximumf %14, %15 : vector<2x32xf32>
    %cst_16 = arith.constant dense<0.000000e+00> : vector<2x32xf32>
    %17 = tpu.matmul %16, %5, %cst_16 {dimension_numbers = #tpu.dot_dimension_numbers<[1], [0], [0], [1], [0, 0, 1, 1], [], []>} : vector<2x32xf32>, vector<32x32xf32>, vector<2x32xf32> -> vector<2x32xf32>
    %18 = vector.broadcast %6 : vector<1x32xf32> to vector<2x32xf32>
    %19 = arith.addf %17, %18 : vector<2x32xf32>
    %c0_17 = arith.constant 0 : index
    %c0_18 = arith.constant 0 : index
    %20 = vector.load %arg2[%c0_17, %c0_18] : memref<1x32xf32, #tpu.memory_space<vmem>>, vector<1x32xf32>
    %21 = vector.broadcast %20 : vector<1x32xf32> to vector<2x32xf32>
    %22 = arith.addf %19, %21 : vector<2x32xf32>
    %c0_19 = arith.constant 0 : index
    %c0_20 = arith.constant 0 : index
    %23 = vector.load %arg4[%c0_19, %c0_20] : memref<16x14xf32, #tpu.memory_space<vmem>>, vector<16x14xf32>
    %c0_21 = arith.constant 0 : index
    %c0_22 = arith.constant 0 : index
    %24 = vector.load %arg0[%c0_21, %c0_22] : memref<14x32xf32, #tpu.memory_space<vmem>>, vector<14x32xf32>
    %cst_23 = arith.constant dense<0.000000e+00> : vector<16x32xf32>
    %25 = tpu.matmul %23, %24, %cst_23 {dimension_numbers = #tpu.dot_dimension_numbers<[1], [0], [0], [1], [0, 0, 1, 1], [], []>} : vector<16x14xf32>, vector<14x32xf32>, vector<16x32xf32> -> vector<16x32xf32>
    %c0_24 = arith.constant 0 : index
    %c0_25 = arith.constant 0 : index
    %26 = vector.load %arg5[%c0_24, %c0_25] : memref<16x2xf32, #tpu.memory_space<vmem>>, vector<16x2xf32>
    %cst_26 = arith.constant dense<0.000000e+00> : vector<16x32xf32>
    %27 = tpu.matmul %26, %22, %cst_26 {dimension_numbers = #tpu.dot_dimension_numbers<[1], [0], [0], [1], [0, 0, 1, 1], [], []>} : vector<16x2xf32>, vector<2x32xf32>, vector<16x32xf32> -> vector<16x32xf32>
    %28 = arith.addf %25, %27 : vector<16x32xf32>
    %c0_27 = arith.constant 0 : index
    %c0_28 = arith.constant 0 : index
    %29 = vector.load %arg6[%c0_27, %c0_28] : memref<16x64xf32, #tpu.memory_space<vmem>>, vector<16x64xf32>
    %c0_29 = arith.constant 0 : index
    %c0_30 = arith.constant 0 : index
    %30 = vector.load %arg3[%c0_29, %c0_30] : memref<64x32xf32, #tpu.memory_space<vmem>>, vector<64x32xf32>
    %cst_31 = arith.constant dense<0.000000e+00> : vector<16x32xf32>
    %31 = tpu.matmul %29, %30, %cst_31 {dimension_numbers = #tpu.dot_dimension_numbers<[1], [0], [0], [1], [0, 0, 1, 1], [], []>} : vector<16x64xf32>, vector<64x32xf32>, vector<16x32xf32> -> vector<16x32xf32>
    %32 = arith.addf %28, %31 : vector<16x32xf32>
    %c0_32 = arith.constant 0 : index
    %c0_33 = arith.constant 0 : index
    %33 = vector.load %arg8[%c0_32, %c0_33] : memref<16x16xf32, #tpu.memory_space<vmem>>, vector<16x16xf32>
    %cst_34 = arith.constant 0.000000e+00 : f32
    %34 = vector.broadcast %cst_34 : f32 to vector<16x32xf32>
    %c0_35 = arith.constant 0 : index
    %c0_36 = arith.constant 0 : index
    %c0_37 = arith.constant 0 : index
    %c0_38 = arith.constant 0 : index
    %35 = vector.load %arg15[%c0_35, %c0_36, %c0_37, %c0_38] : memref<2x4x32x8xf32, #tpu.memory_space<vmem>>, vector<1x1x32x8xf32>
    %36 = vector.shape_cast %35 : vector<1x1x32x8xf32> to vector<32x8xf32>
    %cst_39 = arith.constant dense<0.000000e+00> : vector<16x8xf32>
    %37 = tpu.matmul %32, %36, %cst_39 {dimension_numbers = #tpu.dot_dimension_numbers<[1], [0], [0], [1], [0, 0, 1, 1], [], []>} : vector<16x32xf32>, vector<32x8xf32>, vector<16x8xf32> -> vector<16x8xf32>
    %c0_40 = arith.constant 0 : index
    %c0_41 = arith.constant 0 : index
    %c0_42 = arith.constant 0 : index
    %c0_43 = arith.constant 0 : index
    %38 = vector.load %arg16[%c0_40, %c0_41, %c0_42, %c0_43] : memref<2x4x1x8xf32, #tpu.memory_space<vmem>>, vector<1x1x1x8xf32>
    %39 = vector.shape_cast %38 : vector<1x1x1x8xf32> to vector<1x8xf32>
    %40 = vector.broadcast %39 : vector<1x8xf32> to vector<16x8xf32>
    %41 = arith.addf %37, %40 : vector<16x8xf32>
    %c0_44 = arith.constant 0 : index
    %c0_45 = arith.constant 0 : index
    %c0_46 = arith.constant 0 : index
    %c0_47 = arith.constant 0 : index
    %42 = vector.load %arg17[%c0_44, %c0_45, %c0_46, %c0_47] : memref<2x4x32x8xf32, #tpu.memory_space<vmem>>, vector<1x1x32x8xf32>
    %43 = vector.shape_cast %42 : vector<1x1x32x8xf32> to vector<32x8xf32>
    %cst_48 = arith.constant dense<0.000000e+00> : vector<16x8xf32>
    %44 = tpu.matmul %32, %43, %cst_48 {dimension_numbers = #tpu.dot_dimension_numbers<[1], [0], [0], [1], [0, 0, 1, 1], [], []>} : vector<16x32xf32>, vector<32x8xf32>, vector<16x8xf32> -> vector<16x8xf32>
    %c0_49 = arith.constant 0 : index
    %c0_50 = arith.constant 0 : index
    %c0_51 = arith.constant 0 : index
    %c0_52 = arith.constant 0 : index
    %45 = vector.load %arg18[%c0_49, %c0_50, %c0_51, %c0_52] : memref<2x4x1x8xf32, #tpu.memory_space<vmem>>, vector<1x1x1x8xf32>
    %46 = vector.shape_cast %45 : vector<1x1x1x8xf32> to vector<1x8xf32>
    %47 = vector.broadcast %46 : vector<1x8xf32> to vector<16x8xf32>
    %48 = arith.addf %44, %47 : vector<16x8xf32>
    %c0_53 = arith.constant 0 : index
    %c0_54 = arith.constant 0 : index
    %c0_55 = arith.constant 0 : index
    %c0_56 = arith.constant 0 : index
    %49 = vector.load %arg19[%c0_53, %c0_54, %c0_55, %c0_56] : memref<2x4x32x8xf32, #tpu.memory_space<vmem>>, vector<1x1x32x8xf32>
    %50 = vector.shape_cast %49 : vector<1x1x32x8xf32> to vector<32x8xf32>
    %cst_57 = arith.constant dense<0.000000e+00> : vector<16x8xf32>
    %51 = tpu.matmul %32, %50, %cst_57 {dimension_numbers = #tpu.dot_dimension_numbers<[1], [0], [0], [1], [0, 0, 1, 1], [], []>} : vector<16x32xf32>, vector<32x8xf32>, vector<16x8xf32> -> vector<16x8xf32>
    %c0_58 = arith.constant 0 : index
    %c0_59 = arith.constant 0 : index
    %c0_60 = arith.constant 0 : index
    %c0_61 = arith.constant 0 : index
    %52 = vector.load %arg20[%c0_58, %c0_59, %c0_60, %c0_61] : memref<2x4x1x8xf32, #tpu.memory_space<vmem>>, vector<1x1x1x8xf32>
    %53 = vector.shape_cast %52 : vector<1x1x1x8xf32> to vector<1x8xf32>
    %54 = vector.broadcast %53 : vector<1x8xf32> to vector<16x8xf32>
    %55 = arith.addf %51, %54 : vector<16x8xf32>
    %cst_62 = arith.constant dense<0.000000e+00> : vector<16x16xf32>
    %56 = tpu.matmul %41, %48, %cst_62 {dimension_numbers = #tpu.dot_dimension_numbers<[1], [1], [0], [0], [0, 0, 1, 0], [], []>} : vector<16x8xf32>, vector<16x8xf32>, vector<16x16xf32> -> vector<16x16xf32>
    %57 = arith.addf %56, %33 : vector<16x16xf32>
    %cst_63 = arith.constant dense<0xFF800000> : vector<16xf32>
    %58 = vector.multi_reduction <maximumf>, %57, %cst_63 [1] : vector<16x16xf32> to vector<16xf32>
    %59 = vector.shape_cast %58 : vector<16xf32> to vector<16x1xf32>
    %60 = vector.broadcast %59 : vector<16x1xf32> to vector<16x16xf32>
    %61 = arith.subf %57, %60 : vector<16x16xf32>
    %62 = math.exp %61 : vector<16x16xf32>
    %cst_64 = arith.constant dense<0.000000e+00> : vector<16xf32>
    %63 = vector.multi_reduction <add>, %62, %cst_64 [1] : vector<16x16xf32> to vector<16xf32>
    %64 = vector.shape_cast %63 : vector<16xf32> to vector<16x1xf32>
    %65 = tpu.reciprocal %64 {approx = true} : vector<16x1xf32> -> vector<16x1xf32>
    %66 = vector.broadcast %65 : vector<16x1xf32> to vector<16x16xf32>
    %67 = arith.mulf %62, %66 : vector<16x16xf32>
    %cst_65 = arith.constant dense<0.000000e+00> : vector<16x8xf32>
    %68 = tpu.matmul %67, %55, %cst_65 {dimension_numbers = #tpu.dot_dimension_numbers<[1], [0], [0], [1], [0, 0, 1, 1], [], []>} : vector<16x16xf32>, vector<16x8xf32>, vector<16x8xf32> -> vector<16x8xf32>
    %c0_66 = arith.constant 0 : index
    %c0_67 = arith.constant 0 : index
    %c0_68 = arith.constant 0 : index
    %c0_69 = arith.constant 0 : index
    %69 = vector.load %arg21[%c0_66, %c0_67, %c0_68, %c0_69] : memref<2x4x8x32xf32, #tpu.memory_space<vmem>>, vector<1x1x8x32xf32>
    %70 = vector.shape_cast %69 : vector<1x1x8x32xf32> to vector<8x32xf32>
    %cst_70 = arith.constant dense<0.000000e+00> : vector<16x32xf32>
    %71 = tpu.matmul %68, %70, %cst_70 {dimension_numbers = #tpu.dot_dimension_numbers<[1], [0], [0], [1], [0, 0, 1, 1], [], []>} : vector<16x8xf32>, vector<8x32xf32>, vector<16x32xf32> -> vector<16x32xf32>
    %72 = arith.addf %34, %71 : vector<16x32xf32>
    %c0_71 = arith.constant 0 : index
    %c1 = arith.constant 1 : index
    %c0_72 = arith.constant 0 : index
    %c0_73 = arith.constant 0 : index
    %73 = vector.load %arg15[%c0_71, %c1, %c0_72, %c0_73] : memref<2x4x32x8xf32, #tpu.memory_space<vmem>>, vector<1x1x32x8xf32>
    %74 = vector.shape_cast %73 : vector<1x1x32x8xf32> to vector<32x8xf32>
    %cst_74 = arith.constant dense<0.000000e+00> : vector<16x8xf32>
    %75 = tpu.matmul %32, %74, %cst_74 {dimension_numbers = #tpu.dot_dimension_numbers<[1], [0], [0], [1], [0, 0, 1, 1], [], []>} : vector<16x32xf32>, vector<32x8xf32>, vector<16x8xf32> -> vector<16x8xf32>
    %c0_75 = arith.constant 0 : index
    %c1_76 = arith.constant 1 : index
    %c0_77 = arith.constant 0 : index
    %c0_78 = arith.constant 0 : index
    %76 = vector.load %arg16[%c0_75, %c1_76, %c0_77, %c0_78] : memref<2x4x1x8xf32, #tpu.memory_space<vmem>>, vector<1x1x1x8xf32>
    %77 = vector.shape_cast %76 : vector<1x1x1x8xf32> to vector<1x8xf32>
    %78 = vector.broadcast %77 : vector<1x8xf32> to vector<16x8xf32>
    %79 = arith.addf %75, %78 : vector<16x8xf32>
    %c0_79 = arith.constant 0 : index
    %c1_80 = arith.constant 1 : index
    %c0_81 = arith.constant 0 : index
    %c0_82 = arith.constant 0 : index
    %80 = vector.load %arg17[%c0_79, %c1_80, %c0_81, %c0_82] : memref<2x4x32x8xf32, #tpu.memory_space<vmem>>, vector<1x1x32x8xf32>
    %81 = vector.shape_cast %80 : vector<1x1x32x8xf32> to vector<32x8xf32>
    %cst_83 = arith.constant dense<0.000000e+00> : vector<16x8xf32>
    %82 = tpu.matmul %32, %81, %cst_83 {dimension_numbers = #tpu.dot_dimension_numbers<[1], [0], [0], [1], [0, 0, 1, 1], [], []>} : vector<16x32xf32>, vector<32x8xf32>, vector<16x8xf32> -> vector<16x8xf32>
    %c0_84 = arith.constant 0 : index
    %c1_85 = arith.constant 1 : index
    %c0_86 = arith.constant 0 : index
    %c0_87 = arith.constant 0 : index
    %83 = vector.load %arg18[%c0_84, %c1_85, %c0_86, %c0_87] : memref<2x4x1x8xf32, #tpu.memory_space<vmem>>, vector<1x1x1x8xf32>
    %84 = vector.shape_cast %83 : vector<1x1x1x8xf32> to vector<1x8xf32>
    %85 = vector.broadcast %84 : vector<1x8xf32> to vector<16x8xf32>
    %86 = arith.addf %82, %85 : vector<16x8xf32>
    %c0_88 = arith.constant 0 : index
    %c1_89 = arith.constant 1 : index
    %c0_90 = arith.constant 0 : index
    %c0_91 = arith.constant 0 : index
    %87 = vector.load %arg19[%c0_88, %c1_89, %c0_90, %c0_91] : memref<2x4x32x8xf32, #tpu.memory_space<vmem>>, vector<1x1x32x8xf32>
    %88 = vector.shape_cast %87 : vector<1x1x32x8xf32> to vector<32x8xf32>
    %cst_92 = arith.constant dense<0.000000e+00> : vector<16x8xf32>
    %89 = tpu.matmul %32, %88, %cst_92 {dimension_numbers = #tpu.dot_dimension_numbers<[1], [0], [0], [1], [0, 0, 1, 1], [], []>} : vector<16x32xf32>, vector<32x8xf32>, vector<16x8xf32> -> vector<16x8xf32>
    %c0_93 = arith.constant 0 : index
    %c1_94 = arith.constant 1 : index
    %c0_95 = arith.constant 0 : index
    %c0_96 = arith.constant 0 : index
    %90 = vector.load %arg20[%c0_93, %c1_94, %c0_95, %c0_96] : memref<2x4x1x8xf32, #tpu.memory_space<vmem>>, vector<1x1x1x8xf32>
    %91 = vector.shape_cast %90 : vector<1x1x1x8xf32> to vector<1x8xf32>
    %92 = vector.broadcast %91 : vector<1x8xf32> to vector<16x8xf32>
    %93 = arith.addf %89, %92 : vector<16x8xf32>
    %cst_97 = arith.constant dense<0.000000e+00> : vector<16x16xf32>
    %94 = tpu.matmul %79, %86, %cst_97 {dimension_numbers = #tpu.dot_dimension_numbers<[1], [1], [0], [0], [0, 0, 1, 0], [], []>} : vector<16x8xf32>, vector<16x8xf32>, vector<16x16xf32> -> vector<16x16xf32>
    %95 = arith.addf %94, %33 : vector<16x16xf32>
    %cst_98 = arith.constant dense<0xFF800000> : vector<16xf32>
    %96 = vector.multi_reduction <maximumf>, %95, %cst_98 [1] : vector<16x16xf32> to vector<16xf32>
    %97 = vector.shape_cast %96 : vector<16xf32> to vector<16x1xf32>
    %98 = vector.broadcast %97 : vector<16x1xf32> to vector<16x16xf32>
    %99 = arith.subf %95, %98 : vector<16x16xf32>
    %100 = math.exp %99 : vector<16x16xf32>
    %cst_99 = arith.constant dense<0.000000e+00> : vector<16xf32>
    %101 = vector.multi_reduction <add>, %100, %cst_99 [1] : vector<16x16xf32> to vector<16xf32>
    %102 = vector.shape_cast %101 : vector<16xf32> to vector<16x1xf32>
    %103 = tpu.reciprocal %102 {approx = true} : vector<16x1xf32> -> vector<16x1xf32>
    %104 = vector.broadcast %103 : vector<16x1xf32> to vector<16x16xf32>
    %105 = arith.mulf %100, %104 : vector<16x16xf32>
    %cst_100 = arith.constant dense<0.000000e+00> : vector<16x8xf32>
    %106 = tpu.matmul %105, %93, %cst_100 {dimension_numbers = #tpu.dot_dimension_numbers<[1], [0], [0], [1], [0, 0, 1, 1], [], []>} : vector<16x16xf32>, vector<16x8xf32>, vector<16x8xf32> -> vector<16x8xf32>
    %c0_101 = arith.constant 0 : index
    %c1_102 = arith.constant 1 : index
    %c0_103 = arith.constant 0 : index
    %c0_104 = arith.constant 0 : index
    %107 = vector.load %arg21[%c0_101, %c1_102, %c0_103, %c0_104] : memref<2x4x8x32xf32, #tpu.memory_space<vmem>>, vector<1x1x8x32xf32>
    %108 = vector.shape_cast %107 : vector<1x1x8x32xf32> to vector<8x32xf32>
    %cst_105 = arith.constant dense<0.000000e+00> : vector<16x32xf32>
    %109 = tpu.matmul %106, %108, %cst_105 {dimension_numbers = #tpu.dot_dimension_numbers<[1], [0], [0], [1], [0, 0, 1, 1], [], []>} : vector<16x8xf32>, vector<8x32xf32>, vector<16x32xf32> -> vector<16x32xf32>
    %110 = arith.addf %72, %109 : vector<16x32xf32>
    %c0_106 = arith.constant 0 : index
    %c2 = arith.constant 2 : index
    %c0_107 = arith.constant 0 : index
    %c0_108 = arith.constant 0 : index
    %111 = vector.load %arg15[%c0_106, %c2, %c0_107, %c0_108] : memref<2x4x32x8xf32, #tpu.memory_space<vmem>>, vector<1x1x32x8xf32>
    %112 = vector.shape_cast %111 : vector<1x1x32x8xf32> to vector<32x8xf32>
    %cst_109 = arith.constant dense<0.000000e+00> : vector<16x8xf32>
    %113 = tpu.matmul %32, %112, %cst_109 {dimension_numbers = #tpu.dot_dimension_numbers<[1], [0], [0], [1], [0, 0, 1, 1], [], []>} : vector<16x32xf32>, vector<32x8xf32>, vector<16x8xf32> -> vector<16x8xf32>
    %c0_110 = arith.constant 0 : index
    %c2_111 = arith.constant 2 : index
    %c0_112 = arith.constant 0 : index
    %c0_113 = arith.constant 0 : index
    %114 = vector.load %arg16[%c0_110, %c2_111, %c0_112, %c0_113] : memref<2x4x1x8xf32, #tpu.memory_space<vmem>>, vector<1x1x1x8xf32>
    %115 = vector.shape_cast %114 : vector<1x1x1x8xf32> to vector<1x8xf32>
    %116 = vector.broadcast %115 : vector<1x8xf32> to vector<16x8xf32>
    %117 = arith.addf %113, %116 : vector<16x8xf32>
    %c0_114 = arith.constant 0 : index
    %c2_115 = arith.constant 2 : index
    %c0_116 = arith.constant 0 : index
    %c0_117 = arith.constant 0 : index
    %118 = vector.load %arg17[%c0_114, %c2_115, %c0_116, %c0_117] : memref<2x4x32x8xf32, #tpu.memory_space<vmem>>, vector<1x1x32x8xf32>
    %119 = vector.shape_cast %118 : vector<1x1x32x8xf32> to vector<32x8xf32>
    %cst_118 = arith.constant dense<0.000000e+00> : vector<16x8xf32>
    %120 = tpu.matmul %32, %119, %cst_118 {dimension_numbers = #tpu.dot_dimension_numbers<[1], [0], [0], [1], [0, 0, 1, 1], [], []>} : vector<16x32xf32>, vector<32x8xf32>, vector<16x8xf32> -> vector<16x8xf32>
    %c0_119 = arith.constant 0 : index
    %c2_120 = arith.constant 2 : index
    %c0_121 = arith.constant 0 : index
    %c0_122 = arith.constant 0 : index
    %121 = vector.load %arg18[%c0_119, %c2_120, %c0_121, %c0_122] : memref<2x4x1x8xf32, #tpu.memory_space<vmem>>, vector<1x1x1x8xf32>
    %122 = vector.shape_cast %121 : vector<1x1x1x8xf32> to vector<1x8xf32>
    %123 = vector.broadcast %122 : vector<1x8xf32> to vector<16x8xf32>
    %124 = arith.addf %120, %123 : vector<16x8xf32>
    %c0_123 = arith.constant 0 : index
    %c2_124 = arith.constant 2 : index
    %c0_125 = arith.constant 0 : index
    %c0_126 = arith.constant 0 : index
    %125 = vector.load %arg19[%c0_123, %c2_124, %c0_125, %c0_126] : memref<2x4x32x8xf32, #tpu.memory_space<vmem>>, vector<1x1x32x8xf32>
    %126 = vector.shape_cast %125 : vector<1x1x32x8xf32> to vector<32x8xf32>
    %cst_127 = arith.constant dense<0.000000e+00> : vector<16x8xf32>
    %127 = tpu.matmul %32, %126, %cst_127 {dimension_numbers = #tpu.dot_dimension_numbers<[1], [0], [0], [1], [0, 0, 1, 1], [], []>} : vector<16x32xf32>, vector<32x8xf32>, vector<16x8xf32> -> vector<16x8xf32>
    %c0_128 = arith.constant 0 : index
    %c2_129 = arith.constant 2 : index
    %c0_130 = arith.constant 0 : index
    %c0_131 = arith.constant 0 : index
    %128 = vector.load %arg20[%c0_128, %c2_129, %c0_130, %c0_131] : memref<2x4x1x8xf32, #tpu.memory_space<vmem>>, vector<1x1x1x8xf32>
    %129 = vector.shape_cast %128 : vector<1x1x1x8xf32> to vector<1x8xf32>
    %130 = vector.broadcast %129 : vector<1x8xf32> to vector<16x8xf32>
    %131 = arith.addf %127, %130 : vector<16x8xf32>
    %cst_132 = arith.constant dense<0.000000e+00> : vector<16x16xf32>
    %132 = tpu.matmul %117, %124, %cst_132 {dimension_numbers = #tpu.dot_dimension_numbers<[1], [1], [0], [0], [0, 0, 1, 0], [], []>} : vector<16x8xf32>, vector<16x8xf32>, vector<16x16xf32> -> vector<16x16xf32>
    %133 = arith.addf %132, %33 : vector<16x16xf32>
    %cst_133 = arith.constant dense<0xFF800000> : vector<16xf32>
    %134 = vector.multi_reduction <maximumf>, %133, %cst_133 [1] : vector<16x16xf32> to vector<16xf32>
    %135 = vector.shape_cast %134 : vector<16xf32> to vector<16x1xf32>
    %136 = vector.broadcast %135 : vector<16x1xf32> to vector<16x16xf32>
    %137 = arith.subf %133, %136 : vector<16x16xf32>
    %138 = math.exp %137 : vector<16x16xf32>
    %cst_134 = arith.constant dense<0.000000e+00> : vector<16xf32>
    %139 = vector.multi_reduction <add>, %138, %cst_134 [1] : vector<16x16xf32> to vector<16xf32>
    %140 = vector.shape_cast %139 : vector<16xf32> to vector<16x1xf32>
    %141 = tpu.reciprocal %140 {approx = true} : vector<16x1xf32> -> vector<16x1xf32>
    %142 = vector.broadcast %141 : vector<16x1xf32> to vector<16x16xf32>
    %143 = arith.mulf %138, %142 : vector<16x16xf32>
    %cst_135 = arith.constant dense<0.000000e+00> : vector<16x8xf32>
    %144 = tpu.matmul %143, %131, %cst_135 {dimension_numbers = #tpu.dot_dimension_numbers<[1], [0], [0], [1], [0, 0, 1, 1], [], []>} : vector<16x16xf32>, vector<16x8xf32>, vector<16x8xf32> -> vector<16x8xf32>
    %c0_136 = arith.constant 0 : index
    %c2_137 = arith.constant 2 : index
    %c0_138 = arith.constant 0 : index
    %c0_139 = arith.constant 0 : index
    %145 = vector.load %arg21[%c0_136, %c2_137, %c0_138, %c0_139] : memref<2x4x8x32xf32, #tpu.memory_space<vmem>>, vector<1x1x8x32xf32>
    %146 = vector.shape_cast %145 : vector<1x1x8x32xf32> to vector<8x32xf32>
    %cst_140 = arith.constant dense<0.000000e+00> : vector<16x32xf32>
    %147 = tpu.matmul %144, %146, %cst_140 {dimension_numbers = #tpu.dot_dimension_numbers<[1], [0], [0], [1], [0, 0, 1, 1], [], []>} : vector<16x8xf32>, vector<8x32xf32>, vector<16x32xf32> -> vector<16x32xf32>
    %148 = arith.addf %110, %147 : vector<16x32xf32>
    %c0_141 = arith.constant 0 : index
    %c3 = arith.constant 3 : index
    %c0_142 = arith.constant 0 : index
    %c0_143 = arith.constant 0 : index
    %149 = vector.load %arg15[%c0_141, %c3, %c0_142, %c0_143] : memref<2x4x32x8xf32, #tpu.memory_space<vmem>>, vector<1x1x32x8xf32>
    %150 = vector.shape_cast %149 : vector<1x1x32x8xf32> to vector<32x8xf32>
    %cst_144 = arith.constant dense<0.000000e+00> : vector<16x8xf32>
    %151 = tpu.matmul %32, %150, %cst_144 {dimension_numbers = #tpu.dot_dimension_numbers<[1], [0], [0], [1], [0, 0, 1, 1], [], []>} : vector<16x32xf32>, vector<32x8xf32>, vector<16x8xf32> -> vector<16x8xf32>
    %c0_145 = arith.constant 0 : index
    %c3_146 = arith.constant 3 : index
    %c0_147 = arith.constant 0 : index
    %c0_148 = arith.constant 0 : index
    %152 = vector.load %arg16[%c0_145, %c3_146, %c0_147, %c0_148] : memref<2x4x1x8xf32, #tpu.memory_space<vmem>>, vector<1x1x1x8xf32>
    %153 = vector.shape_cast %152 : vector<1x1x1x8xf32> to vector<1x8xf32>
    %154 = vector.broadcast %153 : vector<1x8xf32> to vector<16x8xf32>
    %155 = arith.addf %151, %154 : vector<16x8xf32>
    %c0_149 = arith.constant 0 : index
    %c3_150 = arith.constant 3 : index
    %c0_151 = arith.constant 0 : index
    %c0_152 = arith.constant 0 : index
    %156 = vector.load %arg17[%c0_149, %c3_150, %c0_151, %c0_152] : memref<2x4x32x8xf32, #tpu.memory_space<vmem>>, vector<1x1x32x8xf32>
    %157 = vector.shape_cast %156 : vector<1x1x32x8xf32> to vector<32x8xf32>
    %cst_153 = arith.constant dense<0.000000e+00> : vector<16x8xf32>
    %158 = tpu.matmul %32, %157, %cst_153 {dimension_numbers = #tpu.dot_dimension_numbers<[1], [0], [0], [1], [0, 0, 1, 1], [], []>} : vector<16x32xf32>, vector<32x8xf32>, vector<16x8xf32> -> vector<16x8xf32>
    %c0_154 = arith.constant 0 : index
    %c3_155 = arith.constant 3 : index
    %c0_156 = arith.constant 0 : index
    %c0_157 = arith.constant 0 : index
    %159 = vector.load %arg18[%c0_154, %c3_155, %c0_156, %c0_157] : memref<2x4x1x8xf32, #tpu.memory_space<vmem>>, vector<1x1x1x8xf32>
    %160 = vector.shape_cast %159 : vector<1x1x1x8xf32> to vector<1x8xf32>
    %161 = vector.broadcast %160 : vector<1x8xf32> to vector<16x8xf32>
    %162 = arith.addf %158, %161 : vector<16x8xf32>
    %c0_158 = arith.constant 0 : index
    %c3_159 = arith.constant 3 : index
    %c0_160 = arith.constant 0 : index
    %c0_161 = arith.constant 0 : index
    %163 = vector.load %arg19[%c0_158, %c3_159, %c0_160, %c0_161] : memref<2x4x32x8xf32, #tpu.memory_space<vmem>>, vector<1x1x32x8xf32>
    %164 = vector.shape_cast %163 : vector<1x1x32x8xf32> to vector<32x8xf32>
    %cst_162 = arith.constant dense<0.000000e+00> : vector<16x8xf32>
    %165 = tpu.matmul %32, %164, %cst_162 {dimension_numbers = #tpu.dot_dimension_numbers<[1], [0], [0], [1], [0, 0, 1, 1], [], []>} : vector<16x32xf32>, vector<32x8xf32>, vector<16x8xf32> -> vector<16x8xf32>
    %c0_163 = arith.constant 0 : index
    %c3_164 = arith.constant 3 : index
    %c0_165 = arith.constant 0 : index
    %c0_166 = arith.constant 0 : index
    %166 = vector.load %arg20[%c0_163, %c3_164, %c0_165, %c0_166] : memref<2x4x1x8xf32, #tpu.memory_space<vmem>>, vector<1x1x1x8xf32>
    %167 = vector.shape_cast %166 : vector<1x1x1x8xf32> to vector<1x8xf32>
    %168 = vector.broadcast %167 : vector<1x8xf32> to vector<16x8xf32>
    %169 = arith.addf %165, %168 : vector<16x8xf32>
    %cst_167 = arith.constant dense<0.000000e+00> : vector<16x16xf32>
    %170 = tpu.matmul %155, %162, %cst_167 {dimension_numbers = #tpu.dot_dimension_numbers<[1], [1], [0], [0], [0, 0, 1, 0], [], []>} : vector<16x8xf32>, vector<16x8xf32>, vector<16x16xf32> -> vector<16x16xf32>
    %171 = arith.addf %170, %33 : vector<16x16xf32>
    %cst_168 = arith.constant dense<0xFF800000> : vector<16xf32>
    %172 = vector.multi_reduction <maximumf>, %171, %cst_168 [1] : vector<16x16xf32> to vector<16xf32>
    %173 = vector.shape_cast %172 : vector<16xf32> to vector<16x1xf32>
    %174 = vector.broadcast %173 : vector<16x1xf32> to vector<16x16xf32>
    %175 = arith.subf %171, %174 : vector<16x16xf32>
    %176 = math.exp %175 : vector<16x16xf32>
    %cst_169 = arith.constant dense<0.000000e+00> : vector<16xf32>
    %177 = vector.multi_reduction <add>, %176, %cst_169 [1] : vector<16x16xf32> to vector<16xf32>
    %178 = vector.shape_cast %177 : vector<16xf32> to vector<16x1xf32>
    %179 = tpu.reciprocal %178 {approx = true} : vector<16x1xf32> -> vector<16x1xf32>
    %180 = vector.broadcast %179 : vector<16x1xf32> to vector<16x16xf32>
    %181 = arith.mulf %176, %180 : vector<16x16xf32>
    %cst_170 = arith.constant dense<0.000000e+00> : vector<16x8xf32>
    %182 = tpu.matmul %181, %169, %cst_170 {dimension_numbers = #tpu.dot_dimension_numbers<[1], [0], [0], [1], [0, 0, 1, 1], [], []>} : vector<16x16xf32>, vector<16x8xf32>, vector<16x8xf32> -> vector<16x8xf32>
    %c0_171 = arith.constant 0 : index
    %c3_172 = arith.constant 3 : index
    %c0_173 = arith.constant 0 : index
    %c0_174 = arith.constant 0 : index
    %183 = vector.load %arg21[%c0_171, %c3_172, %c0_173, %c0_174] : memref<2x4x8x32xf32, #tpu.memory_space<vmem>>, vector<1x1x8x32xf32>
    %184 = vector.shape_cast %183 : vector<1x1x8x32xf32> to vector<8x32xf32>
    %cst_175 = arith.constant dense<0.000000e+00> : vector<16x32xf32>
    %185 = tpu.matmul %182, %184, %cst_175 {dimension_numbers = #tpu.dot_dimension_numbers<[1], [0], [0], [1], [0, 0, 1, 1], [], []>} : vector<16x8xf32>, vector<8x32xf32>, vector<16x32xf32> -> vector<16x32xf32>
    %186 = arith.addf %148, %185 : vector<16x32xf32>
    %c0_176 = arith.constant 0 : index
    %c0_177 = arith.constant 0 : index
    %c0_178 = arith.constant 0 : index
    %187 = vector.load %arg22[%c0_176, %c0_177, %c0_178] : memref<2x1x32xf32, #tpu.memory_space<vmem>>, vector<1x1x32xf32>
    %188 = vector.shape_cast %187 : vector<1x1x32xf32> to vector<1x32xf32>
    %189 = vector.broadcast %188 : vector<1x32xf32> to vector<16x32xf32>
    %190 = arith.addf %186, %189 : vector<16x32xf32>
    %191 = arith.addf %32, %190 : vector<16x32xf32>
    %c0_179 = arith.constant 0 : index
    %c0_180 = arith.constant 0 : index
    %c0_181 = arith.constant 0 : index
    %192 = vector.load %arg27[%c0_179, %c0_180, %c0_181] : memref<2x1x32xf32, #tpu.memory_space<vmem>>, vector<1x1x32xf32>
    %193 = vector.shape_cast %192 : vector<1x1x32xf32> to vector<1x32xf32>
    %c0_182 = arith.constant 0 : index
    %c0_183 = arith.constant 0 : index
    %c0_184 = arith.constant 0 : index
    %194 = vector.load %arg28[%c0_182, %c0_183, %c0_184] : memref<2x1x32xf32, #tpu.memory_space<vmem>>, vector<1x1x32xf32>
    %195 = vector.shape_cast %194 : vector<1x1x32xf32> to vector<1x32xf32>
    %cst_185 = arith.constant dense<0.000000e+00> : vector<16xf32>
    %196 = vector.multi_reduction <add>, %191, %cst_185 [1] : vector<16x32xf32> to vector<16xf32>
    %197 = vector.shape_cast %196 : vector<16xf32> to vector<16x1xf32>
    %cst_186 = arith.constant 3.200000e+01 : f32
    %198 = vector.broadcast %cst_186 : f32 to vector<16x1xf32>
    %199 = arith.divf %197, %198 : vector<16x1xf32>
    %200 = vector.broadcast %199 : vector<16x1xf32> to vector<16x32xf32>
    %201 = arith.subf %191, %200 : vector<16x32xf32>
    %202 = arith.mulf %201, %201 : vector<16x32xf32>
    %cst_187 = arith.constant dense<0.000000e+00> : vector<16xf32>
    %203 = vector.multi_reduction <add>, %202, %cst_187 [1] : vector<16x32xf32> to vector<16xf32>
    %204 = vector.shape_cast %203 : vector<16xf32> to vector<16x1xf32>
    %cst_188 = arith.constant 3.200000e+01 : f32
    %205 = vector.broadcast %cst_188 : f32 to vector<16x1xf32>
    %206 = arith.divf %204, %205 : vector<16x1xf32>
    %207 = vector.broadcast %199 : vector<16x1xf32> to vector<16x32xf32>
    %208 = arith.subf %191, %207 : vector<16x32xf32>
    %cst_189 = arith.constant 9.99999974E-6 : f32
    %209 = vector.broadcast %cst_189 : f32 to vector<16x1xf32>
    %210 = arith.addf %206, %209 : vector<16x1xf32>
    %211 = math.rsqrt %210 : vector<16x1xf32>
    %212 = vector.broadcast %211 : vector<16x1xf32> to vector<16x32xf32>
    %213 = arith.mulf %208, %212 : vector<16x32xf32>
    %214 = vector.broadcast %193 : vector<1x32xf32> to vector<16x32xf32>
    %215 = arith.mulf %213, %214 : vector<16x32xf32>
    %216 = vector.broadcast %195 : vector<1x32xf32> to vector<16x32xf32>
    %217 = arith.addf %215, %216 : vector<16x32xf32>
    %c0_190 = arith.constant 0 : index
    %c0_191 = arith.constant 0 : index
    %c0_192 = arith.constant 0 : index
    %218 = vector.load %arg23[%c0_190, %c0_191, %c0_192] : memref<2x32x64xf32, #tpu.memory_space<vmem>>, vector<1x32x64xf32>
    %219 = vector.shape_cast %218 : vector<1x32x64xf32> to vector<32x64xf32>
    %cst_193 = arith.constant dense<0.000000e+00> : vector<16x64xf32>
    %220 = tpu.matmul %217, %219, %cst_193 {dimension_numbers = #tpu.dot_dimension_numbers<[1], [0], [0], [1], [0, 0, 1, 1], [], []>} : vector<16x32xf32>, vector<32x64xf32>, vector<16x64xf32> -> vector<16x64xf32>
    %c0_194 = arith.constant 0 : index
    %c0_195 = arith.constant 0 : index
    %c0_196 = arith.constant 0 : index
    %221 = vector.load %arg24[%c0_194, %c0_195, %c0_196] : memref<2x1x64xf32, #tpu.memory_space<vmem>>, vector<1x1x64xf32>
    %222 = vector.shape_cast %221 : vector<1x1x64xf32> to vector<1x64xf32>
    %223 = vector.broadcast %222 : vector<1x64xf32> to vector<16x64xf32>
    %224 = arith.addf %220, %223 : vector<16x64xf32>
    %cst_197 = arith.constant 0.000000e+00 : f32
    %225 = vector.broadcast %cst_197 : f32 to vector<16x64xf32>
    %226 = arith.maximumf %224, %225 : vector<16x64xf32>
    %c0_198 = arith.constant 0 : index
    %c0_199 = arith.constant 0 : index
    %c0_200 = arith.constant 0 : index
    %227 = vector.load %arg25[%c0_198, %c0_199, %c0_200] : memref<2x64x32xf32, #tpu.memory_space<vmem>>, vector<1x64x32xf32>
    %228 = vector.shape_cast %227 : vector<1x64x32xf32> to vector<64x32xf32>
    %cst_201 = arith.constant dense<0.000000e+00> : vector<16x32xf32>
    %229 = tpu.matmul %226, %228, %cst_201 {dimension_numbers = #tpu.dot_dimension_numbers<[1], [0], [0], [1], [0, 0, 1, 1], [], []>} : vector<16x64xf32>, vector<64x32xf32>, vector<16x32xf32> -> vector<16x32xf32>
    %c0_202 = arith.constant 0 : index
    %c0_203 = arith.constant 0 : index
    %c0_204 = arith.constant 0 : index
    %230 = vector.load %arg26[%c0_202, %c0_203, %c0_204] : memref<2x1x32xf32, #tpu.memory_space<vmem>>, vector<1x1x32xf32>
    %231 = vector.shape_cast %230 : vector<1x1x32xf32> to vector<1x32xf32>
    %232 = vector.broadcast %231 : vector<1x32xf32> to vector<16x32xf32>
    %233 = arith.addf %229, %232 : vector<16x32xf32>
    %234 = arith.addf %217, %233 : vector<16x32xf32>
    %c0_205 = arith.constant 0 : index
    %c0_206 = arith.constant 0 : index
    %c0_207 = arith.constant 0 : index
    %235 = vector.load %arg29[%c0_205, %c0_206, %c0_207] : memref<2x1x32xf32, #tpu.memory_space<vmem>>, vector<1x1x32xf32>
    %236 = vector.shape_cast %235 : vector<1x1x32xf32> to vector<1x32xf32>
    %c0_208 = arith.constant 0 : index
    %c0_209 = arith.constant 0 : index
    %c0_210 = arith.constant 0 : index
    %237 = vector.load %arg30[%c0_208, %c0_209, %c0_210] : memref<2x1x32xf32, #tpu.memory_space<vmem>>, vector<1x1x32xf32>
    %238 = vector.shape_cast %237 : vector<1x1x32xf32> to vector<1x32xf32>
    %cst_211 = arith.constant dense<0.000000e+00> : vector<16xf32>
    %239 = vector.multi_reduction <add>, %234, %cst_211 [1] : vector<16x32xf32> to vector<16xf32>
    %240 = vector.shape_cast %239 : vector<16xf32> to vector<16x1xf32>
    %cst_212 = arith.constant 3.200000e+01 : f32
    %241 = vector.broadcast %cst_212 : f32 to vector<16x1xf32>
    %242 = arith.divf %240, %241 : vector<16x1xf32>
    %243 = vector.broadcast %242 : vector<16x1xf32> to vector<16x32xf32>
    %244 = arith.subf %234, %243 : vector<16x32xf32>
    %245 = arith.mulf %244, %244 : vector<16x32xf32>
    %cst_213 = arith.constant dense<0.000000e+00> : vector<16xf32>
    %246 = vector.multi_reduction <add>, %245, %cst_213 [1] : vector<16x32xf32> to vector<16xf32>
    %247 = vector.shape_cast %246 : vector<16xf32> to vector<16x1xf32>
    %cst_214 = arith.constant 3.200000e+01 : f32
    %248 = vector.broadcast %cst_214 : f32 to vector<16x1xf32>
    %249 = arith.divf %247, %248 : vector<16x1xf32>
    %250 = vector.broadcast %242 : vector<16x1xf32> to vector<16x32xf32>
    %251 = arith.subf %234, %250 : vector<16x32xf32>
    %cst_215 = arith.constant 9.99999974E-6 : f32
    %252 = vector.broadcast %cst_215 : f32 to vector<16x1xf32>
    %253 = arith.addf %249, %252 : vector<16x1xf32>
    %254 = math.rsqrt %253 : vector<16x1xf32>
    %255 = vector.broadcast %254 : vector<16x1xf32> to vector<16x32xf32>
    %256 = arith.mulf %251, %255 : vector<16x32xf32>
    %257 = vector.broadcast %236 : vector<1x32xf32> to vector<16x32xf32>
    %258 = arith.mulf %256, %257 : vector<16x32xf32>
    %259 = vector.broadcast %238 : vector<1x32xf32> to vector<16x32xf32>
    %260 = arith.addf %258, %259 : vector<16x32xf32>
    %cst_216 = arith.constant 0.000000e+00 : f32
    %261 = vector.broadcast %cst_216 : f32 to vector<16x32xf32>
    %c1_217 = arith.constant 1 : index
    %c0_218 = arith.constant 0 : index
    %c0_219 = arith.constant 0 : index
    %c0_220 = arith.constant 0 : index
    %262 = vector.load %arg15[%c1_217, %c0_218, %c0_219, %c0_220] : memref<2x4x32x8xf32, #tpu.memory_space<vmem>>, vector<1x1x32x8xf32>
    %263 = vector.shape_cast %262 : vector<1x1x32x8xf32> to vector<32x8xf32>
    %cst_221 = arith.constant dense<0.000000e+00> : vector<16x8xf32>
    %264 = tpu.matmul %260, %263, %cst_221 {dimension_numbers = #tpu.dot_dimension_numbers<[1], [0], [0], [1], [0, 0, 1, 1], [], []>} : vector<16x32xf32>, vector<32x8xf32>, vector<16x8xf32> -> vector<16x8xf32>
    %c1_222 = arith.constant 1 : index
    %c0_223 = arith.constant 0 : index
    %c0_224 = arith.constant 0 : index
    %c0_225 = arith.constant 0 : index
    %265 = vector.load %arg16[%c1_222, %c0_223, %c0_224, %c0_225] : memref<2x4x1x8xf32, #tpu.memory_space<vmem>>, vector<1x1x1x8xf32>
    %266 = vector.shape_cast %265 : vector<1x1x1x8xf32> to vector<1x8xf32>
    %267 = vector.broadcast %266 : vector<1x8xf32> to vector<16x8xf32>
    %268 = arith.addf %264, %267 : vector<16x8xf32>
    %c1_226 = arith.constant 1 : index
    %c0_227 = arith.constant 0 : index
    %c0_228 = arith.constant 0 : index
    %c0_229 = arith.constant 0 : index
    %269 = vector.load %arg17[%c1_226, %c0_227, %c0_228, %c0_229] : memref<2x4x32x8xf32, #tpu.memory_space<vmem>>, vector<1x1x32x8xf32>
    %270 = vector.shape_cast %269 : vector<1x1x32x8xf32> to vector<32x8xf32>
    %cst_230 = arith.constant dense<0.000000e+00> : vector<16x8xf32>
    %271 = tpu.matmul %260, %270, %cst_230 {dimension_numbers = #tpu.dot_dimension_numbers<[1], [0], [0], [1], [0, 0, 1, 1], [], []>} : vector<16x32xf32>, vector<32x8xf32>, vector<16x8xf32> -> vector<16x8xf32>
    %c1_231 = arith.constant 1 : index
    %c0_232 = arith.constant 0 : index
    %c0_233 = arith.constant 0 : index
    %c0_234 = arith.constant 0 : index
    %272 = vector.load %arg18[%c1_231, %c0_232, %c0_233, %c0_234] : memref<2x4x1x8xf32, #tpu.memory_space<vmem>>, vector<1x1x1x8xf32>
    %273 = vector.shape_cast %272 : vector<1x1x1x8xf32> to vector<1x8xf32>
    %274 = vector.broadcast %273 : vector<1x8xf32> to vector<16x8xf32>
    %275 = arith.addf %271, %274 : vector<16x8xf32>
    %c1_235 = arith.constant 1 : index
    %c0_236 = arith.constant 0 : index
    %c0_237 = arith.constant 0 : index
    %c0_238 = arith.constant 0 : index
    %276 = vector.load %arg19[%c1_235, %c0_236, %c0_237, %c0_238] : memref<2x4x32x8xf32, #tpu.memory_space<vmem>>, vector<1x1x32x8xf32>
    %277 = vector.shape_cast %276 : vector<1x1x32x8xf32> to vector<32x8xf32>
    %cst_239 = arith.constant dense<0.000000e+00> : vector<16x8xf32>
    %278 = tpu.matmul %260, %277, %cst_239 {dimension_numbers = #tpu.dot_dimension_numbers<[1], [0], [0], [1], [0, 0, 1, 1], [], []>} : vector<16x32xf32>, vector<32x8xf32>, vector<16x8xf32> -> vector<16x8xf32>
    %c1_240 = arith.constant 1 : index
    %c0_241 = arith.constant 0 : index
    %c0_242 = arith.constant 0 : index
    %c0_243 = arith.constant 0 : index
    %279 = vector.load %arg20[%c1_240, %c0_241, %c0_242, %c0_243] : memref<2x4x1x8xf32, #tpu.memory_space<vmem>>, vector<1x1x1x8xf32>
    %280 = vector.shape_cast %279 : vector<1x1x1x8xf32> to vector<1x8xf32>
    %281 = vector.broadcast %280 : vector<1x8xf32> to vector<16x8xf32>
    %282 = arith.addf %278, %281 : vector<16x8xf32>
    %cst_244 = arith.constant dense<0.000000e+00> : vector<16x16xf32>
    %283 = tpu.matmul %268, %275, %cst_244 {dimension_numbers = #tpu.dot_dimension_numbers<[1], [1], [0], [0], [0, 0, 1, 0], [], []>} : vector<16x8xf32>, vector<16x8xf32>, vector<16x16xf32> -> vector<16x16xf32>
    %284 = arith.addf %283, %33 : vector<16x16xf32>
    %cst_245 = arith.constant dense<0xFF800000> : vector<16xf32>
    %285 = vector.multi_reduction <maximumf>, %284, %cst_245 [1] : vector<16x16xf32> to vector<16xf32>
    %286 = vector.shape_cast %285 : vector<16xf32> to vector<16x1xf32>
    %287 = vector.broadcast %286 : vector<16x1xf32> to vector<16x16xf32>
    %288 = arith.subf %284, %287 : vector<16x16xf32>
    %289 = math.exp %288 : vector<16x16xf32>
    %cst_246 = arith.constant dense<0.000000e+00> : vector<16xf32>
    %290 = vector.multi_reduction <add>, %289, %cst_246 [1] : vector<16x16xf32> to vector<16xf32>
    %291 = vector.shape_cast %290 : vector<16xf32> to vector<16x1xf32>
    %292 = tpu.reciprocal %291 {approx = true} : vector<16x1xf32> -> vector<16x1xf32>
    %293 = vector.broadcast %292 : vector<16x1xf32> to vector<16x16xf32>
    %294 = arith.mulf %289, %293 : vector<16x16xf32>
    %cst_247 = arith.constant dense<0.000000e+00> : vector<16x8xf32>
    %295 = tpu.matmul %294, %282, %cst_247 {dimension_numbers = #tpu.dot_dimension_numbers<[1], [0], [0], [1], [0, 0, 1, 1], [], []>} : vector<16x16xf32>, vector<16x8xf32>, vector<16x8xf32> -> vector<16x8xf32>
    %c1_248 = arith.constant 1 : index
    %c0_249 = arith.constant 0 : index
    %c0_250 = arith.constant 0 : index
    %c0_251 = arith.constant 0 : index
    %296 = vector.load %arg21[%c1_248, %c0_249, %c0_250, %c0_251] : memref<2x4x8x32xf32, #tpu.memory_space<vmem>>, vector<1x1x8x32xf32>
    %297 = vector.shape_cast %296 : vector<1x1x8x32xf32> to vector<8x32xf32>
    %cst_252 = arith.constant dense<0.000000e+00> : vector<16x32xf32>
    %298 = tpu.matmul %295, %297, %cst_252 {dimension_numbers = #tpu.dot_dimension_numbers<[1], [0], [0], [1], [0, 0, 1, 1], [], []>} : vector<16x8xf32>, vector<8x32xf32>, vector<16x32xf32> -> vector<16x32xf32>
    %299 = arith.addf %261, %298 : vector<16x32xf32>
    %c1_253 = arith.constant 1 : index
    %c1_254 = arith.constant 1 : index
    %c0_255 = arith.constant 0 : index
    %c0_256 = arith.constant 0 : index
    %300 = vector.load %arg15[%c1_253, %c1_254, %c0_255, %c0_256] : memref<2x4x32x8xf32, #tpu.memory_space<vmem>>, vector<1x1x32x8xf32>
    %301 = vector.shape_cast %300 : vector<1x1x32x8xf32> to vector<32x8xf32>
    %cst_257 = arith.constant dense<0.000000e+00> : vector<16x8xf32>
    %302 = tpu.matmul %260, %301, %cst_257 {dimension_numbers = #tpu.dot_dimension_numbers<[1], [0], [0], [1], [0, 0, 1, 1], [], []>} : vector<16x32xf32>, vector<32x8xf32>, vector<16x8xf32> -> vector<16x8xf32>
    %c1_258 = arith.constant 1 : index
    %c1_259 = arith.constant 1 : index
    %c0_260 = arith.constant 0 : index
    %c0_261 = arith.constant 0 : index
    %303 = vector.load %arg16[%c1_258, %c1_259, %c0_260, %c0_261] : memref<2x4x1x8xf32, #tpu.memory_space<vmem>>, vector<1x1x1x8xf32>
    %304 = vector.shape_cast %303 : vector<1x1x1x8xf32> to vector<1x8xf32>
    %305 = vector.broadcast %304 : vector<1x8xf32> to vector<16x8xf32>
    %306 = arith.addf %302, %305 : vector<16x8xf32>
    %c1_262 = arith.constant 1 : index
    %c1_263 = arith.constant 1 : index
    %c0_264 = arith.constant 0 : index
    %c0_265 = arith.constant 0 : index
    %307 = vector.load %arg17[%c1_262, %c1_263, %c0_264, %c0_265] : memref<2x4x32x8xf32, #tpu.memory_space<vmem>>, vector<1x1x32x8xf32>
    %308 = vector.shape_cast %307 : vector<1x1x32x8xf32> to vector<32x8xf32>
    %cst_266 = arith.constant dense<0.000000e+00> : vector<16x8xf32>
    %309 = tpu.matmul %260, %308, %cst_266 {dimension_numbers = #tpu.dot_dimension_numbers<[1], [0], [0], [1], [0, 0, 1, 1], [], []>} : vector<16x32xf32>, vector<32x8xf32>, vector<16x8xf32> -> vector<16x8xf32>
    %c1_267 = arith.constant 1 : index
    %c1_268 = arith.constant 1 : index
    %c0_269 = arith.constant 0 : index
    %c0_270 = arith.constant 0 : index
    %310 = vector.load %arg18[%c1_267, %c1_268, %c0_269, %c0_270] : memref<2x4x1x8xf32, #tpu.memory_space<vmem>>, vector<1x1x1x8xf32>
    %311 = vector.shape_cast %310 : vector<1x1x1x8xf32> to vector<1x8xf32>
    %312 = vector.broadcast %311 : vector<1x8xf32> to vector<16x8xf32>
    %313 = arith.addf %309, %312 : vector<16x8xf32>
    %c1_271 = arith.constant 1 : index
    %c1_272 = arith.constant 1 : index
    %c0_273 = arith.constant 0 : index
    %c0_274 = arith.constant 0 : index
    %314 = vector.load %arg19[%c1_271, %c1_272, %c0_273, %c0_274] : memref<2x4x32x8xf32, #tpu.memory_space<vmem>>, vector<1x1x32x8xf32>
    %315 = vector.shape_cast %314 : vector<1x1x32x8xf32> to vector<32x8xf32>
    %cst_275 = arith.constant dense<0.000000e+00> : vector<16x8xf32>
    %316 = tpu.matmul %260, %315, %cst_275 {dimension_numbers = #tpu.dot_dimension_numbers<[1], [0], [0], [1], [0, 0, 1, 1], [], []>} : vector<16x32xf32>, vector<32x8xf32>, vector<16x8xf32> -> vector<16x8xf32>
    %c1_276 = arith.constant 1 : index
    %c1_277 = arith.constant 1 : index
    %c0_278 = arith.constant 0 : index
    %c0_279 = arith.constant 0 : index
    %317 = vector.load %arg20[%c1_276, %c1_277, %c0_278, %c0_279] : memref<2x4x1x8xf32, #tpu.memory_space<vmem>>, vector<1x1x1x8xf32>
    %318 = vector.shape_cast %317 : vector<1x1x1x8xf32> to vector<1x8xf32>
    %319 = vector.broadcast %318 : vector<1x8xf32> to vector<16x8xf32>
    %320 = arith.addf %316, %319 : vector<16x8xf32>
    %cst_280 = arith.constant dense<0.000000e+00> : vector<16x16xf32>
    %321 = tpu.matmul %306, %313, %cst_280 {dimension_numbers = #tpu.dot_dimension_numbers<[1], [1], [0], [0], [0, 0, 1, 0], [], []>} : vector<16x8xf32>, vector<16x8xf32>, vector<16x16xf32> -> vector<16x16xf32>
    %322 = arith.addf %321, %33 : vector<16x16xf32>
    %cst_281 = arith.constant dense<0xFF800000> : vector<16xf32>
    %323 = vector.multi_reduction <maximumf>, %322, %cst_281 [1] : vector<16x16xf32> to vector<16xf32>
    %324 = vector.shape_cast %323 : vector<16xf32> to vector<16x1xf32>
    %325 = vector.broadcast %324 : vector<16x1xf32> to vector<16x16xf32>
    %326 = arith.subf %322, %325 : vector<16x16xf32>
    %327 = math.exp %326 : vector<16x16xf32>
    %cst_282 = arith.constant dense<0.000000e+00> : vector<16xf32>
    %328 = vector.multi_reduction <add>, %327, %cst_282 [1] : vector<16x16xf32> to vector<16xf32>
    %329 = vector.shape_cast %328 : vector<16xf32> to vector<16x1xf32>
    %330 = tpu.reciprocal %329 {approx = true} : vector<16x1xf32> -> vector<16x1xf32>
    %331 = vector.broadcast %330 : vector<16x1xf32> to vector<16x16xf32>
    %332 = arith.mulf %327, %331 : vector<16x16xf32>
    %cst_283 = arith.constant dense<0.000000e+00> : vector<16x8xf32>
    %333 = tpu.matmul %332, %320, %cst_283 {dimension_numbers = #tpu.dot_dimension_numbers<[1], [0], [0], [1], [0, 0, 1, 1], [], []>} : vector<16x16xf32>, vector<16x8xf32>, vector<16x8xf32> -> vector<16x8xf32>
    %c1_284 = arith.constant 1 : index
    %c1_285 = arith.constant 1 : index
    %c0_286 = arith.constant 0 : index
    %c0_287 = arith.constant 0 : index
    %334 = vector.load %arg21[%c1_284, %c1_285, %c0_286, %c0_287] : memref<2x4x8x32xf32, #tpu.memory_space<vmem>>, vector<1x1x8x32xf32>
    %335 = vector.shape_cast %334 : vector<1x1x8x32xf32> to vector<8x32xf32>
    %cst_288 = arith.constant dense<0.000000e+00> : vector<16x32xf32>
    %336 = tpu.matmul %333, %335, %cst_288 {dimension_numbers = #tpu.dot_dimension_numbers<[1], [0], [0], [1], [0, 0, 1, 1], [], []>} : vector<16x8xf32>, vector<8x32xf32>, vector<16x32xf32> -> vector<16x32xf32>
    %337 = arith.addf %299, %336 : vector<16x32xf32>
    %c1_289 = arith.constant 1 : index
    %c2_290 = arith.constant 2 : index
    %c0_291 = arith.constant 0 : index
    %c0_292 = arith.constant 0 : index
    %338 = vector.load %arg15[%c1_289, %c2_290, %c0_291, %c0_292] : memref<2x4x32x8xf32, #tpu.memory_space<vmem>>, vector<1x1x32x8xf32>
    %339 = vector.shape_cast %338 : vector<1x1x32x8xf32> to vector<32x8xf32>
    %cst_293 = arith.constant dense<0.000000e+00> : vector<16x8xf32>
    %340 = tpu.matmul %260, %339, %cst_293 {dimension_numbers = #tpu.dot_dimension_numbers<[1], [0], [0], [1], [0, 0, 1, 1], [], []>} : vector<16x32xf32>, vector<32x8xf32>, vector<16x8xf32> -> vector<16x8xf32>
    %c1_294 = arith.constant 1 : index
    %c2_295 = arith.constant 2 : index
    %c0_296 = arith.constant 0 : index
    %c0_297 = arith.constant 0 : index
    %341 = vector.load %arg16[%c1_294, %c2_295, %c0_296, %c0_297] : memref<2x4x1x8xf32, #tpu.memory_space<vmem>>, vector<1x1x1x8xf32>
    %342 = vector.shape_cast %341 : vector<1x1x1x8xf32> to vector<1x8xf32>
    %343 = vector.broadcast %342 : vector<1x8xf32> to vector<16x8xf32>
    %344 = arith.addf %340, %343 : vector<16x8xf32>
    %c1_298 = arith.constant 1 : index
    %c2_299 = arith.constant 2 : index
    %c0_300 = arith.constant 0 : index
    %c0_301 = arith.constant 0 : index
    %345 = vector.load %arg17[%c1_298, %c2_299, %c0_300, %c0_301] : memref<2x4x32x8xf32, #tpu.memory_space<vmem>>, vector<1x1x32x8xf32>
    %346 = vector.shape_cast %345 : vector<1x1x32x8xf32> to vector<32x8xf32>
    %cst_302 = arith.constant dense<0.000000e+00> : vector<16x8xf32>
    %347 = tpu.matmul %260, %346, %cst_302 {dimension_numbers = #tpu.dot_dimension_numbers<[1], [0], [0], [1], [0, 0, 1, 1], [], []>} : vector<16x32xf32>, vector<32x8xf32>, vector<16x8xf32> -> vector<16x8xf32>
    %c1_303 = arith.constant 1 : index
    %c2_304 = arith.constant 2 : index
    %c0_305 = arith.constant 0 : index
    %c0_306 = arith.constant 0 : index
    %348 = vector.load %arg18[%c1_303, %c2_304, %c0_305, %c0_306] : memref<2x4x1x8xf32, #tpu.memory_space<vmem>>, vector<1x1x1x8xf32>
    %349 = vector.shape_cast %348 : vector<1x1x1x8xf32> to vector<1x8xf32>
    %350 = vector.broadcast %349 : vector<1x8xf32> to vector<16x8xf32>
    %351 = arith.addf %347, %350 : vector<16x8xf32>
    %c1_307 = arith.constant 1 : index
    %c2_308 = arith.constant 2 : index
    %c0_309 = arith.constant 0 : index
    %c0_310 = arith.constant 0 : index
    %352 = vector.load %arg19[%c1_307, %c2_308, %c0_309, %c0_310] : memref<2x4x32x8xf32, #tpu.memory_space<vmem>>, vector<1x1x32x8xf32>
    %353 = vector.shape_cast %352 : vector<1x1x32x8xf32> to vector<32x8xf32>
    %cst_311 = arith.constant dense<0.000000e+00> : vector<16x8xf32>
    %354 = tpu.matmul %260, %353, %cst_311 {dimension_numbers = #tpu.dot_dimension_numbers<[1], [0], [0], [1], [0, 0, 1, 1], [], []>} : vector<16x32xf32>, vector<32x8xf32>, vector<16x8xf32> -> vector<16x8xf32>
    %c1_312 = arith.constant 1 : index
    %c2_313 = arith.constant 2 : index
    %c0_314 = arith.constant 0 : index
    %c0_315 = arith.constant 0 : index
    %355 = vector.load %arg20[%c1_312, %c2_313, %c0_314, %c0_315] : memref<2x4x1x8xf32, #tpu.memory_space<vmem>>, vector<1x1x1x8xf32>
    %356 = vector.shape_cast %355 : vector<1x1x1x8xf32> to vector<1x8xf32>
    %357 = vector.broadcast %356 : vector<1x8xf32> to vector<16x8xf32>
    %358 = arith.addf %354, %357 : vector<16x8xf32>
    %cst_316 = arith.constant dense<0.000000e+00> : vector<16x16xf32>
    %359 = tpu.matmul %344, %351, %cst_316 {dimension_numbers = #tpu.dot_dimension_numbers<[1], [1], [0], [0], [0, 0, 1, 0], [], []>} : vector<16x8xf32>, vector<16x8xf32>, vector<16x16xf32> -> vector<16x16xf32>
    %360 = arith.addf %359, %33 : vector<16x16xf32>
    %cst_317 = arith.constant dense<0xFF800000> : vector<16xf32>
    %361 = vector.multi_reduction <maximumf>, %360, %cst_317 [1] : vector<16x16xf32> to vector<16xf32>
    %362 = vector.shape_cast %361 : vector<16xf32> to vector<16x1xf32>
    %363 = vector.broadcast %362 : vector<16x1xf32> to vector<16x16xf32>
    %364 = arith.subf %360, %363 : vector<16x16xf32>
    %365 = math.exp %364 : vector<16x16xf32>
    %cst_318 = arith.constant dense<0.000000e+00> : vector<16xf32>
    %366 = vector.multi_reduction <add>, %365, %cst_318 [1] : vector<16x16xf32> to vector<16xf32>
    %367 = vector.shape_cast %366 : vector<16xf32> to vector<16x1xf32>
    %368 = tpu.reciprocal %367 {approx = true} : vector<16x1xf32> -> vector<16x1xf32>
    %369 = vector.broadcast %368 : vector<16x1xf32> to vector<16x16xf32>
    %370 = arith.mulf %365, %369 : vector<16x16xf32>
    %cst_319 = arith.constant dense<0.000000e+00> : vector<16x8xf32>
    %371 = tpu.matmul %370, %358, %cst_319 {dimension_numbers = #tpu.dot_dimension_numbers<[1], [0], [0], [1], [0, 0, 1, 1], [], []>} : vector<16x16xf32>, vector<16x8xf32>, vector<16x8xf32> -> vector<16x8xf32>
    %c1_320 = arith.constant 1 : index
    %c2_321 = arith.constant 2 : index
    %c0_322 = arith.constant 0 : index
    %c0_323 = arith.constant 0 : index
    %372 = vector.load %arg21[%c1_320, %c2_321, %c0_322, %c0_323] : memref<2x4x8x32xf32, #tpu.memory_space<vmem>>, vector<1x1x8x32xf32>
    %373 = vector.shape_cast %372 : vector<1x1x8x32xf32> to vector<8x32xf32>
    %cst_324 = arith.constant dense<0.000000e+00> : vector<16x32xf32>
    %374 = tpu.matmul %371, %373, %cst_324 {dimension_numbers = #tpu.dot_dimension_numbers<[1], [0], [0], [1], [0, 0, 1, 1], [], []>} : vector<16x8xf32>, vector<8x32xf32>, vector<16x32xf32> -> vector<16x32xf32>
    %375 = arith.addf %337, %374 : vector<16x32xf32>
    %c1_325 = arith.constant 1 : index
    %c3_326 = arith.constant 3 : index
    %c0_327 = arith.constant 0 : index
    %c0_328 = arith.constant 0 : index
    %376 = vector.load %arg15[%c1_325, %c3_326, %c0_327, %c0_328] : memref<2x4x32x8xf32, #tpu.memory_space<vmem>>, vector<1x1x32x8xf32>
    %377 = vector.shape_cast %376 : vector<1x1x32x8xf32> to vector<32x8xf32>
    %cst_329 = arith.constant dense<0.000000e+00> : vector<16x8xf32>
    %378 = tpu.matmul %260, %377, %cst_329 {dimension_numbers = #tpu.dot_dimension_numbers<[1], [0], [0], [1], [0, 0, 1, 1], [], []>} : vector<16x32xf32>, vector<32x8xf32>, vector<16x8xf32> -> vector<16x8xf32>
    %c1_330 = arith.constant 1 : index
    %c3_331 = arith.constant 3 : index
    %c0_332 = arith.constant 0 : index
    %c0_333 = arith.constant 0 : index
    %379 = vector.load %arg16[%c1_330, %c3_331, %c0_332, %c0_333] : memref<2x4x1x8xf32, #tpu.memory_space<vmem>>, vector<1x1x1x8xf32>
    %380 = vector.shape_cast %379 : vector<1x1x1x8xf32> to vector<1x8xf32>
    %381 = vector.broadcast %380 : vector<1x8xf32> to vector<16x8xf32>
    %382 = arith.addf %378, %381 : vector<16x8xf32>
    %c1_334 = arith.constant 1 : index
    %c3_335 = arith.constant 3 : index
    %c0_336 = arith.constant 0 : index
    %c0_337 = arith.constant 0 : index
    %383 = vector.load %arg17[%c1_334, %c3_335, %c0_336, %c0_337] : memref<2x4x32x8xf32, #tpu.memory_space<vmem>>, vector<1x1x32x8xf32>
    %384 = vector.shape_cast %383 : vector<1x1x32x8xf32> to vector<32x8xf32>
    %cst_338 = arith.constant dense<0.000000e+00> : vector<16x8xf32>
    %385 = tpu.matmul %260, %384, %cst_338 {dimension_numbers = #tpu.dot_dimension_numbers<[1], [0], [0], [1], [0, 0, 1, 1], [], []>} : vector<16x32xf32>, vector<32x8xf32>, vector<16x8xf32> -> vector<16x8xf32>
    %c1_339 = arith.constant 1 : index
    %c3_340 = arith.constant 3 : index
    %c0_341 = arith.constant 0 : index
    %c0_342 = arith.constant 0 : index
    %386 = vector.load %arg18[%c1_339, %c3_340, %c0_341, %c0_342] : memref<2x4x1x8xf32, #tpu.memory_space<vmem>>, vector<1x1x1x8xf32>
    %387 = vector.shape_cast %386 : vector<1x1x1x8xf32> to vector<1x8xf32>
    %388 = vector.broadcast %387 : vector<1x8xf32> to vector<16x8xf32>
    %389 = arith.addf %385, %388 : vector<16x8xf32>
    %c1_343 = arith.constant 1 : index
    %c3_344 = arith.constant 3 : index
    %c0_345 = arith.constant 0 : index
    %c0_346 = arith.constant 0 : index
    %390 = vector.load %arg19[%c1_343, %c3_344, %c0_345, %c0_346] : memref<2x4x32x8xf32, #tpu.memory_space<vmem>>, vector<1x1x32x8xf32>
    %391 = vector.shape_cast %390 : vector<1x1x32x8xf32> to vector<32x8xf32>
    %cst_347 = arith.constant dense<0.000000e+00> : vector<16x8xf32>
    %392 = tpu.matmul %260, %391, %cst_347 {dimension_numbers = #tpu.dot_dimension_numbers<[1], [0], [0], [1], [0, 0, 1, 1], [], []>} : vector<16x32xf32>, vector<32x8xf32>, vector<16x8xf32> -> vector<16x8xf32>
    %c1_348 = arith.constant 1 : index
    %c3_349 = arith.constant 3 : index
    %c0_350 = arith.constant 0 : index
    %c0_351 = arith.constant 0 : index
    %393 = vector.load %arg20[%c1_348, %c3_349, %c0_350, %c0_351] : memref<2x4x1x8xf32, #tpu.memory_space<vmem>>, vector<1x1x1x8xf32>
    %394 = vector.shape_cast %393 : vector<1x1x1x8xf32> to vector<1x8xf32>
    %395 = vector.broadcast %394 : vector<1x8xf32> to vector<16x8xf32>
    %396 = arith.addf %392, %395 : vector<16x8xf32>
    %cst_352 = arith.constant dense<0.000000e+00> : vector<16x16xf32>
    %397 = tpu.matmul %382, %389, %cst_352 {dimension_numbers = #tpu.dot_dimension_numbers<[1], [1], [0], [0], [0, 0, 1, 0], [], []>} : vector<16x8xf32>, vector<16x8xf32>, vector<16x16xf32> -> vector<16x16xf32>
    %398 = arith.addf %397, %33 : vector<16x16xf32>
    %cst_353 = arith.constant dense<0xFF800000> : vector<16xf32>
    %399 = vector.multi_reduction <maximumf>, %398, %cst_353 [1] : vector<16x16xf32> to vector<16xf32>
    %400 = vector.shape_cast %399 : vector<16xf32> to vector<16x1xf32>
    %401 = vector.broadcast %400 : vector<16x1xf32> to vector<16x16xf32>
    %402 = arith.subf %398, %401 : vector<16x16xf32>
    %403 = math.exp %402 : vector<16x16xf32>
    %cst_354 = arith.constant dense<0.000000e+00> : vector<16xf32>
    %404 = vector.multi_reduction <add>, %403, %cst_354 [1] : vector<16x16xf32> to vector<16xf32>
    %405 = vector.shape_cast %404 : vector<16xf32> to vector<16x1xf32>
    %406 = tpu.reciprocal %405 {approx = true} : vector<16x1xf32> -> vector<16x1xf32>
    %407 = vector.broadcast %406 : vector<16x1xf32> to vector<16x16xf32>
    %408 = arith.mulf %403, %407 : vector<16x16xf32>
    %cst_355 = arith.constant dense<0.000000e+00> : vector<16x8xf32>
    %409 = tpu.matmul %408, %396, %cst_355 {dimension_numbers = #tpu.dot_dimension_numbers<[1], [0], [0], [1], [0, 0, 1, 1], [], []>} : vector<16x16xf32>, vector<16x8xf32>, vector<16x8xf32> -> vector<16x8xf32>
    %c1_356 = arith.constant 1 : index
    %c3_357 = arith.constant 3 : index
    %c0_358 = arith.constant 0 : index
    %c0_359 = arith.constant 0 : index
    %410 = vector.load %arg21[%c1_356, %c3_357, %c0_358, %c0_359] : memref<2x4x8x32xf32, #tpu.memory_space<vmem>>, vector<1x1x8x32xf32>
    %411 = vector.shape_cast %410 : vector<1x1x8x32xf32> to vector<8x32xf32>
    %cst_360 = arith.constant dense<0.000000e+00> : vector<16x32xf32>
    %412 = tpu.matmul %409, %411, %cst_360 {dimension_numbers = #tpu.dot_dimension_numbers<[1], [0], [0], [1], [0, 0, 1, 1], [], []>} : vector<16x8xf32>, vector<8x32xf32>, vector<16x32xf32> -> vector<16x32xf32>
    %413 = arith.addf %375, %412 : vector<16x32xf32>
    %c1_361 = arith.constant 1 : index
    %c0_362 = arith.constant 0 : index
    %c0_363 = arith.constant 0 : index
    %414 = vector.load %arg22[%c1_361, %c0_362, %c0_363] : memref<2x1x32xf32, #tpu.memory_space<vmem>>, vector<1x1x32xf32>
    %415 = vector.shape_cast %414 : vector<1x1x32xf32> to vector<1x32xf32>
    %416 = vector.broadcast %415 : vector<1x32xf32> to vector<16x32xf32>
    %417 = arith.addf %413, %416 : vector<16x32xf32>
    %418 = arith.addf %260, %417 : vector<16x32xf32>
    %c1_364 = arith.constant 1 : index
    %c0_365 = arith.constant 0 : index
    %c0_366 = arith.constant 0 : index
    %419 = vector.load %arg27[%c1_364, %c0_365, %c0_366] : memref<2x1x32xf32, #tpu.memory_space<vmem>>, vector<1x1x32xf32>
    %420 = vector.shape_cast %419 : vector<1x1x32xf32> to vector<1x32xf32>
    %c1_367 = arith.constant 1 : index
    %c0_368 = arith.constant 0 : index
    %c0_369 = arith.constant 0 : index
    %421 = vector.load %arg28[%c1_367, %c0_368, %c0_369] : memref<2x1x32xf32, #tpu.memory_space<vmem>>, vector<1x1x32xf32>
    %422 = vector.shape_cast %421 : vector<1x1x32xf32> to vector<1x32xf32>
    %cst_370 = arith.constant dense<0.000000e+00> : vector<16xf32>
    %423 = vector.multi_reduction <add>, %418, %cst_370 [1] : vector<16x32xf32> to vector<16xf32>
    %424 = vector.shape_cast %423 : vector<16xf32> to vector<16x1xf32>
    %cst_371 = arith.constant 3.200000e+01 : f32
    %425 = vector.broadcast %cst_371 : f32 to vector<16x1xf32>
    %426 = arith.divf %424, %425 : vector<16x1xf32>
    %427 = vector.broadcast %426 : vector<16x1xf32> to vector<16x32xf32>
    %428 = arith.subf %418, %427 : vector<16x32xf32>
    %429 = arith.mulf %428, %428 : vector<16x32xf32>
    %cst_372 = arith.constant dense<0.000000e+00> : vector<16xf32>
    %430 = vector.multi_reduction <add>, %429, %cst_372 [1] : vector<16x32xf32> to vector<16xf32>
    %431 = vector.shape_cast %430 : vector<16xf32> to vector<16x1xf32>
    %cst_373 = arith.constant 3.200000e+01 : f32
    %432 = vector.broadcast %cst_373 : f32 to vector<16x1xf32>
    %433 = arith.divf %431, %432 : vector<16x1xf32>
    %434 = vector.broadcast %426 : vector<16x1xf32> to vector<16x32xf32>
    %435 = arith.subf %418, %434 : vector<16x32xf32>
    %cst_374 = arith.constant 9.99999974E-6 : f32
    %436 = vector.broadcast %cst_374 : f32 to vector<16x1xf32>
    %437 = arith.addf %433, %436 : vector<16x1xf32>
    %438 = math.rsqrt %437 : vector<16x1xf32>
    %439 = vector.broadcast %438 : vector<16x1xf32> to vector<16x32xf32>
    %440 = arith.mulf %435, %439 : vector<16x32xf32>
    %441 = vector.broadcast %420 : vector<1x32xf32> to vector<16x32xf32>
    %442 = arith.mulf %440, %441 : vector<16x32xf32>
    %443 = vector.broadcast %422 : vector<1x32xf32> to vector<16x32xf32>
    %444 = arith.addf %442, %443 : vector<16x32xf32>
    %c1_375 = arith.constant 1 : index
    %c0_376 = arith.constant 0 : index
    %c0_377 = arith.constant 0 : index
    %445 = vector.load %arg23[%c1_375, %c0_376, %c0_377] : memref<2x32x64xf32, #tpu.memory_space<vmem>>, vector<1x32x64xf32>
    %446 = vector.shape_cast %445 : vector<1x32x64xf32> to vector<32x64xf32>
    %cst_378 = arith.constant dense<0.000000e+00> : vector<16x64xf32>
    %447 = tpu.matmul %444, %446, %cst_378 {dimension_numbers = #tpu.dot_dimension_numbers<[1], [0], [0], [1], [0, 0, 1, 1], [], []>} : vector<16x32xf32>, vector<32x64xf32>, vector<16x64xf32> -> vector<16x64xf32>
    %c1_379 = arith.constant 1 : index
    %c0_380 = arith.constant 0 : index
    %c0_381 = arith.constant 0 : index
    %448 = vector.load %arg24[%c1_379, %c0_380, %c0_381] : memref<2x1x64xf32, #tpu.memory_space<vmem>>, vector<1x1x64xf32>
    %449 = vector.shape_cast %448 : vector<1x1x64xf32> to vector<1x64xf32>
    %450 = vector.broadcast %449 : vector<1x64xf32> to vector<16x64xf32>
    %451 = arith.addf %447, %450 : vector<16x64xf32>
    %cst_382 = arith.constant 0.000000e+00 : f32
    %452 = vector.broadcast %cst_382 : f32 to vector<16x64xf32>
    %453 = arith.maximumf %451, %452 : vector<16x64xf32>
    %c1_383 = arith.constant 1 : index
    %c0_384 = arith.constant 0 : index
    %c0_385 = arith.constant 0 : index
    %454 = vector.load %arg25[%c1_383, %c0_384, %c0_385] : memref<2x64x32xf32, #tpu.memory_space<vmem>>, vector<1x64x32xf32>
    %455 = vector.shape_cast %454 : vector<1x64x32xf32> to vector<64x32xf32>
    %cst_386 = arith.constant dense<0.000000e+00> : vector<16x32xf32>
    %456 = tpu.matmul %453, %455, %cst_386 {dimension_numbers = #tpu.dot_dimension_numbers<[1], [0], [0], [1], [0, 0, 1, 1], [], []>} : vector<16x64xf32>, vector<64x32xf32>, vector<16x32xf32> -> vector<16x32xf32>
    %c1_387 = arith.constant 1 : index
    %c0_388 = arith.constant 0 : index
    %c0_389 = arith.constant 0 : index
    %457 = vector.load %arg26[%c1_387, %c0_388, %c0_389] : memref<2x1x32xf32, #tpu.memory_space<vmem>>, vector<1x1x32xf32>
    %458 = vector.shape_cast %457 : vector<1x1x32xf32> to vector<1x32xf32>
    %459 = vector.broadcast %458 : vector<1x32xf32> to vector<16x32xf32>
    %460 = arith.addf %456, %459 : vector<16x32xf32>
    %461 = arith.addf %444, %460 : vector<16x32xf32>
    %c1_390 = arith.constant 1 : index
    %c0_391 = arith.constant 0 : index
    %c0_392 = arith.constant 0 : index
    %462 = vector.load %arg29[%c1_390, %c0_391, %c0_392] : memref<2x1x32xf32, #tpu.memory_space<vmem>>, vector<1x1x32xf32>
    %463 = vector.shape_cast %462 : vector<1x1x32xf32> to vector<1x32xf32>
    %c1_393 = arith.constant 1 : index
    %c0_394 = arith.constant 0 : index
    %c0_395 = arith.constant 0 : index
    %464 = vector.load %arg30[%c1_393, %c0_394, %c0_395] : memref<2x1x32xf32, #tpu.memory_space<vmem>>, vector<1x1x32xf32>
    %465 = vector.shape_cast %464 : vector<1x1x32xf32> to vector<1x32xf32>
    %cst_396 = arith.constant dense<0.000000e+00> : vector<16xf32>
    %466 = vector.multi_reduction <add>, %461, %cst_396 [1] : vector<16x32xf32> to vector<16xf32>
    %467 = vector.shape_cast %466 : vector<16xf32> to vector<16x1xf32>
    %cst_397 = arith.constant 3.200000e+01 : f32
    %468 = vector.broadcast %cst_397 : f32 to vector<16x1xf32>
    %469 = arith.divf %467, %468 : vector<16x1xf32>
    %470 = vector.broadcast %469 : vector<16x1xf32> to vector<16x32xf32>
    %471 = arith.subf %461, %470 : vector<16x32xf32>
    %472 = arith.mulf %471, %471 : vector<16x32xf32>
    %cst_398 = arith.constant dense<0.000000e+00> : vector<16xf32>
    %473 = vector.multi_reduction <add>, %472, %cst_398 [1] : vector<16x32xf32> to vector<16xf32>
    %474 = vector.shape_cast %473 : vector<16xf32> to vector<16x1xf32>
    %cst_399 = arith.constant 3.200000e+01 : f32
    %475 = vector.broadcast %cst_399 : f32 to vector<16x1xf32>
    %476 = arith.divf %474, %475 : vector<16x1xf32>
    %477 = vector.broadcast %469 : vector<16x1xf32> to vector<16x32xf32>
    %478 = arith.subf %461, %477 : vector<16x32xf32>
    %cst_400 = arith.constant 9.99999974E-6 : f32
    %479 = vector.broadcast %cst_400 : f32 to vector<16x1xf32>
    %480 = arith.addf %476, %479 : vector<16x1xf32>
    %481 = math.rsqrt %480 : vector<16x1xf32>
    %482 = vector.broadcast %481 : vector<16x1xf32> to vector<16x32xf32>
    %483 = arith.mulf %478, %482 : vector<16x32xf32>
    %484 = vector.broadcast %463 : vector<1x32xf32> to vector<16x32xf32>
    %485 = arith.mulf %483, %484 : vector<16x32xf32>
    %486 = vector.broadcast %465 : vector<1x32xf32> to vector<16x32xf32>
    %487 = arith.addf %485, %486 : vector<16x32xf32>
    %c0_401 = arith.constant 0 : index
    %c0_402 = arith.constant 0 : index
    %488 = vector.load %arg7[%c0_401, %c0_402] : memref<2x16xf32, #tpu.memory_space<vmem>>, vector<2x16xf32>
    %cst_403 = arith.constant dense<0.000000e+00> : vector<2x32xf32>
    %489 = tpu.matmul %488, %487, %cst_403 {dimension_numbers = #tpu.dot_dimension_numbers<[1], [0], [0], [1], [0, 0, 1, 1], [], []>} : vector<2x16xf32>, vector<16x32xf32>, vector<2x32xf32> -> vector<2x32xf32>
    %c0_404 = arith.constant 0 : index
    %c0_405 = arith.constant 0 : index
    %490 = vector.load %arg31[%c0_404, %c0_405] : memref<32x32xf32, #tpu.memory_space<vmem>>, vector<32x32xf32>
    %c0_406 = arith.constant 0 : index
    %c0_407 = arith.constant 0 : index
    %491 = vector.load %arg32[%c0_406, %c0_407] : memref<1x32xf32, #tpu.memory_space<vmem>>, vector<1x32xf32>
    %c0_408 = arith.constant 0 : index
    %c0_409 = arith.constant 0 : index
    %492 = vector.load %arg33[%c0_408, %c0_409] : memref<32x32xf32, #tpu.memory_space<vmem>>, vector<32x32xf32>
    %c0_410 = arith.constant 0 : index
    %c0_411 = arith.constant 0 : index
    %493 = vector.load %arg34[%c0_410, %c0_411] : memref<1x32xf32, #tpu.memory_space<vmem>>, vector<1x32xf32>
    %c0_412 = arith.constant 0 : index
    %c0_413 = arith.constant 0 : index
    %494 = vector.load %arg35[%c0_412, %c0_413] : memref<32x32xf32, #tpu.memory_space<vmem>>, vector<32x32xf32>
    %c0_414 = arith.constant 0 : index
    %c0_415 = arith.constant 0 : index
    %495 = vector.load %arg36[%c0_414, %c0_415] : memref<1x32xf32, #tpu.memory_space<vmem>>, vector<1x32xf32>
    %cst_416 = arith.constant dense<0.000000e+00> : vector<2x32xf32>
    %496 = tpu.matmul %489, %490, %cst_416 {dimension_numbers = #tpu.dot_dimension_numbers<[1], [0], [0], [1], [0, 0, 1, 1], [], []>} : vector<2x32xf32>, vector<32x32xf32>, vector<2x32xf32> -> vector<2x32xf32>
    %497 = vector.broadcast %491 : vector<1x32xf32> to vector<2x32xf32>
    %498 = arith.addf %496, %497 : vector<2x32xf32>
    %cst_417 = arith.constant 0.000000e+00 : f32
    %499 = vector.broadcast %cst_417 : f32 to vector<2x32xf32>
    %500 = arith.maximumf %498, %499 : vector<2x32xf32>
    %cst_418 = arith.constant dense<0.000000e+00> : vector<2x32xf32>
    %501 = tpu.matmul %500, %492, %cst_418 {dimension_numbers = #tpu.dot_dimension_numbers<[1], [0], [0], [1], [0, 0, 1, 1], [], []>} : vector<2x32xf32>, vector<32x32xf32>, vector<2x32xf32> -> vector<2x32xf32>
    %502 = vector.broadcast %493 : vector<1x32xf32> to vector<2x32xf32>
    %503 = arith.addf %501, %502 : vector<2x32xf32>
    %cst_419 = arith.constant 0.000000e+00 : f32
    %504 = vector.broadcast %cst_419 : f32 to vector<2x32xf32>
    %505 = arith.maximumf %503, %504 : vector<2x32xf32>
    %cst_420 = arith.constant dense<0.000000e+00> : vector<2x32xf32>
    %506 = tpu.matmul %505, %494, %cst_420 {dimension_numbers = #tpu.dot_dimension_numbers<[1], [0], [0], [1], [0, 0, 1, 1], [], []>} : vector<2x32xf32>, vector<32x32xf32>, vector<2x32xf32> -> vector<2x32xf32>
    %507 = vector.broadcast %495 : vector<1x32xf32> to vector<2x32xf32>
    %508 = arith.addf %506, %507 : vector<2x32xf32>
    %c0_421 = arith.constant 0 : index
    %c0_422 = arith.constant 0 : index
    %509 = vector.load %arg37[%c0_421, %c0_422] : memref<2x32xf32, #tpu.memory_space<vmem>>, vector<2x32xf32>
    tpu.vector_store %arg37[%c0_421, %c0_422], %508 {strides = array<i32>} : memref<2x32xf32, #tpu.memory_space<vmem>>, vector<2x32xf32>,
    return
  }
}

</mosaic_0001>

<bundles_post_ra>
// kernel: forward.1
= control target key start
LH: loop header
LB: loop body
LE: loop exit
PB: predicated region body
PF: predicated region fallthrough
CT: control target
= control target key end

     0   :  { %s7314_s6 = smov 1   ;;  %s7315_s10 = smov 2   ;;  %s8109_s0 = inlined_call_operand.smem [shape: u32[38], index: -1, kind: input, shape index: {}] }
   0x1   :  { %s7362_s5 = sld [smem:[%s8109_s0]]   ;;  %s7316_s14 = smov 3  }
   0x2   :  { %s7367_s9 = sld [smem:[%s8109_s0 + %s7314_s6]]   ;;  %s7317_s18 = smov 4  }
   0x3   :  { %s7372_s13 = sld [smem:[%s8109_s0 + %s7315_s10]]   ;;  %s7318_s22 = smov 5  }
   0x4   :  { %s7377_s17 = sld [smem:[%s8109_s0 + %s7316_s14]]   ;;  %s7319_s26 = smov 6  }
   0x5   :  { %s7382_s21 = sld [smem:[%s8109_s0 + %s7317_s18]]   ;;  %s7320_s30 = smov 7  }
   0x6   :  { %s7387_s25 = sld [smem:[%s8109_s0 + %s7318_s22]]   ;;  %s7321_s4 = smov 8  }
   0x7   :  { %s7392_s29 = sld [smem:[%s8109_s0 + %s7319_s26]]   ;;  %s7322_s10 = smov 9  }
   0x8   :  { %s7397_s3 = sld [smem:[%s8109_s0 + %s7320_s30]]   ;;  %s7323_s15 = smov 10  }
   0x9   :  { %s7402_s8 = sld [smem:[%s8109_s0 + %s7321_s4]]   ;;  %s7324_s20 = smov 11  }
   0xa   :  { %s7407_s14 = sld [smem:[%s8109_s0 + %s7322_s10]]   ;;  %s7325_s26 = smov 12  }
   0xb   :  { %s7412_s19 = sld [smem:[%s8109_s0 + %s7323_s15]]   ;;  %s7326_s1 = smov 13  }
   0xc   :  { %s7417_s24 = sld [smem:[%s8109_s0 + %s7324_s20]]   ;;  %s7327_s7 = smov 14  }
   0xd   :  { %s7422_s30 = sld [smem:[%s8109_s0 + %s7325_s26]]   ;;  %s7328_s15 = smov 15  }
   0xe   :  { %8128 = sst [smem:[#allocation5_spill]] %s7397_s3  ;;  %s7329_s22 = smov 16  }
   0xf   :  { %8129 = sst [smem:[#allocation6_spill]] %s7402_s8  ;;  %s7330_s28 = smov 17  }
  0x10   :  { %s7427_s6 = sld [smem:[%s8109_s0 + %s7326_s1]]  }
  0x11   :  { %s7432_s12 = sld [smem:[%s8109_s0 + %s7327_s7]]   ;;  %s7331_s7 = smov 18  }
  0x12   :  { %s7437_s20 = sld [smem:[%s8109_s0 + %s7328_s15]]   ;;  %s7332_s15 = smov 19  }
  0x13   :  { %s7442_s27 = sld [smem:[%s8109_s0 + %s7329_s22]]   ;;  %s7333_s22 = smov 20  }
  0x14   :  { %s7447_s4 = sld [smem:[%s8109_s0 + %s7330_s28]]   ;;  %s7334_s28 = smov 21  }
  0x15   :  { %s7452_s3 = sld [smem:[%s8109_s0 + %s7331_s7]]   ;;  %s7335_s7 = smov 22  }
  0x16   :  { %s7457_s8 = sld [smem:[%s8109_s0 + %s7332_s15]]   ;;  %s7336_s15 = smov 23  }
  0x19   :  { %8130 = sst [smem:[#allocation7_spill]] %s7442_s27 }
  0x1a   :  { %8131 = sst [smem:[#allocation8_spill]] %s7447_s4 }
  0x1b   :  { %8132 = sst [smem:[#allocation9_spill]] %s7452_s3 }
  0x1c   :  { %8133 = sst [smem:[#allocation10_spill]] %s7457_s8 }
  0x1d   :  { %s7462_s27 = sld [smem:[%s8109_s0 + %s7333_s22]]   ;;  %s7337_s22 = smov 24  }
  0x1e   :  { %s7467_s4 = sld [smem:[%s8109_s0 + %s7334_s28]]   ;;  %s7338_s28 = smov 25  }
  0x1f   :  { %s7472_s3 = sld [smem:[%s8109_s0 + %s7335_s7]]   ;;  %s7339_s7 = smov 26  }
  0x20   :  { %s7477_s8 = sld [smem:[%s8109_s0 + %s7336_s15]]   ;;  %s7340_s15 = smov 27  }
  0x23   :  { %8134 = sst [smem:[#allocation11_spill]] %s7462_s27 }
  0x24   :  { %8135 = sst [smem:[#allocation12_spill]] %s7467_s4 }
  0x25   :  { %8136 = sst [smem:[#allocation13_spill]] %s7472_s3 }
  0x26   :  { %8137 = sst [smem:[#allocation14_spill]] %s7477_s8 }
  0x27   :  { %s7482_s27 = sld [smem:[%s8109_s0 + %s7337_s22]]   ;;  %s7341_s22 = smov 28  }
  0x28   :  { %s7487_s4 = sld [smem:[%s8109_s0 + %s7338_s28]]   ;;  %s7342_s28 = smov 29  }
  0x29   :  { %s7492_s3 = sld [smem:[%s8109_s0 + %s7339_s7]]   ;;  %s7343_s7 = smov 30  }
  0x2a   :  { %s7497_s8 = sld [smem:[%s8109_s0 + %s7340_s15]]   ;;  %s7344_s15 = smov 31  }
  0x2d   :  { %8138 = sst [smem:[#allocation15_spill]] %s7482_s27 }
  0x2e   :  { %8139 = sst [smem:[#allocation16_spill]] %s7487_s4 }
  0x2f   :  { %8140 = sst [smem:[#allocation17_spill]] %s7492_s3 }
  0x30   :  { %8141 = sst [smem:[#allocation18_spill]] %s7497_s8 }
  0x31   :  { %s7502_s27 = sld [smem:[%s8109_s0 + %s7341_s22]]   ;;  %s7345_s22 = smov 32  }
  0x32   :  { %s7507_s4 = sld [smem:[%s8109_s0 + %s7342_s28]]   ;;  %s7346_s28 = smov 33  }
  0x33   :  { %s7512_s3 = sld [smem:[%s8109_s0 + %s7343_s7]]   ;;  %s7347_s7 = smov 34  }
  0x34   :  { %s7517_s8 = sld [smem:[%s8109_s0 + %s7344_s15]]   ;;  %s7348_s15 = smov 35  }
  0x37   :  { %8142 = sst [smem:[#allocation19_spill]] %s7502_s27 }
  0x38   :  { %8143 = sst [smem:[#allocation20_spill]] %s7507_s4 }
  0x39   :  { %8144 = sst [smem:[#allocation21_spill]] %s7512_s3 }
  0x3a   :  { %8145 = sst [smem:[#allocation22_spill]] %s7517_s8 }
  0x3b   :  { %s7522_s27 = sld [smem:[%s8109_s0 + %s7345_s22]]   ;;  %s7349_s22 = smov 36  }
  0x3c   :  { %s7527_s4 = sld [smem:[%s8109_s0 + %s7346_s28]]   ;;  %s7350_s28 = smov 37  }
  0x3d   :  { %s7532_s3 = sld [smem:[%s8109_s0 + %s7347_s7]]  }
  0x3e   :  { %s7537_s8 = sld [smem:[%s8109_s0 + %s7348_s15]]  }
  0x41   :  { %8146 = sst [smem:[#allocation23_spill]] %s7522_s27 }
  0x42   :  { %8147 = sst [smem:[#allocation24_spill]] %s7527_s4 }
  0x43   :  { %s7542_s27 = sld [smem:[%s8109_s0 + %s7349_s22]]  }
  0x44   :  { %s7547_s4 = sld [smem:[%s8109_s0 + %s7350_s28]]  }
  0x45   :  { %v156_v0 = vld [vmem:[%s7407_s14] sm:$0xff]  ;;  %vm174_vm0 = vcmask 64512   ;;  %v7351_v2 = vmov 0.0   ;;  %vm7352_vm1 = vmmov 0   ;;  %v161_v3 = vld [vmem:[%s7417_s24 + $0x18] sm:$0xff] }
  0x46   :  { %v155_v1 = vld [vmem:[%s7367_s9] sm:$0x3]  ;;  %6596 = vmatprep.subr.mxu0 %v7351_v2  ;;  %6598 = vmatprep.mubr.msk.f32.mxu0 %vm7352_vm1, %v7351_v2 }
  0x47   :  { %80 = vsyncpa [#allocation3], 0  ;;  %6597 = vmatpush3.msra.mxu0 %v156_v0  ;;  %6601 = vmatprep.subr.mxu1 %v7351_v2  ;;  %v160_v4 = vld [vmem:[%s7417_s24 + $0x10] sm:$0xff]  ;;  %v159_v5 = vld [vmem:[%s7417_s24 + $0x8] sm:$0xff]  ;;  %vm255_vm2 = vcmask 261120   ;;  %vm516_vm3 = vcmask 1045504  }
  0x48   :  { %6599 = vmatmul.mubr.msk.f32.vlgmr.msra.gmra.mxu0 %vm174_vm0, %v155_v1  ;;  %6602 = vmatpush3.msra.mxu1 %v161_v3  ;;  %v158_v6 = vld [vmem:[%s7417_s24] sm:$0xff]  ;;  %v166_v7 = vld [vmem:[%s7427_s6 + $0x18] sm:$0xff]  ;;  %v165_v13 = vld [vmem:[%s7427_s6 + $0x10] sm:$0xff]  ;;  %vm423_vm4 = vcmask 15360   ;;  %vm509_vm5 = vcmask 113664   ;;  %vm430_vm6 = vcmask 1041408  }
  0x49   :  { %6603 = vmatprep.subr.mxu1 %v7351_v2  ;;  %6609 = vmatprep.mubr.msk.f32.mxu1 %vm7352_vm1, %v7351_v2  ;;  %v5974_v8 = vld [vmem:[%s7412_s19] ss:$0 sm:$0xff]  ;;  %v164_v14 = vld [vmem:[%s7427_s6 + $0x8] sm:$0xff]  ;;  %v604_v33 = vld [vmem:[%s7377_s17 + $0x38] sm:$0xff]  ;;  %vm605_vm7 = vcmask 523264   ;;  %s8148_s0 = sld [smem:[#allocation10_spill]] }
  0x4a   :  { %6612 = vmatprep.subr.mxu0 %v7351_v2  ;;  %6620 = vmatprep.mubr.msk.f32.mxu0 %vm7352_vm1, %v7351_v2  ;;  %v163_v15 = vld [vmem:[%s7427_s6] sm:$0xff]  ;;  %v420_v21 = vld [vmem:[%s7362_s5 + $0x8] sm:$0x3f]  ;;  %v603_v35 = vld [vmem:[%s7377_s17 + $0x30] sm:$0xff]  ;;  %s8150_s9 = sld [smem:[#allocation11_spill]]  ;;  %vm1042_vm8 = vcmask 130048  }
  0x4b   :  { %6604 = vmatpush3.msra.mxu1 %v160_v4  ;;  %6613 = vmatpush3.msra.mxu0 %v166_v7  ;;  %v5976_v16 = vld [vmem:[%s7422_s30] ss:$0 sm:$0xff]  ;;  %v418_v25 = vld [vmem:[%s7382_s21 + $0x8] sm:$0xff]  ;;  %v600_v38 = vld [vmem:[%s7377_s17 + $0x18] sm:$0xff]  ;;  %s8156_s14 = sld [smem:[#allocation14_spill]]  ;;  %s7353_s18 = smov [#allocation2]  }
  0x4c   :  { %6605 = vmatprep.subr.mxu1 %v7351_v2  ;;  %6614 = vmatprep.subr.mxu0 %v7351_v2  ;;  %v419_v22 = vld [vmem:[%s7362_s5] sm:$0xff]  ;;  %v422_v32 = vld [vmem:[%s7387_s25 + $0x8] sm:$0xff]  ;;  %v599_v39 = vld [vmem:[%s7377_s17 + $0x10] sm:$0xff]  ;;  %s8149_s5 = sld [smem:[#allocation8_spill]]  ;;  %s5929_s22 = sshll.u32 %s7353_s18, 4  ;;  %vm5921_vm9 = vcmask 254976   ;;  %s5930_s22 = int_to_ptr.vmem [resolvable:$true] %s5929_s22 }
  0x4d   :  { %6606 = vmatpush3.msra.mxu1 %v159_v5  ;;  %6615 = vmatpush3.msra.mxu0 %v165_v13  ;;  %v421_v23 = vld [vmem:[%s7387_s25] sm:$0xff]  ;;  %v602_v36 = vld [vmem:[%s7377_s17 + $0x28] sm:$0xff]  ;;  %v694_v43 = vld [vmem:[%s7437_s20 + $0x18] sm:$0xff]  ;;  %s8154_s25 = sld [smem:[#allocation12_spill]]  ;;  %s7292_s23 = scalar_lea.vmem %s5930_s22, 32 }
  0x4e   :  { %6607 = vmatprep.subr.mxu1 %v7351_v2  ;;  %6616 = vmatprep.subr.mxu0 %v7351_v2  ;;  %v417_v24 = vld [vmem:[%s7382_s21] sm:$0xff]  ;;  %v598_v40 = vld [vmem:[%s7377_s17 + $0x8] sm:$0xff]  ;;  %v693_v45 = vld [vmem:[%s7437_s20 + $0x10] sm:$0xff]  ;;  %s8153_s21 = sld [smem:[#allocation6_spill]]  ;;  %p7293_p0 = scmp.ne.s32.totalorder %s5930_s22, %s7292_s23 }
  0x4f   :  { %6608 = vmatpush3.msra.mxu1 %v158_v6  ;;  %6617 = vmatpush3.msra.mxu0 %v164_v14  ;;  %v5978_v26 = vld [vmem:[%s7432_s12] ss:$0 sm:$0xff]  ;;  %v596_v42 = vld [vmem:[%s7392_s29 + $0x8] sm:$0xff]  ;;  %v872_v44 = vld [vmem:[%s8148_s0 + $0x18] sm:$0xff]  ;;  %s8157_s19 = sld [smem:[#allocation16_spill]]  ;;  %p7297_p1 = scmp.lt.s32.totalorder %s5930_s22, %s5930_s22 }
  0x50   :  { %6618 = vmatprep.subr.mxu0 %v7351_v2  ;;  %v5980_v28 = vld [vmem:[%s7372_s13] ss:$0 sm:$0xff]  ;;  %v871_v46 = vld [vmem:[%s8148_s0 + $0x10] sm:$0xff]  ;;  %v692_v47 = vld [vmem:[%s7437_s20 + $0x8] sm:$0xff]  ;;  %s8151_s13 = sld [smem:[#allocation7_spill]]  ;;  %p7298_p2 = scmp.lt.s32.totalorder %s7292_s23, %s7292_s23 }
  0x51   :  { %6619 = vmatpush3.msra.mxu0 %v163_v15  ;;  %v595_v34 = vld [vmem:[%s7392_s29] sm:$0xff]  ;;  %v870_v48 = vld [vmem:[%s8148_s0 + $0x8] sm:$0xff]  ;;  %s8155_s29 = sld [smem:[#allocation13_spill]] }
  0x52   :  { %6628 = vmatprep.subr.msk.mxu0 %vm516_vm3, %v420_v21  ;;  %v601_v37 = vld [vmem:[%s7377_s17 + $0x20] sm:$0xff]  ;;  %v786_v51 = vld [vmem:[%s8149_s5 + $0x18] sm:$0xff]  ;;  %v785_v62 = vld [vmem:[%s8149_s5 + $0x10] sm:$0xff]  ;;  %s8158_s24 = sld [smem:[#allocation18_spill]]  ;;  %p7299_p3 = por %p7298_p2, %p7297_p1 }
  0x53   :  { %v597_v41 = vld [vmem:[%s7377_s17] sm:$0xff]  ;;  %v784_v63 = vld [vmem:[%s8149_s5 + $0x8] sm:$0xff]  ;;  %s8152_s17 = sld [smem:[#allocation9_spill]] }
  0x54   :  { %v691_v49 = vld [vmem:[%s7437_s20] sm:$0xff]  ;;  %s8159_s30 = sld [smem:[#allocation19_spill]]  ;;  %p7300_p4 = pnand %p7299_p3, %p7293_p0 }
  0x55   :  { %v869_v50 = vld [vmem:[%s8148_s0] sm:$0xff]  ;;  %s8160_s6 = sld [smem:[#allocation15_spill]] }
  0x56   :  { %v783_v0 = vld [vmem:[%s8149_s5] sm:$0xff]  ;;  %s8161_s12 = sld [smem:[#allocation17_spill]] }
  0x57   :  { %v5995_v1 = vld [vmem:[%s8150_s9] ss:$0 sm:$0xff]  ;;  %s8162_s7 = sld [smem:[#allocation20_spill]] }
  0x58   :  { %v5989_v6 = vld [vmem:[%s8151_s13] ss:$0 sm:$0xff]  ;;  %s8163_s10 = sld [smem:[#allocation21_spill]] }
  0x59   :  { %s8165_s11 = sld [smem:[#allocation22_spill]] }
  0x5a   :  { %s8166_s15 = sld [smem:[#allocation24_spill]] }
  0x5b   :  { %s8167_s16 = sld [smem:[#allocation23_spill]] }
 0x108   :  { %v244_v9 = vpop.f32.mrf.mxu0 }
 0x109   :  { %v245_v10 = vadd.f32 %v5974_v8, %v244_v9 }
 0x10a   :  { %v6600_v11 = vpop.f32.mrf.mxu0 }
 0x10b   :  { %v248_v12 = vmax.f32 %v245_v10, 0.0  ;;  %v5992_v11 = vld [vmem:[%s8152_s17] ss:$0 sm:$0xff] }
 0x10d   :  { %6610 = vmatmul.mubr.msk.f32.vlgmr.msra.gmra.mxu1 %vm255_vm2, %v248_v12 }
 0x10e   :  { %6625 = vmatprep.mubr.msk.f32.mxu1 %vm423_vm4, %v421_v23  ;;  %v6021_v23 = vld [vmem:[%s8148_s0 + $0x28] sm:$0xff] }
 0x1cd   :  { %v325_v17 = vpop.f32.mrf.mxu1 }
 0x1ce   :  { %v326_v18 = vadd.f32 %v5976_v16, %v325_v17  ;;  %v6007_v16 = vld [vmem:[%s7437_s20 + $0x38] sm:$0xff] }
 0x1cf   :  { %v6611_v19 = vpop.f32.mrf.mxu1 }
 0x1d0   :  { %v329_v20 = vmax.f32 %v326_v18, 0.0  ;;  %v6006_v18 = vld [vmem:[%s7437_s20 + $0x30] sm:$0xff]  ;;  %v6005_v19 = vld [vmem:[%s7437_s20 + $0x28] sm:$0xff] }
 0x1d2   :  { %6621 = vmatmul.mubr.msk.f32.vlgmr.msra.gmra.mxu0 %vm255_vm2, %v329_v20  ;;  %v6004_v20 = vld [vmem:[%s7437_s20 + $0x20] sm:$0xff] }
 0x1d3   :  { %6629 = vmatpush3.msk.msra.mxu0 %vm516_vm3, %v420_v21  ;;  %6632 = vmatprep.mubr.msk.f32.mxu0 %vm509_vm5, %v417_v24  ;;  %v6023_v21 = vld [vmem:[%s8148_s0 + $0x38] sm:$0xff]  ;;  %v6020_v24 = vld [vmem:[%s8148_s0 + $0x20] sm:$0xff] }
 0x1d4   :  { %6630 = vmatprep.subr.mxu0 %v419_v22 }
 0x1d5   :  { %6631 = vmatpush3.msra.mxu0 %v419_v22  ;;  %v6022_v22 = vld [vmem:[%s8148_s0 + $0x30] sm:$0xff] }
 0x1d6   :  { %6633 = vmatmul.mubr.msk.f32.vlgmr.msra.gmra.mxu0 %vm509_vm5, %v418_v25  ;;  %6654 = vmatprep.subr.mxu0 %v694_v43 }
 0x1d7   :  { %6655 = vmatpush3.msra.mxu0 %v694_v43 }
 0x1d8   :  { %6656 = vmatprep.subr.mxu0 %v693_v45 }
 0x1d9   :  { %6657 = vmatpush3.msra.mxu0 %v693_v45 }
 0x1da   :  { %6658 = vmatprep.subr.mxu0 %v692_v47 }
 0x1db   :  { %6659 = vmatpush3.msra.mxu0 %v692_v47 }
 0x1dc   :  { %6660 = vmatprep.subr.mxu0 %v691_v49 }
 0x1dd   :  { %6661 = vmatpush3.msra.mxu0 %v691_v49 }
 0x1de   :  { %6665 = vmatprep.subr.mxu0 %v786_v51 }
 0x292   :  { %v405_v27 = vpop.f32.mrf.mxu0 }
 0x293   :  { %v406_v29 = vadd.f32 %v5978_v26, %v405_v27  ;;  %v7655_v26 = vld [vmem:[%s8153_s21] sm:$0xff]  ;;  %v7658_v27 = vld [vmem:[%s8153_s21 + $0x8] sm:$0xff] }
 0x294   :  { %v6622_v30 = vpop.f32.mrf.mxu0 }
 0x295   :  { %v416_v31 = vadd.f32 %v5980_v28, %v406_v29 }
 0x296   :  { %v6634_v53 = vpop.f32.mrf.mxu0 }
 0x297   :  { %6623 = vmatprep.subr.msk.mxu1 %vm430_vm6, %v416_v31 }
 0x298   :  { %6624 = vmatpush3.msk.msra.mxu1 %vm430_vm6, %v416_v31  ;;  %v586_v55 = vpop.f32.mrf.mxu0 }
 0x299   :  { %6626 = vmatmul.mubr.msk.f32.vlgmr.msra.gmra.mxu1 %vm423_vm4, %v422_v32  ;;  %6635 = vmatprep.subr.mxu1 %v604_v33  ;;  %v6009_v32 = vld [vmem:[%s8151_s13 + $0x1] ss:$0 sm:$0xff] }
 0x29a   :  { %6636 = vmatpush3.msra.mxu1 %v604_v33  ;;  %6651 = vmatprep.mubr.msk.f32.mxu1 %vm605_vm7, %v595_v34 }
 0x29b   :  { %6637 = vmatprep.subr.mxu1 %v603_v35 }
 0x29c   :  { %6638 = vmatpush3.msra.mxu1 %v603_v35 }
 0x29d   :  { %6639 = vmatprep.subr.mxu1 %v602_v36 }
 0x29e   :  { %6640 = vmatpush3.msra.mxu1 %v602_v36 }
 0x29f   :  { %6641 = vmatprep.subr.mxu1 %v601_v37 }
 0x2a0   :  { %6642 = vmatpush3.msra.mxu1 %v601_v37  ;;  %v6025_v37 = vld [vmem:[%s8150_s9 + $0x1] ss:$0 sm:$0xff] }
 0x2a1   :  { %6643 = vmatprep.subr.mxu1 %v600_v38 }
 0x2a2   :  { %6644 = vmatpush3.msra.mxu1 %v600_v38 }
 0x2a3   :  { %6645 = vmatprep.subr.mxu1 %v599_v39 }
 0x2a4   :  { %6646 = vmatpush3.msra.mxu1 %v599_v39 }
 0x2a5   :  { %6647 = vmatprep.subr.mxu1 %v598_v40 }
 0x2a6   :  { %6648 = vmatpush3.msra.mxu1 %v598_v40 }
 0x2a7   :  { %6649 = vmatprep.subr.mxu1 %v597_v41 }
 0x2a8   :  { %6650 = vmatpush3.msra.mxu1 %v597_v41 }
 0x2a9   :  { %6652 = vmatmul.mubr.msk.f32.vlgmr.msra.gmra.mxu1 %vm605_vm7, %v596_v42  ;;  %6676 = vmatprep.subr.mxu1 %v872_v44 }
 0x2aa   :  { %6677 = vmatpush3.msra.mxu1 %v872_v44 }
 0x2ab   :  { %6678 = vmatprep.subr.mxu1 %v871_v46 }
 0x2ac   :  { %6679 = vmatpush3.msra.mxu1 %v871_v46 }
 0x2ad   :  { %6680 = vmatprep.subr.mxu1 %v870_v48 }
 0x2ae   :  { %6681 = vmatpush3.msra.mxu1 %v870_v48 }
 0x2af   :  { %6682 = vmatprep.subr.mxu1 %v869_v50 }
 0x2b0   :  { %6683 = vmatpush3.msra.mxu1 %v869_v50 }
 0x359   :  { %v6627_v52 = vpop.f32.mrf.mxu1 }
 0x35a   :  { %v592_v58 = vadd.f32 %v6634_v53, %v6627_v52  ;;  %v6015_v52 = vld [vmem:[%s8149_s5 + $0x38] sm:$0xff] }
 0x35b   :  { %v500_v54 = vpop.f32.mrf.mxu1 }
 0x35c   :  { %v587_v57 = vadd.f32 %v586_v55, %v500_v54 }
 0x369   :  { %v6653_v56 = vpop.f32.mrf.mxu1 }
 0x36a   :  { %v7612_v61 = vadd.f32 %v6653_v56, %v592_v58 }
 0x36b   :  { %v678_v59 = vpop.f32.mrf.mxu1 }
 0x36c   :  { %v7610_v60 = vadd.f32 %v678_v59, %v587_v57  ;;  %v6014_v59 = vld [vmem:[%s8149_s5 + $0x30] sm:$0xff] }
 0x36e   :  { %6662 = vmatprep.mubr.msk.f32.mxu0 %vm255_vm2, %v7610_v60  ;;  %6684 = vmatprep.mubr.msk.f32.mxu1 %vm255_vm2, %v7610_v60 }
 0x36f   :  { %6663 = vmatmul.mubr.msk.f32.vlgmr.msra.gmra.mxu0 %vm255_vm2, %v7612_v61  ;;  %6685 = vmatmul.mubr.msk.f32.vlgmr.msra.gmra.mxu1 %vm255_vm2, %v7612_v61 }
 0x370   :  { %6666 = vmatpush3.msra.mxu0 %v786_v51  ;;  %6673 = vmatprep.mubr.msk.f32.mxu0 %vm255_vm2, %v7610_v60 }
 0x371   :  { %6667 = vmatprep.subr.mxu0 %v785_v62 }
 0x372   :  { %6668 = vmatpush3.msra.mxu0 %v785_v62  ;;  %v6013_v62 = vld [vmem:[%s8149_s5 + $0x28] sm:$0xff] }
 0x373   :  { %6669 = vmatprep.subr.mxu0 %v784_v63 }
 0x374   :  { %6670 = vmatpush3.msra.mxu0 %v784_v63  ;;  %v6012_v63 = vld [vmem:[%s8149_s5 + $0x20] sm:$0xff] }
 0x375   :  { %6671 = vmatprep.subr.mxu0 %v783_v0 }
 0x376   :  { %6672 = vmatpush3.msra.mxu0 %v783_v0 }
 0x377   :  { %6674 = vmatmul.mubr.msk.f32.vlgmr.msra.gmra.mxu0 %vm255_vm2, %v7612_v61 }
 0x42f   :  { %v6664_v3 = vpop.f32.mrf.mxu0  ;;  %v6686_v4 = vpop.f32.mrf.mxu1 }
 0x430   :  { %v952_v5 = vadd.f32 %v6686_v4, %v5995_v1  ;;  %v780_v17 = vadd.f32 %v6664_v3, %v5989_v6  ;;  %v6017_v4 = vld [vmem:[%s8152_s17 + $0x1] ss:$0 sm:$0xff] }
 0x431   :  { %v774_v7 = vpop.f32.mrf.mxu0  ;;  %v946_v8 = vpop.f32.mrf.mxu1 }
 0x432   :  { %v775_v9 = vadd.f32 %v5989_v6, %v774_v7  ;;  %v947_v10 = vadd.f32 %v5995_v1, %v946_v8  ;;  %6694 = vmatprep.subr.mxu1 %v952_v5 }
 0x433   :  { %6695 = vmatpush3.msra.mxu1 %v952_v5 }
 0x434   :  { %6691 = vmatprep.mubr.msk.f32.mxu0 %vm174_vm0, %v775_v9  ;;  %6696 = vmatprep.subr.mxu1 %v947_v10 }
 0x435   :  { %6697 = vmatpush3.msra.mxu1 %v947_v10 }
 0x436   :  { %6712 = vmatprep.subr.mxu1 %v6015_v52 }
 0x437   :  { %v6675_v12 = vpop.f32.mrf.mxu0 }
 0x438   :  { %v866_v13 = vadd.f32 %v6675_v12, %v5992_v11 }
 0x439   :  { %v860_v14 = vpop.f32.mrf.mxu0 }
 0x43a   :  { %v861_v15 = vadd.f32 %v5992_v11, %v860_v14  ;;  %6687 = vmatprep.subr.msk.mxu0 %vm174_vm0, %v866_v13 }
 0x43b   :  { %6688 = vmatpush3.xpose.msk.msra.mxu0 %vm174_vm0, %v866_v13 }
 0x43c   :  { %6689 = vmatprep.subr.msk.mxu0 %vm174_vm0, %v861_v15 }
 0x43f   :  { %6690 = vmatpush3.xpose.msk.msra.mxu0 %vm174_vm0, %v861_v15 }
 0x440   :  { %6701 = vmatprep.subr.mxu0 %v6007_v16 }
 0x442   :  { %6692 = vmatmul.mubr.msk.f32.vlgmr.msra.gmra.mxu0 %vm174_vm0, %v780_v17 }
 0x443   :  { %6702 = vmatpush3.msra.mxu0 %v6007_v16  ;;  %6709 = vmatprep.mubr.msk.f32.mxu0 %vm255_vm2, %v7610_v60 }
 0x444   :  { %6703 = vmatprep.subr.mxu0 %v6006_v18 }
 0x445   :  { %6704 = vmatpush3.msra.mxu0 %v6006_v18 }
 0x446   :  { %6705 = vmatprep.subr.mxu0 %v6005_v19 }
 0x447   :  { %6706 = vmatpush3.msra.mxu0 %v6005_v19 }
 0x448   :  { %6707 = vmatprep.subr.mxu0 %v6004_v20 }
 0x449   :  { %6708 = vmatpush3.msra.mxu0 %v6004_v20 }
 0x44a   :  { %6710 = vmatmul.mubr.msk.f32.vlgmr.msra.gmra.mxu0 %vm255_vm2, %v7612_v61  ;;  %6723 = vmatprep.subr.mxu0 %v6023_v21 }
 0x44b   :  { %6724 = vmatpush3.msra.mxu0 %v6023_v21  ;;  %6731 = vmatprep.mubr.msk.f32.mxu0 %vm255_vm2, %v7610_v60 }
 0x44c   :  { %6725 = vmatprep.subr.mxu0 %v6022_v22 }
 0x44d   :  { %6726 = vmatpush3.msra.mxu0 %v6022_v22 }
 0x44e   :  { %6727 = vmatprep.subr.mxu0 %v6021_v23 }
 0x44f   :  { %6728 = vmatpush3.msra.mxu0 %v6021_v23 }
 0x450   :  { %6729 = vmatprep.subr.mxu0 %v6020_v24 }
 0x451   :  { %6730 = vmatpush3.msra.mxu0 %v6020_v24 }
 0x452   :  { %6732 = vmatmul.mubr.msk.f32.vlgmr.msra.gmra.mxu0 %vm255_vm2, %v7612_v61 }
 0x502   :  { %v6693_v25 = vpop.f32.mrf.mxu0 }
 0x503   :  { %v1039_v30 = vadd.f32 %v6693_v25, %v7658_v27  ;;  %v1146_v25 = vld [vmem:[%s8154_s25] sm:$0xff] }
 0x504   :  { %v1033_v28 = vpop.f32.mrf.mxu0 }
 0x505   :  { %v1034_v29 = vadd.f32 %v1033_v28, %v7655_v26  ;;  %v1046_v35 = vsel %vm1042_vm8, %v1039_v30, -inf }
 0x507   :  { %v1043_v31 = vsel %vm1042_vm8, %v1034_v29, -inf }
 0x508   :  { %1044 = vmax.xlane.f32.xlu0 %v1043_v31 }
 0x50a   :  { %v6711_v33 = vpop.f32.mrf.mxu0 }
 0x50b   :  { %v7664_v34 = vadd.f32 %v6711_v33, %v6009_v32 }
 0x50c   :  { %1047 = vmax.xlane.f32.xlu0 %v1046_v35  ;;  %v1226_v36 = vpop.f32.mrf.mxu0  ;;  %v6049_v35 = vld [vmem:[%s8149_s5 + $0x50] sm:$0xff] }
 0x50d   :  { %v1227_v0 = vadd.f32 %v6009_v32, %v1226_v36  ;;  %v6048_v36 = vld [vmem:[%s8149_s5 + $0x48] sm:$0xff] }
 0x512   :  { %v6733_v38 = vpop.f32.mrf.mxu0 }
 0x513   :  { %v1408_v39 = vadd.f32 %v6733_v38, %v6025_v37  ;;  %v6034_v38 = vld [vmem:[%s8154_s25 + $0x8] sm:$0xff] }
 0x514   :  { %v1402_v40 = vpop.f32.mrf.mxu0 }
 0x515   :  { %v1403_v41 = vadd.f32 %v6025_v37, %v1402_v40  ;;  %6741 = vmatprep.subr.mxu0 %v1408_v39  ;;  %v6047_v37 = vld [vmem:[%s8149_s5 + $0x40] sm:$0xff] }
 0x516   :  { %6742 = vmatpush3.msra.mxu0 %v1408_v39  ;;  %v6042_v39 = vld [vmem:[%s7437_s20 + $0x58] sm:$0xff] }
 0x517   :  { %6743 = vmatprep.subr.mxu0 %v1403_v41 }
 0x518   :  { %6744 = vmatpush3.msra.mxu0 %v1403_v41 }
 0x519   :  { %6753 = vmatprep.subr.mxu0 %v1146_v25 }
 0x591   :  { %v1045_v42 = vpop.xlane.xlu0 %1044 }
 0x592   :  { %v1049_v43 = vsub.f32 %v1034_v29, %v1045_v42  ;;  %v6041_v42 = vld [vmem:[%s7437_s20 + $0x50] sm:$0xff] }
 0x594   :  { %v1051_v44 = vmul.f32 1.442695, %v1049_v43  ;;  %v6040_v43 = vld [vmem:[%s7437_s20 + $0x48] sm:$0xff] }
 0x595   :  { %v1048_v45 = vpop.xlane.xlu0 %1047 }
 0x596   :  { %7210 = vpow2.f32 %v1051_v44  ;;  %v1050_v46 = vsub.f32 %v1039_v30, %v1048_v45  ;;  %v6039_v45 = vld [vmem:[%s7437_s20 + $0x40] sm:$0xff] }
 0x598   :  { %v1053_v47 = vmul.f32 1.442695, %v1050_v46  ;;  %v6058_v46 = vld [vmem:[%s8148_s0 + $0x58] sm:$0xff] }
 0x59a   :  { %7212 = vpow2.f32 %v1053_v47 }
 0x5a3   :  { %v7211_v48 = vpop.eup %7210 }
 0x5a4   :  { %v1055_v49 = vsel %vm1042_vm8, %v7211_v48, 0.0 }
 0x5a5   :  { %1056 = vadd.xlane.f32.xlu1 %v1055_v49  ;;  %v6057_v49 = vld [vmem:[%s8148_s0 + $0x50] sm:$0xff] }
 0x5a7   :  { %v7213_v50 = vpop.eup %7212 }
 0x5a8   :  { %v1058_v51 = vsel %vm1042_vm8, %v7213_v50, 0.0 }
 0x5a9   :  { %1059 = vadd.xlane.f32.xlu1 %v1058_v51 }
 0x62e   :  { %v1057_v53 = vpop.xlane.xlu1 %1056 }
 0x62f   :  { %7214 = vrcp.f32 %v1057_v53 }
 0x632   :  { %v1060_v54 = vpop.xlane.xlu1 %1059 }
 0x633   :  { %7216 = vrcp.f32 %v1060_v54 }
 0x63c   :  { %v7215_v55 = vpop.eup %7214 }
 0x63d   :  { %v1063_v56 = vmul.f32 %v7215_v55, %v7211_v48  ;;  %v6052_v48 = vld [vmem:[%s8152_s17 + $0x2] ss:$0 sm:$0xff] }
 0x63e   :  { %v6055_v55 = vld [vmem:[%s8148_s0 + $0x40] sm:$0xff] }
 0x63f   :  { %6698 = vmatprep.mubr.msk.f32.mxu1 %vm1042_vm8, %v1063_v56 }
 0x640   :  { %v7217_v57 = vpop.eup %7216 }
 0x641   :  { %v1064_v58 = vmul.f32 %v7217_v57, %v7213_v50 }
 0x643   :  { %6699 = vmatmul.mubr.msk.f32.vlgmr.msra.gmra.mxu1 %vm1042_vm8, %v1064_v58 }
 0x644   :  { %6713 = vmatpush3.msra.mxu1 %v6015_v52  ;;  %6720 = vmatprep.mubr.msk.f32.mxu1 %vm255_vm2, %v7610_v60  ;;  %v6056_v52 = vld [vmem:[%s8148_s0 + $0x48] sm:$0xff] }
 0x645   :  { %6714 = vmatprep.subr.mxu1 %v6014_v59 }
 0x646   :  { %6715 = vmatpush3.msra.mxu1 %v6014_v59  ;;  %v6044_v59 = vld [vmem:[%s8151_s13 + $0x2] ss:$0 sm:$0xff] }
 0x647   :  { %6716 = vmatprep.subr.mxu1 %v6013_v62 }
 0x648   :  { %6717 = vmatpush3.msra.mxu1 %v6013_v62 }
 0x649   :  { %6718 = vmatprep.subr.mxu1 %v6012_v63 }
 0x64a   :  { %6719 = vmatpush3.msra.mxu1 %v6012_v63 }
 0x64b   :  { %6721 = vmatmul.mubr.msk.f32.vlgmr.msra.gmra.mxu1 %vm255_vm2, %v7612_v61 }
 0x64c   :  { %6738 = vmatprep.mubr.msk.f32.mxu1 %vm174_vm0, %v1227_v0 }
 0x703   :  { %v6700_v1 = vpop.f32.mrf.mxu1 }
 0x705   :  { %v1137_v3 = vpop.f32.mrf.mxu1 }
 0x70b   :  { %v6722_v5 = vpop.f32.mrf.mxu1 }
 0x70c   :  { %v1320_v6 = vadd.f32 %v6722_v5, %v6017_v4 }
 0x70d   :  { %v1314_v7 = vpop.f32.mrf.mxu1 }
 0x70e   :  { %v1315_v8 = vadd.f32 %v6017_v4, %v1314_v7  ;;  %6734 = vmatprep.subr.msk.mxu1 %vm174_vm0, %v1320_v6 }
 0x70f   :  { %6735 = vmatpush3.xpose.msk.msra.mxu1 %vm174_vm0, %v1320_v6 }
 0x710   :  { %6736 = vmatprep.subr.msk.mxu1 %vm174_vm0, %v1315_v8 }
 0x713   :  { %6737 = vmatpush3.xpose.msk.msra.mxu1 %vm174_vm0, %v1315_v8 }
 0x714   :  { %6748 = vmatprep.subr.mxu1 %v6034_v38 }
 0x716   :  { %6739 = vmatmul.mubr.msk.f32.vlgmr.msra.gmra.mxu1 %vm174_vm0, %v7664_v34  ;;  %v6050_v34 = vld [vmem:[%s8149_s5 + $0x58] sm:$0xff] }
 0x717   :  { %6749 = vmatpush3.msra.mxu1 %v6034_v38  ;;  %v6088_v38 = vld [vmem:[%s8148_s0 + $0x60] sm:$0xff] }
 0x718   :  { %6758 = vmatprep.subr.mxu1 %v6042_v39 }
 0x7d6   :  { %v6740_v9 = vpop.f32.mrf.mxu1 }
 0x7d7   :  { %v1495_v10 = vadd.f32 %v6740_v9, %v7658_v27 }
 0x7d8   :  { %v1489_v11 = vpop.f32.mrf.mxu1 }
 0x7d9   :  { %v1490_v12 = vadd.f32 %v1489_v11, %v7655_v26  ;;  %v1501_v13 = vsel %vm1042_vm8, %v1495_v10, -inf }
 0x7da   :  { %1502 = vmax.xlane.f32.xlu1 %v1501_v13 }
 0x7db   :  { %v1498_v14 = vsel %vm1042_vm8, %v1490_v12, -inf }
 0x7dc   :  { %1499 = vmax.xlane.f32.xlu0 %v1498_v14 }
 0x863   :  { %v1503_v15 = vpop.xlane.xlu1 %1502 }
 0x864   :  { %v1505_v16 = vsub.f32 %v1495_v10, %v1503_v15 }
 0x865   :  { %v1500_v17 = vpop.xlane.xlu0 %1499 }
 0x866   :  { %v1508_v18 = vmul.f32 1.442695, %v1505_v16  ;;  %v1504_v19 = vsub.f32 %v1490_v12, %v1500_v17 }
 0x868   :  { %7218 = vpow2.f32 %v1508_v18  ;;  %v1506_v20 = vmul.f32 1.442695, %v1504_v19 }
 0x86a   :  { %7220 = vpow2.f32 %v1506_v20 }
 0x875   :  { %v7219_v21 = vpop.eup %7218 }
 0x876   :  { %v1513_v22 = vsel %vm1042_vm8, %v7219_v21, 0.0 }
 0x877   :  { %v7221_v23 = vpop.eup %7220  ;;  %1514 = vadd.xlane.f32.xlu1 %v1513_v22 }
 0x878   :  { %v1510_v24 = vsel %vm1042_vm8, %v7221_v23, 0.0 }
 0x879   :  { %1511 = vadd.xlane.f32.xlu0 %v1510_v24 }
 0x900   :  { %v1515_v28 = vpop.xlane.xlu1 %1514 }
 0x901   :  { %7222 = vrcp.f32 %v1515_v28 }
 0x902   :  { %v1512_v29 = vpop.xlane.xlu0 %1511 }
 0x903   :  { %7224 = vrcp.f32 %v1512_v29 }
 0x90e   :  { %v7223_v30 = vpop.eup %7222 }
 0x90f   :  { %v1519_v33 = vmul.f32 %v7223_v30, %v7219_v21 }
 0x910   :  { %v7225_v31 = vpop.eup %7224 }
 0x911   :  { %v1518_v32 = vmul.f32 %v7225_v31, %v7221_v23  ;;  %v6075_v23 = vld [vmem:[%s7437_s20 + $0x78] sm:$0xff] }
 0x913   :  { %6745 = vmatprep.mubr.msk.f32.mxu0 %vm1042_vm8, %v1518_v32  ;;  %v6074_v32 = vld [vmem:[%s7437_s20 + $0x70] sm:$0xff] }
 0x914   :  { %6746 = vmatmul.mubr.msk.f32.vlgmr.msra.gmra.mxu0 %vm1042_vm8, %v1519_v33  ;;  %v6073_v33 = vld [vmem:[%s7437_s20 + $0x68] sm:$0xff] }
 0x915   :  { %6755 = vmatprep.mubr.msk.f32.mxu0 %vm174_vm0, %v1137_v3  ;;  %6754 = vmatpush3.msra.mxu0 %v1146_v25 }
 0x916   :  { %6769 = vmatprep.subr.mxu0 %v6050_v34 }
 0x918   :  { %6756 = vmatmul.mubr.msk.f32.vlgmr.msra.gmra.mxu0 %vm174_vm0, %v6700_v1  ;;  %v6060_v1 = vld [vmem:[%s8150_s9 + $0x2] ss:$0 sm:$0xff] }
 0x919   :  { %6770 = vmatpush3.msra.mxu0 %v6050_v34  ;;  %6777 = vmatprep.mubr.msk.f32.mxu0 %vm255_vm2, %v7610_v60  ;;  %v6072_v34 = vld [vmem:[%s7437_s20 + $0x60] sm:$0xff] }
 0x91a   :  { %6771 = vmatprep.subr.mxu0 %v6049_v35 }
 0x91b   :  { %6772 = vmatpush3.msra.mxu0 %v6049_v35  ;;  %v6091_v35 = vld [vmem:[%s8148_s0 + $0x78] sm:$0xff] }
 0x91c   :  { %6773 = vmatprep.subr.mxu0 %v6048_v36 }
 0x91d   :  { %6774 = vmatpush3.msra.mxu0 %v6048_v36  ;;  %v6090_v36 = vld [vmem:[%s8148_s0 + $0x70] sm:$0xff] }
 0x91e   :  { %6775 = vmatprep.subr.mxu0 %v6047_v37 }
 0x91f   :  { %6776 = vmatpush3.msra.mxu0 %v6047_v37  ;;  %v6089_v37 = vld [vmem:[%s8148_s0 + $0x68] sm:$0xff] }
 0x920   :  { %6778 = vmatmul.mubr.msk.f32.vlgmr.msra.gmra.mxu0 %vm255_vm2, %v7612_v61 }
 0x9d4   :  { %v6747_v40 = vpop.f32.mrf.mxu0 }
 0x9d6   :  { %v1592_v41 = vpop.f32.mrf.mxu0 }
 0x9d7   :  { %6750 = vmatprep.mubr.msk.f32.mxu1 %vm174_vm0, %v1592_v41 }
 0x9d8   :  { %6751 = vmatmul.mubr.msk.f32.vlgmr.msra.gmra.mxu1 %vm174_vm0, %v6747_v40  ;;  %v7715_v44 = vpop.f32.mrf.mxu0  ;;  %v6083_v40 = vld [vmem:[%s8149_s5 + $0x78] sm:$0xff] }
 0x9d9   :  { %6759 = vmatpush3.msra.mxu1 %v6042_v39  ;;  %6766 = vmatprep.mubr.msk.f32.mxu1 %vm255_vm2, %v7610_v60  ;;  %v6069_v39 = vld [vmem:[%s8154_s25 + $0x10] sm:$0xff] }
 0x9da   :  { %6760 = vmatprep.subr.mxu1 %v6041_v42  ;;  %v7719_v47 = vpop.f32.mrf.mxu0 }
 0x9db   :  { %6761 = vmatpush3.msra.mxu1 %v6041_v42 }
 0x9dc   :  { %6762 = vmatprep.subr.mxu1 %v6040_v43 }
 0x9dd   :  { %6763 = vmatpush3.msra.mxu1 %v6040_v43  ;;  %v6082_v43 = vld [vmem:[%s8149_s5 + $0x70] sm:$0xff] }
 0x9de   :  { %6764 = vmatprep.subr.mxu1 %v6039_v45 }
 0x9df   :  { %6765 = vmatpush3.msra.mxu1 %v6039_v45  ;;  %v6081_v45 = vld [vmem:[%s8149_s5 + $0x68] sm:$0xff] }
 0x9e0   :  { %6767 = vmatmul.mubr.msk.f32.vlgmr.msra.gmra.mxu1 %vm255_vm2, %v7612_v61  ;;  %v6779_v50 = vpop.f32.mrf.mxu0  ;;  %6780 = vmatprep.subr.mxu1 %v6058_v46 }
 0x9e1   :  { %v1938_v51 = vadd.f32 %v6779_v50, %v6052_v48  ;;  %6781 = vmatpush3.msra.mxu1 %v6058_v46  ;;  %6788 = vmatprep.mubr.msk.f32.mxu1 %vm255_vm2, %v7610_v60  ;;  %v6077_v46 = vld [vmem:[%s8151_s13 + $0x3] ss:$0 sm:$0xff] }
 0x9e2   :  { %v1932_v53 = vpop.f32.mrf.mxu0  ;;  %6782 = vmatprep.subr.mxu1 %v6057_v49 }
 0x9e3   :  { %v1933_v54 = vadd.f32 %v6052_v48, %v1932_v53  ;;  %6783 = vmatpush3.msra.mxu1 %v6057_v49  ;;  %6791 = vmatprep.subr.msk.mxu0 %vm174_vm0, %v1938_v51  ;;  %v6080_v48 = vld [vmem:[%s8149_s5 + $0x60] sm:$0xff] }
 0x9e4   :  { %6784 = vmatprep.subr.mxu1 %v6056_v52  ;;  %6792 = vmatpush3.xpose.msk.msra.mxu0 %vm174_vm0, %v1938_v51  ;;  %v6093_v53 = vld [vmem:[%s8150_s9 + $0x3] ss:$0 sm:$0xff] }
 0x9e5   :  { %6785 = vmatpush3.msra.mxu1 %v6056_v52  ;;  %6793 = vmatprep.subr.msk.mxu0 %vm174_vm0, %v1933_v54 }
 0x9e6   :  { %6786 = vmatprep.subr.mxu1 %v6055_v55 }
 0x9e7   :  { %6787 = vmatpush3.msra.mxu1 %v6055_v55 }
 0x9e8   :  { %6789 = vmatmul.mubr.msk.f32.vlgmr.msra.gmra.mxu1 %vm255_vm2, %v7612_v61  ;;  %6794 = vmatpush3.xpose.msk.msra.mxu0 %vm174_vm0, %v1933_v54 }
 0x9e9   :  { %6805 = vmatprep.subr.mxu0 %v6069_v39 }
 0xa98   :  { %v7735_v56 = vpop.f32.mrf.mxu1 }
 0xa9a   :  { %v7737_v57 = vpop.f32.mrf.mxu1 }
 0xaa0   :  { %v6768_v58 = vpop.f32.mrf.mxu1 }
 0xaa1   :  { %v1850_v0 = vadd.f32 %v6768_v58, %v6044_v59 }
 0xaa2   :  { %v1844_v62 = vpop.f32.mrf.mxu1 }
 0xaa3   :  { %v1845_v63 = vadd.f32 %v6044_v59, %v1844_v62  ;;  %v1762_v62 = vadd.f32 %v7715_v44, %v7735_v56 }
 0xaa5   :  { %6795 = vmatprep.mubr.msk.f32.mxu0 %vm174_vm0, %v1845_v63 }
 0xaa6   :  { %6796 = vmatmul.mubr.msk.f32.vlgmr.msra.gmra.mxu0 %vm174_vm0, %v1850_v0  ;;  %v1757_v0 = vadd.f32 %v7719_v47, %v7737_v57 }
 0xaa7   :  { %6806 = vmatpush3.msra.mxu0 %v6069_v39 }
 0xaa8   :  { %v6790_v3 = vpop.f32.mrf.mxu1  ;;  %6821 = vmatprep.subr.mxu0 %v6083_v40 }
 0xaa9   :  { %v2026_v4 = vadd.f32 %v6790_v3, %v6060_v1 }
 0xaaa   :  { %v2020_v5 = vpop.f32.mrf.mxu1 }
 0xaab   :  { %v2021_v6 = vadd.f32 %v6060_v1, %v2020_v5  ;;  %6798 = vmatprep.subr.mxu1 %v2026_v4  ;;  %v6085_v5 = vld [vmem:[%s8152_s17 + $0x3] ss:$0 sm:$0xff] }
 0xaac   :  { %6799 = vmatpush3.msra.mxu1 %v2026_v4 }
 0xaad   :  { %6800 = vmatprep.subr.mxu1 %v2021_v6 }
 0xaae   :  { %6801 = vmatpush3.msra.mxu1 %v2021_v6 }
 0xaaf   :  { %6810 = vmatprep.subr.mxu1 %v6075_v23 }
 0xb66   :  { %v6797_v7 = vpop.f32.mrf.mxu0 }
 0xb67   :  { %v2113_v8 = vadd.f32 %v6797_v7, %v7658_v27 }
 0xb68   :  { %v2107_v9 = vpop.f32.mrf.mxu0 }
 0xb69   :  { %v2108_v10 = vadd.f32 %v2107_v9, %v7655_v26  ;;  %v2119_v11 = vsel %vm1042_vm8, %v2113_v8, -inf }
 0xb6a   :  { %2120 = vmax.xlane.f32.xlu1 %v2119_v11 }
 0xb6b   :  { %v2116_v12 = vsel %vm1042_vm8, %v2108_v10, -inf }
 0xb6c   :  { %2117 = vmax.xlane.f32.xlu0 %v2116_v12 }
 0xbf3   :  { %v2121_v13 = vpop.xlane.xlu1 %2120 }
 0xbf4   :  { %v2123_v14 = vsub.f32 %v2113_v8, %v2121_v13 }
 0xbf5   :  { %v2118_v15 = vpop.xlane.xlu0 %2117 }
 0xbf6   :  { %v2126_v16 = vmul.f32 1.442695, %v2123_v14  ;;  %v2122_v17 = vsub.f32 %v2108_v10, %v2118_v15 }
 0xbf8   :  { %7226 = vpow2.f32 %v2126_v16  ;;  %v2124_v18 = vmul.f32 1.442695, %v2122_v17 }
 0xbfa   :  { %7228 = vpow2.f32 %v2124_v18 }
 0xc05   :  { %v7227_v19 = vpop.eup %7226 }
 0xc06   :  { %v2131_v20 = vsel %vm1042_vm8, %v7227_v19, 0.0 }
 0xc07   :  { %v7229_v21 = vpop.eup %7228  ;;  %2132 = vadd.xlane.f32.xlu1 %v2131_v20 }
 0xc08   :  { %v2128_v22 = vsel %vm1042_vm8, %v7229_v21, 0.0 }
 0xc09   :  { %2129 = vadd.xlane.f32.xlu0 %v2128_v22 }
 0xc90   :  { %v2133_v24 = vpop.xlane.xlu1 %2132 }
 0xc91   :  { %7230 = vrcp.f32 %v2133_v24 }
 0xc92   :  { %v2130_v25 = vpop.xlane.xlu0 %2129 }
 0xc93   :  { %7232 = vrcp.f32 %v2130_v25 }
 0xc9e   :  { %v7231_v28 = vpop.eup %7230 }
 0xc9f   :  { %v2137_v31 = vmul.f32 %v7231_v28, %v7227_v19  ;;  %v6102_v28 = vld [vmem:[%s8154_s25 + $0x18] sm:$0xff] }
 0xca0   :  { %v7233_v29 = vpop.eup %7232 }
 0xca1   :  { %v2136_v30 = vmul.f32 %v7233_v29, %v7229_v21 }
 0xca3   :  { %6802 = vmatprep.mubr.msk.f32.mxu1 %vm1042_vm8, %v2136_v30 }
 0xca4   :  { %6803 = vmatmul.mubr.msk.f32.vlgmr.msra.gmra.mxu1 %vm1042_vm8, %v2137_v31 }
 0xca5   :  { %6811 = vmatpush3.msra.mxu1 %v6075_v23  ;;  %6818 = vmatprep.mubr.msk.f32.mxu1 %vm255_vm2, %v7610_v60 }
 0xca6   :  { %6812 = vmatprep.subr.mxu1 %v6074_v32 }
 0xca7   :  { %6813 = vmatpush3.msra.mxu1 %v6074_v32  ;;  %v6105_v32 = vld [vmem:[%s8155_s29] ss:$0 sm:$0xff] }
 0xca8   :  { %6814 = vmatprep.subr.mxu1 %v6073_v33 }
 0xca9   :  { %6815 = vmatpush3.msra.mxu1 %v6073_v33 }
 0xcaa   :  { %6816 = vmatprep.subr.mxu1 %v6072_v34 }
 0xcab   :  { %6817 = vmatpush3.msra.mxu1 %v6072_v34 }
 0xcac   :  { %6819 = vmatmul.mubr.msk.f32.vlgmr.msra.gmra.mxu1 %vm255_vm2, %v7612_v61  ;;  %6832 = vmatprep.subr.mxu1 %v6091_v35 }
 0xcad   :  { %6833 = vmatpush3.msra.mxu1 %v6091_v35  ;;  %6840 = vmatprep.mubr.msk.f32.mxu1 %vm255_vm2, %v7610_v60 }
 0xcae   :  { %6834 = vmatprep.subr.mxu1 %v6090_v36 }
 0xcaf   :  { %6835 = vmatpush3.msra.mxu1 %v6090_v36 }
 0xcb0   :  { %6836 = vmatprep.subr.mxu1 %v6089_v37 }
 0xcb1   :  { %6837 = vmatpush3.msra.mxu1 %v6089_v37 }
 0xcb2   :  { %6838 = vmatprep.subr.mxu1 %v6088_v38 }
 0xcb3   :  { %6839 = vmatpush3.msra.mxu1 %v6088_v38 }
 0xcb4   :  { %6841 = vmatmul.mubr.msk.f32.vlgmr.msra.gmra.mxu1 %vm255_vm2, %v7612_v61 }
 0xd64   :  { %v6804_v41 = vpop.f32.mrf.mxu1 }
 0xd66   :  { %v2210_v42 = vpop.f32.mrf.mxu1 }
 0xd67   :  { %6807 = vmatprep.mubr.msk.f32.mxu0 %vm174_vm0, %v2210_v42 }
 0xd68   :  { %6808 = vmatmul.mubr.msk.f32.vlgmr.msra.gmra.mxu0 %vm174_vm0, %v6804_v41 }
 0xd69   :  { %6822 = vmatpush3.msra.mxu0 %v6083_v40  ;;  %6829 = vmatprep.mubr.msk.f32.mxu0 %vm255_vm2, %v7610_v60 }
 0xd6a   :  { %6823 = vmatprep.subr.mxu0 %v6082_v43 }
 0xd6b   :  { %6824 = vmatpush3.msra.mxu0 %v6082_v43 }
 0xd6c   :  { %v6820_v49 = vpop.f32.mrf.mxu1  ;;  %6825 = vmatprep.subr.mxu0 %v6081_v45 }
 0xd6d   :  { %v2389_v50 = vadd.f32 %v6820_v49, %v6077_v46  ;;  %6826 = vmatpush3.msra.mxu0 %v6081_v45 }
 0xd6e   :  { %v2383_v51 = vpop.f32.mrf.mxu1  ;;  %6827 = vmatprep.subr.mxu0 %v6080_v48 }
 0xd6f   :  { %v2384_v52 = vadd.f32 %v6077_v46, %v2383_v51  ;;  %6828 = vmatpush3.msra.mxu0 %v6080_v48 }
 0xd70   :  { %6830 = vmatmul.mubr.msk.f32.vlgmr.msra.gmra.mxu0 %vm255_vm2, %v7612_v61 }
 0xd71   :  { %6847 = vmatprep.mubr.msk.f32.mxu0 %vm174_vm0, %v2384_v52  ;;  %v2902_v52 = vld [vmem:[%s8156_s14 + $0x18] sm:$0xff] }
 0xd74   :  { %v6842_v54 = vpop.f32.mrf.mxu1 }
 0xd75   :  { %v2565_v55 = vadd.f32 %v6842_v54, %v6093_v53  ;;  %v2900_v54 = vld [vmem:[%s8156_s14 + $0x8] sm:$0xff] }
 0xd76   :  { %v2559_v58 = vpop.f32.mrf.mxu1 }
 0xd77   :  { %v2560_v59 = vadd.f32 %v6093_v53, %v2559_v58  ;;  %6850 = vmatprep.subr.mxu1 %v2565_v55  ;;  %v2901_v53 = vld [vmem:[%s8156_s14 + $0x10] sm:$0xff]  ;;  %v3000_v58 = vld [vmem:[%s8157_s19 + $0x38] sm:$0xff] }
 0xd78   :  { %6851 = vmatpush3.msra.mxu1 %v2565_v55  ;;  %v2899_v55 = vld [vmem:[%s8156_s14] sm:$0xff] }
 0xd79   :  { %6852 = vmatprep.subr.mxu1 %v2560_v59 }
 0xd7a   :  { %6853 = vmatpush3.msra.mxu1 %v2560_v59  ;;  %v2999_v59 = vld [vmem:[%s8157_s19 + $0x30] sm:$0xff] }
 0xd7b   :  { %6862 = vmatprep.subr.mxu1 %v2902_v52 }
 0xe28   :  { %v6809_v63 = vpop.f32.mrf.mxu0 }
 0xe29   :  { %v2303_v1 = vadd.f32 %v6809_v63, %v1762_v62  ;;  %v2998_v62 = vld [vmem:[%s8157_s19 + $0x28] sm:$0xff]  ;;  %v2997_v63 = vld [vmem:[%s8157_s19 + $0x20] sm:$0xff] }
 0xe2a   :  { %v2293_v3 = vpop.f32.mrf.mxu0 }
 0xe2b   :  { %v2302_v4 = vadd.f32 %v2293_v3, %v1757_v0 }
 0xe30   :  { %v6831_v6 = vpop.f32.mrf.mxu0 }
 0xe31   :  { %v2477_v7 = vadd.f32 %v6831_v6, %v6085_v5 }
 0xe32   :  { %v2471_v8 = vpop.f32.mrf.mxu0 }
 0xe33   :  { %v2472_v9 = vadd.f32 %v6085_v5, %v2471_v8  ;;  %6843 = vmatprep.subr.msk.mxu0 %vm174_vm0, %v2477_v7  ;;  %v6106_v8 = vld [vmem:[%s8158_s24] ss:$0 sm:$0xff] }
 0xe34   :  { %6844 = vmatpush3.xpose.msk.msra.mxu0 %vm174_vm0, %v2477_v7 }
 0xe35   :  { %6845 = vmatprep.subr.msk.mxu0 %vm174_vm0, %v2472_v9 }
 0xe38   :  { %6846 = vmatpush3.xpose.msk.msra.mxu0 %vm174_vm0, %v2472_v9 }
 0xe39   :  { %6857 = vmatprep.subr.mxu0 %v6102_v28 }
 0xe3b   :  { %6848 = vmatmul.mubr.msk.f32.vlgmr.msra.gmra.mxu0 %vm174_vm0, %v2389_v50 }
 0xe3c   :  { %6858 = vmatpush3.msra.mxu0 %v6102_v28 }
 0xe3d   :  { %6873 = vmatprep.subr.mxu0 %v3000_v58 }
 0xefb   :  { %v6849_v44 = vpop.f32.mrf.mxu0 }
 0xefc   :  { %v2652_v47 = vadd.f32 %v6849_v44, %v7658_v27 }
 0xefd   :  { %v2646_v56 = vpop.f32.mrf.mxu0 }
 0xefe   :  { %v2647_v57 = vadd.f32 %v2646_v56, %v7655_v26  ;;  %v2658_v10 = vsel %vm1042_vm8, %v2652_v47, -inf }
 0xeff   :  { %2659 = vmax.xlane.f32.xlu1 %v2658_v10 }
 0xf00   :  { %v2655_v11 = vsel %vm1042_vm8, %v2647_v57, -inf }
 0xf01   :  { %2656 = vmax.xlane.f32.xlu0 %v2655_v11 }
 0xf88   :  { %v2660_v12 = vpop.xlane.xlu1 %2659 }
 0xf89   :  { %v2662_v13 = vsub.f32 %v2652_v47, %v2660_v12 }
 0xf8a   :  { %v2657_v14 = vpop.xlane.xlu0 %2656 }
 0xf8b   :  { %v2665_v15 = vmul.f32 1.442695, %v2662_v13  ;;  %v2661_v16 = vsub.f32 %v2647_v57, %v2657_v14  ;;  %v6107_v57 = vld [vmem:[%s8159_s30] ss:$0 sm:$0xff]  ;;  %v2996_v13 = vld [vmem:[%s8157_s19 + $0x18] sm:$0xff]  ;;  %v2995_v14 = vld [vmem:[%s8157_s19 + $0x10] sm:$0xff] }
 0xf8d   :  { %7234 = vpow2.f32 %v2665_v15  ;;  %v2663_v17 = vmul.f32 1.442695, %v2661_v16  ;;  %v2994_v15 = vld [vmem:[%s8157_s19 + $0x8] sm:$0xff]  ;;  %v2993_v16 = vld [vmem:[%s8157_s19] sm:$0xff] }
 0xf8f   :  { %7236 = vpow2.f32 %v2663_v17  ;;  %v6108_v17 = vld [vmem:[%s8160_s6] ss:$0 sm:$0xff] }
 0xf9a   :  { %v7235_v18 = vpop.eup %7234 }
 0xf9b   :  { %v2670_v27 = vsel %vm1042_vm8, %v7235_v18, 0.0 }
 0xf9c   :  { %v7237_v19 = vpop.eup %7236  ;;  %2671 = vadd.xlane.f32.xlu1 %v2670_v27 }
 0xf9d   :  { %v2667_v26 = vsel %vm1042_vm8, %v7237_v19, 0.0 }
 0xf9e   :  { %2668 = vadd.xlane.f32.xlu0 %v2667_v26 }
0x1025   :  { %v2672_v20 = vpop.xlane.xlu1 %2671 }
0x1026   :  { %7238 = vrcp.f32 %v2672_v20 }
0x1027   :  { %v2669_v21 = vpop.xlane.xlu0 %2668 }
0x1028   :  { %7240 = vrcp.f32 %v2669_v21 }
0x1033   :  { %v7239_v22 = vpop.eup %7238 }
0x1034   :  { %v2676_v25 = vmul.f32 %v7239_v22, %v7235_v18  ;;  %v6111_v22 = vld [vmem:[%s8161_s12] ss:$0 sm:$0xff] }
0x1035   :  { %v7241_v23 = vpop.eup %7240 }
0x1036   :  { %v2675_v24 = vmul.f32 %v7241_v23, %v7237_v19 }
0x1038   :  { %6854 = vmatprep.mubr.msk.f32.mxu1 %vm1042_vm8, %v2675_v24 }
0x1039   :  { %6855 = vmatmul.mubr.msk.f32.vlgmr.msra.gmra.mxu1 %vm1042_vm8, %v2676_v25 }
0x103a   :  { %6863 = vmatpush3.msra.mxu1 %v2902_v52 }
0x103b   :  { %6864 = vmatprep.subr.mxu1 %v2901_v53 }
0x103c   :  { %6865 = vmatpush3.msra.mxu1 %v2901_v53 }
0x103d   :  { %6866 = vmatprep.subr.mxu1 %v2900_v54 }
0x103e   :  { %6867 = vmatpush3.msra.mxu1 %v2900_v54 }
0x103f   :  { %6868 = vmatprep.subr.mxu1 %v2899_v55 }
0x1040   :  { %6869 = vmatpush3.msra.mxu1 %v2899_v55 }
0x10f9   :  { %v6856_v29 = vpop.f32.mrf.mxu1 }
0x10fb   :  { %v2749_v30 = vpop.f32.mrf.mxu1 }
0x10fc   :  { %6859 = vmatprep.mubr.msk.f32.mxu0 %vm174_vm0, %v2749_v30 }
0x10fd   :  { %6860 = vmatmul.mubr.msk.f32.vlgmr.msra.gmra.mxu0 %vm174_vm0, %v6856_v29 }
0x10fe   :  { %6874 = vmatpush3.msra.mxu0 %v3000_v58 }
0x10ff   :  { %6875 = vmatprep.subr.mxu0 %v2999_v59 }
0x1100   :  { %6876 = vmatpush3.msra.mxu0 %v2999_v59 }
0x1101   :  { %6877 = vmatprep.subr.mxu0 %v2998_v62 }
0x1102   :  { %6878 = vmatpush3.msra.mxu0 %v2998_v62 }
0x1103   :  { %6879 = vmatprep.subr.mxu0 %v2997_v63 }
0x1104   :  { %6880 = vmatpush3.msra.mxu0 %v2997_v63  ;;  %v6114_v63 = vld [vmem:[%s8162_s7] ss:$0 sm:$0xff] }
0x1105   :  { %6881 = vmatprep.subr.mxu0 %v2996_v13 }
0x1106   :  { %6882 = vmatpush3.msra.mxu0 %v2996_v13 }
0x1107   :  { %6883 = vmatprep.subr.mxu0 %v2995_v14 }
0x1108   :  { %6884 = vmatpush3.msra.mxu0 %v2995_v14 }
0x1109   :  { %6885 = vmatprep.subr.mxu0 %v2994_v15 }
0x110a   :  { %6886 = vmatpush3.msra.mxu0 %v2994_v15 }
0x110b   :  { %6887 = vmatprep.subr.mxu0 %v2993_v16 }
0x110c   :  { %6888 = vmatpush3.msra.mxu0 %v2993_v16 }
0x11bd   :  { %v6861_v31 = vpop.f32.mrf.mxu0 }
0x11be   :  { %v2842_v33 = vadd.f32 %v6861_v31, %v2303_v1 }
0x11bf   :  { %v2832_v34 = vpop.f32.mrf.mxu0 }
0x11c0   :  { %v2851_v35 = vadd.f32 %v6105_v32, %v2842_v33  ;;  %v2841_v36 = vadd.f32 %v2832_v34, %v2302_v4 }
0x11c2   :  { %v2850_v37 = vadd.f32 %v6105_v32, %v2841_v36  ;;  %v2853_v38 = vadd.f32 %v2851_v35, %v7612_v61 }
0x11c4   :  { %v2859_v39 = vsel %vm255_vm2, %v2853_v38, 0.0  ;;  %v2852_v40 = vadd.f32 %v2850_v37, %v7610_v60 }
0x11c5   :  { %2860 = vadd.xlane.f32.xlu1 %v2859_v39 }
0x11c6   :  { %v2856_v41 = vsel %vm255_vm2, %v2852_v40, 0.0 }
0x11c7   :  { %2857 = vadd.xlane.f32.xlu0 %v2856_v41 }
0x124e   :  { %v2861_v42 = vpop.xlane.xlu1 %2860 }
0x124f   :  { %v2864_v43 = vmul.f32 0.03125, %v2861_v42 }
0x1250   :  { %v2858_v45 = vpop.xlane.xlu0 %2857 }
0x1251   :  { %v2866_v46 = vsub.f32 %v2853_v38, %v2864_v43  ;;  %v2863_v48 = vmul.f32 0.03125, %v2858_v45  ;;  %v6119_v43 = vld [vmem:[%s7437_s20 + $0x98] sm:$0xff] }
0x1252   :  { %6892 = vmatprep.subr.mxu1 %v6119_v43  ;;  %v6135_v45 = vld [vmem:[%s8148_s0 + $0x98] sm:$0xff] }
0x1253   :  { %v2865_v49 = vsub.f32 %v2852_v40, %v2863_v48  ;;  %v2868_v50 = vmul.f32 %v2866_v46, %v2866_v46  ;;  %6914 = vmatprep.subr.mxu0 %v6135_v45  ;;  %v6134_v48 = vld [vmem:[%s8148_s0 + $0x90] sm:$0xff] }
0x1255   :  { %v2872_v61 = vsel %vm255_vm2, %v2868_v50, 0.0  ;;  %v2867_v51 = vmul.f32 %v2865_v49, %v2865_v49  ;;  %v6133_v50 = vld [vmem:[%s8148_s0 + $0x88] sm:$0xff] }
0x1256   :  { %2873 = vadd.xlane.f32.xlu1 %v2872_v61  ;;  %v6116_v61 = vld [vmem:[%s7437_s20 + $0x80] sm:$0xff] }
0x1257   :  { %v2869_v60 = vsel %vm255_vm2, %v2867_v51, 0.0  ;;  %v6132_v51 = vld [vmem:[%s8148_s0 + $0x80] sm:$0xff] }
0x1258   :  { %2870 = vadd.xlane.f32.xlu0 %v2869_v60  ;;  %v6127_v60 = vld [vmem:[%s8149_s5 + $0x98] sm:$0xff] }
0x12df   :  { %v2874_v0 = vpop.xlane.xlu1 %2873 }
0x12e0   :  { %v2876_v1 = vmul.f32 0.03125, %v2874_v0 }
0x12e1   :  { %v2871_v3 = vpop.xlane.xlu0 %2870 }
0x12e2   :  { %v2878_v4 = vadd.f32 1e-05, %v2876_v1  ;;  %v2875_v5 = vmul.f32 0.03125, %v2871_v3 }
0x12e4   :  { %7242 = vrsqrt.f32 %v2878_v4  ;;  %v2877_v6 = vadd.f32 1e-05, %v2875_v5  ;;  %v6115_v5 = vld [vmem:[%s8163_s10] ss:$0 sm:$0xff] }
0x12e6   :  { %7244 = vrsqrt.f32 %v2877_v6 }
0x12f1   :  { %v7243_v7 = vpop.eup %7242 }
0x12f2   :  { %v2882_v9 = vmul.f32 %v7243_v7, %v2866_v46  ;;  %v6118_v46 = vld [vmem:[%s7437_s20 + $0x90] sm:$0xff] }
0x12f3   :  { %v7245_v44 = vpop.eup %7244 }
0x12f4   :  { %v2881_v47 = vmul.f32 %v7245_v44, %v2865_v49  ;;  %v2890_v56 = vmul.f32 %v6106_v8, %v2882_v9  ;;  %v6117_v49 = vld [vmem:[%s7437_s20 + $0x88] sm:$0xff]  ;;  %v6126_v9 = vld [vmem:[%s8149_s5 + $0x90] sm:$0xff] }
0x12f5   :  { %v6125_v44 = vld [vmem:[%s8149_s5 + $0x88] sm:$0xff] }
0x12f6   :  { %v2889_v10 = vmul.f32 %v6106_v8, %v2881_v47  ;;  %v2898_v12 = vadd.f32 %v6107_v57, %v2890_v56  ;;  %v6124_v47 = vld [vmem:[%s8149_s5 + $0x80] sm:$0xff] }
0x12f7   :  { %v6137_v56 = vld [vmem:[%s8150_s9 + $0x4] ss:$0 sm:$0xff] }
0x12f8   :  { %v2897_v11 = vadd.f32 %v6107_v57, %v2889_v10 }
0x12fa   :  { %6870 = vmatprep.mubr.msk.f32.mxu1 %vm255_vm2, %v2897_v11 }
0x12fb   :  { %6871 = vmatmul.mubr.msk.f32.vlgmr.msra.gmra.mxu1 %vm255_vm2, %v2898_v12 }
0x12fc   :  { %6893 = vmatpush3.msra.mxu1 %v6119_v43 }
0x12fd   :  { %6894 = vmatprep.subr.mxu1 %v6118_v46 }
0x12fe   :  { %6895 = vmatpush3.msra.mxu1 %v6118_v46 }
0x12ff   :  { %6896 = vmatprep.subr.mxu1 %v6117_v49 }
0x1300   :  { %6897 = vmatpush3.msra.mxu1 %v6117_v49 }
0x1301   :  { %6898 = vmatprep.subr.mxu1 %v6116_v61 }
0x1302   :  { %6899 = vmatpush3.msra.mxu1 %v6116_v61 }
0x1303   :  { %6903 = vmatprep.subr.mxu1 %v6127_v60 }
0x13bb   :  { %v6872_v18 = vpop.f32.mrf.mxu1 }
0x13bc   :  { %v2988_v27 = vadd.f32 %v6872_v18, %v6108_v17 }
0x13bd   :  { %v2982_v19 = vpop.f32.mrf.mxu1 }
0x13be   :  { %v2983_v26 = vadd.f32 %v6108_v17, %v2982_v19  ;;  %v2992_v21 = vmax.f32 %v2988_v27, 0.0  ;;  %v6129_v17 = vld [vmem:[%s8152_s17 + $0x4] ss:$0 sm:$0xff] }
0x13c0   :  { %v2991_v20 = vmax.f32 %v2983_v26, 0.0 }
0x13c2   :  { %6889 = vmatprep.mubr.msk.f32.mxu0 %vm605_vm7, %v2991_v20  ;;  %v6158_v20 = vld [vmem:[%s8149_s5 + $0xb8] sm:$0xff] }
0x13c3   :  { %6890 = vmatmul.mubr.msk.f32.vlgmr.msra.gmra.mxu0 %vm605_vm7, %v2992_v21 }
0x13c4   :  { %6915 = vmatpush3.msra.mxu0 %v6135_v45 }
0x13c5   :  { %6916 = vmatprep.subr.mxu0 %v6134_v48 }
0x13c6   :  { %6917 = vmatpush3.msra.mxu0 %v6134_v48 }
0x13c7   :  { %6918 = vmatprep.subr.mxu0 %v6133_v50 }
0x13c8   :  { %6919 = vmatpush3.msra.mxu0 %v6133_v50 }
0x13c9   :  { %6920 = vmatprep.subr.mxu0 %v6132_v51 }
0x13ca   :  { %6921 = vmatpush3.msra.mxu0 %v6132_v51  ;;  %v6150_v51 = vld [vmem:[%s7437_s20 + $0xb8] sm:$0xff] }
0x1483   :  { %v6891_v23 = vpop.f32.mrf.mxu0 }
0x1484   :  { %v3086_v24 = vadd.f32 %v6891_v23, %v6111_v22  ;;  %v6156_v23 = vld [vmem:[%s8149_s5 + $0xa8] sm:$0xff] }
0x1485   :  { %v3080_v25 = vpop.f32.mrf.mxu0 }
0x1486   :  { %v3081_v28 = vadd.f32 %v6111_v22, %v3080_v25  ;;  %v3090_v29 = vadd.f32 %v3086_v24, %v2898_v12  ;;  %v6121_v12 = vld [vmem:[%s8151_s13 + $0x4] ss:$0 sm:$0xff]  ;;  %v6157_v22 = vld [vmem:[%s8149_s5 + $0xb0] sm:$0xff] }
0x1487   :  { %v6155_v24 = vld [vmem:[%s8149_s5 + $0xa0] sm:$0xff] }
0x1488   :  { %v3096_v30 = vsel %vm255_vm2, %v3090_v29, 0.0  ;;  %v3089_v31 = vadd.f32 %v3081_v28, %v2897_v11  ;;  %v7881_v28 = vld [vmem:[%s8153_s21 + $0x8] sm:$0xff] }
0x1489   :  { %3097 = vadd.xlane.f32.xlu1 %v3096_v30 }
0x148a   :  { %v3093_v32 = vsel %vm255_vm2, %v3089_v31, 0.0 }
0x148b   :  { %3094 = vadd.xlane.f32.xlu0 %v3093_v32 }
0x1512   :  { %v3098_v33 = vpop.xlane.xlu1 %3097 }
0x1513   :  { %v3100_v34 = vmul.f32 0.03125, %v3098_v33 }
0x1514   :  { %v3095_v35 = vpop.xlane.xlu0 %3094 }
0x1515   :  { %v3102_v36 = vsub.f32 %v3090_v29, %v3100_v34  ;;  %v3099_v37 = vmul.f32 0.03125, %v3095_v35  ;;  %v6160_v35 = vld [vmem:[%s8152_s17 + $0x5] ss:$0 sm:$0xff] }
0x1517   :  { %v3101_v38 = vsub.f32 %v3089_v31, %v3099_v37  ;;  %v3104_v39 = vmul.f32 %v3102_v36, %v3102_v36  ;;  %v7885_v31 = vld [vmem:[%s8153_s21] sm:$0xff] }
0x1519   :  { %v3108_v40 = vsel %vm255_vm2, %v3104_v39, 0.0  ;;  %v3103_v41 = vmul.f32 %v3101_v38, %v3101_v38 }
0x151a   :  { %3109 = vadd.xlane.f32.xlu1 %v3108_v40 }
0x151b   :  { %v3105_v42 = vsel %vm255_vm2, %v3103_v41, 0.0 }
0x151c   :  { %3106 = vadd.xlane.f32.xlu0 %v3105_v42 }
0x15a3   :  { %v3110_v52 = vpop.xlane.xlu1 %3109 }
0x15a4   :  { %v3112_v53 = vmul.f32 0.03125, %v3110_v52 }
0x15a5   :  { %v3107_v54 = vpop.xlane.xlu0 %3106 }
0x15a6   :  { %v3114_v55 = vadd.f32 1e-05, %v3112_v53  ;;  %v3111_v58 = vmul.f32 0.03125, %v3107_v54 }
0x15a8   :  { %7246 = vrsqrt.f32 %v3114_v55  ;;  %v3113_v59 = vadd.f32 1e-05, %v3111_v58 }
0x15aa   :  { %7248 = vrsqrt.f32 %v3113_v59  ;;  %v6149_v59 = vld [vmem:[%s7437_s20 + $0xb0] sm:$0xff] }
0x15b5   :  { %v7247_v62 = vpop.eup %7246 }
0x15b6   :  { %v3118_v0 = vmul.f32 %v7247_v62, %v3102_v36  ;;  %v6148_v62 = vld [vmem:[%s7437_s20 + $0xa8] sm:$0xff] }
0x15b7   :  { %v7249_v1 = vpop.eup %7248 }
0x15b8   :  { %v3117_v3 = vmul.f32 %v7249_v1, %v3101_v38  ;;  %v3126_v4 = vmul.f32 %v6114_v63, %v3118_v0  ;;  %v6166_v0 = vld [vmem:[%s8148_s0 + $0xb8] sm:$0xff]  ;;  %v6165_v1 = vld [vmem:[%s8148_s0 + $0xb0] sm:$0xff] }
0x15ba   :  { %v3125_v6 = vmul.f32 %v6114_v63, %v3117_v3  ;;  %v7846_v8 = vadd.f32 %v6115_v5, %v3126_v4  ;;  %v6147_v63 = vld [vmem:[%s7437_s20 + $0xa0] sm:$0xff]  ;;  %v6164_v3 = vld [vmem:[%s8148_s0 + $0xa8] sm:$0xff] }
0x15bb   :  { %v6163_v4 = vld [vmem:[%s8148_s0 + $0xa0] sm:$0xff] }
0x15bc   :  { %v7844_v7 = vadd.f32 %v6115_v5, %v3125_v6 }
0x15be   :  { %6900 = vmatprep.mubr.msk.f32.mxu1 %vm255_vm2, %v7844_v7  ;;  %6922 = vmatprep.mubr.msk.f32.mxu0 %vm255_vm2, %v7844_v7 }
0x15bf   :  { %6901 = vmatmul.mubr.msk.f32.vlgmr.msra.gmra.mxu1 %vm255_vm2, %v7846_v8  ;;  %6923 = vmatmul.mubr.msk.f32.vlgmr.msra.gmra.mxu0 %vm255_vm2, %v7846_v8 }
0x15c0   :  { %6904 = vmatpush3.msra.mxu1 %v6127_v60  ;;  %6911 = vmatprep.mubr.msk.f32.mxu1 %vm255_vm2, %v7844_v7 }
0x15c1   :  { %6905 = vmatprep.subr.mxu1 %v6126_v9 }
0x15c2   :  { %6906 = vmatpush3.msra.mxu1 %v6126_v9 }
0x15c3   :  { %6907 = vmatprep.subr.mxu1 %v6125_v44 }
0x15c4   :  { %6908 = vmatpush3.msra.mxu1 %v6125_v44  ;;  %v6152_v44 = vld [vmem:[%s8151_s13 + $0x5] ss:$0 sm:$0xff] }
0x15c5   :  { %6909 = vmatprep.subr.mxu1 %v6124_v47 }
0x15c6   :  { %6910 = vmatpush3.msra.mxu1 %v6124_v47 }
0x15c7   :  { %6912 = vmatmul.mubr.msk.f32.vlgmr.msra.gmra.mxu1 %vm255_vm2, %v7846_v8 }
0x167f   :  { %v6902_v57 = vpop.f32.mrf.mxu1  ;;  %v6924_v10 = vpop.f32.mrf.mxu0 }
0x1680   :  { %v3402_v11 = vadd.f32 %v6924_v10, %v6137_v56  ;;  %v3226_v21 = vadd.f32 %v6902_v57, %v6121_v12  ;;  %v6168_v10 = vld [vmem:[%s8150_s9 + $0x5] ss:$0 sm:$0xff] }
0x1681   :  { %v3220_v13 = vpop.f32.mrf.mxu1  ;;  %v3396_v14 = vpop.f32.mrf.mxu0 }
0x1682   :  { %v3221_v15 = vadd.f32 %v6121_v12, %v3220_v13  ;;  %v3397_v16 = vadd.f32 %v6137_v56, %v3396_v14  ;;  %6932 = vmatprep.subr.mxu0 %v3402_v11 }
0x1683   :  { %6933 = vmatpush3.msra.mxu0 %v3402_v11 }
0x1684   :  { %6929 = vmatprep.mubr.msk.f32.mxu1 %vm174_vm0, %v3221_v15  ;;  %6934 = vmatprep.subr.mxu0 %v3397_v16 }
0x1685   :  { %6935 = vmatpush3.msra.mxu0 %v3397_v16 }
0x1686   :  { %6939 = vmatprep.subr.mxu0 %v6150_v51 }
0x1687   :  { %v6913_v18 = vpop.f32.mrf.mxu1 }
0x1688   :  { %v3314_v27 = vadd.f32 %v6913_v18, %v6129_v17 }
0x1689   :  { %v3308_v19 = vpop.f32.mrf.mxu1 }
0x168a   :  { %v3309_v26 = vadd.f32 %v6129_v17, %v3308_v19  ;;  %6925 = vmatprep.subr.msk.mxu1 %vm174_vm0, %v3314_v27 }
0x168b   :  { %6926 = vmatpush3.xpose.msk.msra.mxu1 %vm174_vm0, %v3314_v27 }
0x168c   :  { %6927 = vmatprep.subr.msk.mxu1 %vm174_vm0, %v3309_v26 }
0x168f   :  { %6928 = vmatpush3.xpose.msk.msra.mxu1 %vm174_vm0, %v3309_v26 }
0x1690   :  { %6950 = vmatprep.subr.mxu1 %v6158_v20 }
0x1692   :  { %6930 = vmatmul.mubr.msk.f32.vlgmr.msra.gmra.mxu1 %vm174_vm0, %v3226_v21 }
0x1693   :  { %6951 = vmatpush3.msra.mxu1 %v6158_v20  ;;  %6958 = vmatprep.mubr.msk.f32.mxu1 %vm255_vm2, %v7844_v7 }
0x1694   :  { %6952 = vmatprep.subr.mxu1 %v6157_v22 }
0x1695   :  { %6953 = vmatpush3.msra.mxu1 %v6157_v22 }
0x1696   :  { %6954 = vmatprep.subr.mxu1 %v6156_v23 }
0x1697   :  { %6955 = vmatpush3.msra.mxu1 %v6156_v23 }
0x1698   :  { %6956 = vmatprep.subr.mxu1 %v6155_v24 }
0x1699   :  { %6957 = vmatpush3.msra.mxu1 %v6155_v24 }
0x169a   :  { %6959 = vmatmul.mubr.msk.f32.vlgmr.msra.gmra.mxu1 %vm255_vm2, %v7846_v8 }
0x1752   :  { %v6931_v25 = vpop.f32.mrf.mxu1 }
0x1753   :  { %v3489_v29 = vadd.f32 %v7881_v28, %v6931_v25 }
0x1754   :  { %v3483_v30 = vpop.f32.mrf.mxu1 }
0x1755   :  { %v3484_v32 = vadd.f32 %v7885_v31, %v3483_v30  ;;  %v3495_v33 = vsel %vm1042_vm8, %v3489_v29, -inf }
0x1756   :  { %3496 = vmax.xlane.f32.xlu1 %v3495_v33  ;;  %v6146_v33 = vld [vmem:[%s8154_s25 + $0x20] sm:$0xff] }
0x1757   :  { %v3492_v34 = vsel %vm1042_vm8, %v3484_v32, -inf }
0x1758   :  { %3493 = vmax.xlane.f32.xlu0 %v3492_v34 }
0x175a   :  { %v6960_v36 = vpop.f32.mrf.mxu1 }
0x175b   :  { %v3770_v37 = vadd.f32 %v6960_v36, %v6160_v35 }
0x175c   :  { %v3764_v38 = vpop.f32.mrf.mxu1 }
0x175d   :  { %v3765_v39 = vadd.f32 %v6160_v35, %v3764_v38  ;;  %6972 = vmatprep.subr.msk.mxu1 %vm174_vm0, %v3770_v37 }
0x175e   :  { %6973 = vmatpush3.xpose.msk.msra.mxu1 %vm174_vm0, %v3770_v37 }
0x175f   :  { %6974 = vmatprep.subr.msk.mxu1 %vm174_vm0, %v3765_v39 }
0x1762   :  { %6975 = vmatpush3.xpose.msk.msra.mxu1 %vm174_vm0, %v3765_v39 }
0x17df   :  { %v3497_v40 = vpop.xlane.xlu1 %3496 }
0x17e0   :  { %v3499_v41 = vsub.f32 %v3489_v29, %v3497_v40  ;;  %v6193_v40 = vld [vmem:[%s8149_s5 + $0xd8] sm:$0xff] }
0x17e1   :  { %v3494_v42 = vpop.xlane.xlu0 %3493 }
0x17e2   :  { %v3502_v43 = vmul.f32 1.442695, %v3499_v41  ;;  %v3498_v45 = vsub.f32 %v3484_v32, %v3494_v42  ;;  %v6192_v41 = vld [vmem:[%s8149_s5 + $0xd0] sm:$0xff]  ;;  %v6191_v42 = vld [vmem:[%s8149_s5 + $0xc8] sm:$0xff] }
0x17e4   :  { %7250 = vpow2.f32 %v3502_v43  ;;  %v3500_v46 = vmul.f32 1.442695, %v3498_v45  ;;  %v6190_v43 = vld [vmem:[%s8149_s5 + $0xc0] sm:$0xff]  ;;  %v6177_v45 = vld [vmem:[%s8154_s25 + $0x28] sm:$0xff] }
0x17e5   :  { %6986 = vmatprep.subr.mxu1 %v6177_v45 }
0x17e6   :  { %7252 = vpow2.f32 %v3500_v46  ;;  %v6185_v46 = vld [vmem:[%s7437_s20 + $0xd8] sm:$0xff] }
0x17f1   :  { %v7251_v48 = vpop.eup %7250 }
0x17f2   :  { %v3507_v49 = vsel %vm1042_vm8, %v7251_v48, 0.0 }
0x17f3   :  { %v7253_v50 = vpop.eup %7252  ;;  %3508 = vadd.xlane.f32.xlu1 %v3507_v49 }
0x17f4   :  { %v3504_v61 = vsel %vm1042_vm8, %v7253_v50, 0.0 }
0x17f5   :  { %3505 = vadd.xlane.f32.xlu0 %v3504_v61  ;;  %v6183_v61 = vld [vmem:[%s7437_s20 + $0xc8] sm:$0xff] }
0x187c   :  { %v3509_v60 = vpop.xlane.xlu1 %3508 }
0x187d   :  { %7254 = vrcp.f32 %v3509_v60  ;;  %v6182_v60 = vld [vmem:[%s7437_s20 + $0xc0] sm:$0xff] }
0x187e   :  { %v3506_v52 = vpop.xlane.xlu0 %3505 }
0x187f   :  { %7256 = vrcp.f32 %v3506_v52  ;;  %v6201_v52 = vld [vmem:[%s8148_s0 + $0xd8] sm:$0xff] }
0x188a   :  { %v7255_v53 = vpop.eup %7254 }
0x188b   :  { %v3513_v58 = vmul.f32 %v7255_v53, %v7251_v48 }
0x188c   :  { %v7257_v54 = vpop.eup %7256 }
0x188d   :  { %v3512_v55 = vmul.f32 %v7257_v54, %v7253_v50  ;;  %v6184_v50 = vld [vmem:[%s7437_s20 + $0xd0] sm:$0xff]  ;;  %v6195_v54 = vld [vmem:[%s8152_s17 + $0x6] ss:$0 sm:$0xff] }
0x188f   :  { %6936 = vmatprep.mubr.msk.f32.mxu0 %vm1042_vm8, %v3512_v55  ;;  %v6200_v55 = vld [vmem:[%s8148_s0 + $0xd0] sm:$0xff] }
0x1890   :  { %6937 = vmatmul.mubr.msk.f32.vlgmr.msra.gmra.mxu0 %vm1042_vm8, %v3513_v58 }
0x1891   :  { %6940 = vmatpush3.msra.mxu0 %v6150_v51  ;;  %6947 = vmatprep.mubr.msk.f32.mxu0 %vm255_vm2, %v7844_v7 }
0x1892   :  { %6941 = vmatprep.subr.mxu0 %v6149_v59 }
0x1893   :  { %6942 = vmatpush3.msra.mxu0 %v6149_v59 }
0x1894   :  { %6943 = vmatprep.subr.mxu0 %v6148_v62 }
0x1895   :  { %6944 = vmatpush3.msra.mxu0 %v6148_v62  ;;  %v6199_v62 = vld [vmem:[%s8148_s0 + $0xc8] sm:$0xff] }
0x1896   :  { %6945 = vmatprep.subr.mxu0 %v6147_v63 }
0x1897   :  { %6946 = vmatpush3.msra.mxu0 %v6147_v63 }
0x1898   :  { %6948 = vmatmul.mubr.msk.f32.vlgmr.msra.gmra.mxu0 %vm255_vm2, %v7846_v8  ;;  %6961 = vmatprep.subr.mxu0 %v6166_v0 }
0x1899   :  { %6962 = vmatpush3.msra.mxu0 %v6166_v0  ;;  %6969 = vmatprep.mubr.msk.f32.mxu0 %vm255_vm2, %v7844_v7 }
0x189a   :  { %6963 = vmatprep.subr.mxu0 %v6165_v1 }
0x189b   :  { %6964 = vmatpush3.msra.mxu0 %v6165_v1  ;;  %v6198_v1 = vld [vmem:[%s8148_s0 + $0xc0] sm:$0xff] }
0x189c   :  { %6965 = vmatprep.subr.mxu0 %v6164_v3 }
0x189d   :  { %6966 = vmatpush3.msra.mxu0 %v6164_v3 }
0x189e   :  { %6967 = vmatprep.subr.mxu0 %v6163_v4 }
0x189f   :  { %6968 = vmatpush3.msra.mxu0 %v6163_v4 }
0x18a0   :  { %6970 = vmatmul.mubr.msk.f32.vlgmr.msra.gmra.mxu0 %vm255_vm2, %v7846_v8 }
0x1950   :  { %v6938_v5 = vpop.f32.mrf.mxu0 }
0x1952   :  { %v3586_v6 = vpop.f32.mrf.mxu0 }
0x1958   :  { %v6949_v9 = vpop.f32.mrf.mxu0 }
0x1959   :  { %v3682_v57 = vadd.f32 %v6949_v9, %v6152_v44 }
0x195a   :  { %v3676_v47 = vpop.f32.mrf.mxu0 }
0x195b   :  { %v3677_v56 = vadd.f32 %v6152_v44, %v3676_v47 }
0x195d   :  { %6976 = vmatprep.mubr.msk.f32.mxu1 %vm174_vm0, %v3677_v56  ;;  %v6203_v56 = vld [vmem:[%s8150_s9 + $0x6] ss:$0 sm:$0xff] }
0x195e   :  { %6977 = vmatmul.mubr.msk.f32.vlgmr.msra.gmra.mxu1 %vm174_vm0, %v3682_v57 }
0x195f   :  { %6987 = vmatpush3.msra.mxu1 %v6177_v45  ;;  %v6231_v45 = vld [vmem:[%s8148_s0 + $0xe0] sm:$0xff] }
0x1960   :  { %v6971_v11 = vpop.f32.mrf.mxu0  ;;  %6996 = vmatprep.subr.mxu1 %v6185_v46 }
0x1961   :  { %v3858_v12 = vadd.f32 %v6971_v11, %v6168_v10 }
0x1962   :  { %v3852_v13 = vpop.f32.mrf.mxu0 }
0x1963   :  { %v3853_v14 = vadd.f32 %v6168_v10, %v3852_v13  ;;  %6979 = vmatprep.subr.mxu0 %v3858_v12 }
0x1964   :  { %6980 = vmatpush3.msra.mxu0 %v3858_v12 }
0x1965   :  { %6981 = vmatprep.subr.mxu0 %v3853_v14 }
0x1966   :  { %6982 = vmatpush3.msra.mxu0 %v3853_v14 }
0x1967   :  { %6991 = vmatprep.subr.mxu0 %v6146_v33 }
0x1a1e   :  { %v6978_v15 = vpop.f32.mrf.mxu1 }
0x1a1f   :  { %v3945_v16 = vadd.f32 %v7881_v28, %v6978_v15 }
0x1a20   :  { %v3939_v17 = vpop.f32.mrf.mxu1 }
0x1a21   :  { %v3940_v18 = vadd.f32 %v7885_v31, %v3939_v17  ;;  %v3951_v27 = vsel %vm1042_vm8, %v3945_v16, -inf }
0x1a22   :  { %3952 = vmax.xlane.f32.xlu1 %v3951_v27 }
0x1a23   :  { %v3948_v19 = vsel %vm1042_vm8, %v3940_v18, -inf }
0x1a24   :  { %3949 = vmax.xlane.f32.xlu0 %v3948_v19 }
0x1aab   :  { %v3953_v26 = vpop.xlane.xlu1 %3952 }
0x1aac   :  { %v3955_v20 = vsub.f32 %v3945_v16, %v3953_v26 }
0x1aad   :  { %v3950_v21 = vpop.xlane.xlu0 %3949 }
0x1aae   :  { %v3958_v22 = vmul.f32 1.442695, %v3955_v20  ;;  %v3954_v23 = vsub.f32 %v3940_v18, %v3950_v21 }
0x1ab0   :  { %7258 = vpow2.f32 %v3958_v22  ;;  %v3956_v24 = vmul.f32 1.442695, %v3954_v23 }
0x1ab2   :  { %7260 = vpow2.f32 %v3956_v24 }
0x1abd   :  { %v7259_v25 = vpop.eup %7258 }
0x1abe   :  { %v3963_v29 = vsel %vm1042_vm8, %v7259_v25, 0.0 }
0x1abf   :  { %v7261_v30 = vpop.eup %7260  ;;  %3964 = vadd.xlane.f32.xlu1 %v3963_v29 }
0x1ac0   :  { %v3960_v32 = vsel %vm1042_vm8, %v7261_v30, 0.0 }
0x1ac1   :  { %3961 = vadd.xlane.f32.xlu0 %v3960_v32 }
0x1b48   :  { %v3965_v34 = vpop.xlane.xlu1 %3964 }
0x1b49   :  { %7262 = vrcp.f32 %v3965_v34 }
0x1b4a   :  { %v3962_v35 = vpop.xlane.xlu0 %3961 }
0x1b4b   :  { %7264 = vrcp.f32 %v3962_v35 }
0x1b56   :  { %v7263_v36 = vpop.eup %7262 }
0x1b57   :  { %v3969_v39 = vmul.f32 %v7263_v36, %v7259_v25 }
0x1b58   :  { %v7265_v37 = vpop.eup %7264 }
0x1b59   :  { %v3968_v38 = vmul.f32 %v7265_v37, %v7261_v30  ;;  %v6218_v30 = vld [vmem:[%s7437_s20 + $0xf8] sm:$0xff] }
0x1b5b   :  { %6983 = vmatprep.mubr.msk.f32.mxu0 %vm1042_vm8, %v3968_v38  ;;  %v6217_v38 = vld [vmem:[%s7437_s20 + $0xf0] sm:$0xff] }
0x1b5c   :  { %6984 = vmatmul.mubr.msk.f32.vlgmr.msra.gmra.mxu0 %vm1042_vm8, %v3969_v39  ;;  %v6216_v39 = vld [vmem:[%s7437_s20 + $0xe8] sm:$0xff] }
0x1b5d   :  { %6993 = vmatprep.mubr.msk.f32.mxu0 %vm174_vm0, %v3586_v6  ;;  %6992 = vmatpush3.msra.mxu0 %v6146_v33  ;;  %v6187_v6 = vld [vmem:[%s8151_s13 + $0x6] ss:$0 sm:$0xff] }
0x1b5e   :  { %7007 = vmatprep.subr.mxu0 %v6193_v40 }
0x1b60   :  { %6994 = vmatmul.mubr.msk.f32.vlgmr.msra.gmra.mxu0 %vm174_vm0, %v6938_v5 }
0x1b61   :  { %7008 = vmatpush3.msra.mxu0 %v6193_v40  ;;  %7015 = vmatprep.mubr.msk.f32.mxu0 %vm255_vm2, %v7844_v7  ;;  %v6215_v40 = vld [vmem:[%s7437_s20 + $0xe0] sm:$0xff]  ;;  %s8164_s20 = sld [smem:[#allocation5_spill]] }
0x1b62   :  { %7009 = vmatprep.subr.mxu0 %v6192_v41 }
0x1b63   :  { %7010 = vmatpush3.msra.mxu0 %v6192_v41  ;;  %v6234_v41 = vld [vmem:[%s8148_s0 + $0xf8] sm:$0xff] }
0x1b64   :  { %7011 = vmatprep.subr.mxu0 %v6191_v42 }
0x1b65   :  { %7012 = vmatpush3.msra.mxu0 %v6191_v42  ;;  %v6233_v42 = vld [vmem:[%s8148_s0 + $0xf0] sm:$0xff] }
0x1b66   :  { %7013 = vmatprep.subr.mxu0 %v6190_v43 }
0x1b67   :  { %7014 = vmatpush3.msra.mxu0 %v6190_v43  ;;  %v6232_v43 = vld [vmem:[%s8148_s0 + $0xe8] sm:$0xff] }
0x1b68   :  { %7016 = vmatmul.mubr.msk.f32.vlgmr.msra.gmra.mxu0 %vm255_vm2, %v7846_v8 }
0x1c1c   :  { %v6985_v48 = vpop.f32.mrf.mxu0 }
0x1c1e   :  { %v4042_v49 = vpop.f32.mrf.mxu0 }
0x1c1f   :  { %6988 = vmatprep.mubr.msk.f32.mxu1 %vm174_vm0, %v4042_v49 }
0x1c20   :  { %6989 = vmatmul.mubr.msk.f32.vlgmr.msra.gmra.mxu1 %vm174_vm0, %v6985_v48  ;;  %v7946_v51 = vpop.f32.mrf.mxu0  ;;  %v6226_v48 = vld [vmem:[%s8149_s5 + $0xf8] sm:$0xff] }
0x1c21   :  { %6997 = vmatpush3.msra.mxu1 %v6185_v46  ;;  %7004 = vmatprep.mubr.msk.f32.mxu1 %vm255_vm2, %v7844_v7  ;;  %v6212_v46 = vld [vmem:[%s8154_s25 + $0x30] sm:$0xff] }
0x1c22   :  { %6998 = vmatprep.subr.mxu1 %v6184_v50  ;;  %v7950_v53 = vpop.f32.mrf.mxu0 }
0x1c23   :  { %6999 = vmatpush3.msra.mxu1 %v6184_v50 }
0x1c24   :  { %7000 = vmatprep.subr.mxu1 %v6183_v61 }
0x1c25   :  { %7001 = vmatpush3.msra.mxu1 %v6183_v61  ;;  %v6225_v61 = vld [vmem:[%s8149_s5 + $0xf0] sm:$0xff] }
0x1c26   :  { %7002 = vmatprep.subr.mxu1 %v6182_v60 }
0x1c27   :  { %7003 = vmatpush3.msra.mxu1 %v6182_v60  ;;  %v6224_v60 = vld [vmem:[%s8149_s5 + $0xe8] sm:$0xff] }
0x1c28   :  { %7005 = vmatmul.mubr.msk.f32.vlgmr.msra.gmra.mxu1 %vm255_vm2, %v7846_v8  ;;  %v7017_v58 = vpop.f32.mrf.mxu0  ;;  %7018 = vmatprep.subr.mxu1 %v6201_v52 }
0x1c29   :  { %v4388_v59 = vadd.f32 %v7017_v58, %v6195_v54  ;;  %7019 = vmatpush3.msra.mxu1 %v6201_v52  ;;  %7026 = vmatprep.mubr.msk.f32.mxu1 %vm255_vm2, %v7844_v7  ;;  %v6220_v52 = vld [vmem:[%s8151_s13 + $0x7] ss:$0 sm:$0xff] }
0x1c2a   :  { %v4382_v63 = vpop.f32.mrf.mxu0  ;;  %7020 = vmatprep.subr.mxu1 %v6200_v55 }
0x1c2b   :  { %v4383_v0 = vadd.f32 %v6195_v54, %v4382_v63  ;;  %7021 = vmatpush3.msra.mxu1 %v6200_v55  ;;  %7029 = vmatprep.subr.msk.mxu0 %vm174_vm0, %v4388_v59  ;;  %v6223_v54 = vld [vmem:[%s8149_s5 + $0xe0] sm:$0xff] }
0x1c2c   :  { %7022 = vmatprep.subr.mxu1 %v6199_v62  ;;  %7030 = vmatpush3.xpose.msk.msra.mxu0 %vm174_vm0, %v4388_v59  ;;  %v6236_v63 = vld [vmem:[%s8150_s9 + $0x7] ss:$0 sm:$0xff] }
0x1c2d   :  { %7023 = vmatpush3.msra.mxu1 %v6199_v62  ;;  %7031 = vmatprep.subr.msk.mxu0 %vm174_vm0, %v4383_v0 }
0x1c2e   :  { %7024 = vmatprep.subr.mxu1 %v6198_v1 }
0x1c2f   :  { %7025 = vmatpush3.msra.mxu1 %v6198_v1 }
0x1c30   :  { %7027 = vmatmul.mubr.msk.f32.vlgmr.msra.gmra.mxu1 %vm255_vm2, %v7846_v8  ;;  %7032 = vmatpush3.xpose.msk.msra.mxu0 %vm174_vm0, %v4383_v0 }
0x1c31   :  { %7043 = vmatprep.subr.mxu0 %v6212_v46 }
0x1ce0   :  { %v7966_v3 = vpop.f32.mrf.mxu1 }
0x1ce2   :  { %v7968_v4 = vpop.f32.mrf.mxu1 }
0x1ce8   :  { %v7006_v5 = vpop.f32.mrf.mxu1 }
0x1ce9   :  { %v4300_v47 = vadd.f32 %v7006_v5, %v6187_v6 }
0x1cea   :  { %v4294_v9 = vpop.f32.mrf.mxu1 }
0x1ceb   :  { %v4295_v44 = vadd.f32 %v6187_v6, %v4294_v9  ;;  %v4212_v9 = vadd.f32 %v7946_v51, %v7966_v3 }
0x1ced   :  { %7033 = vmatprep.mubr.msk.f32.mxu0 %vm174_vm0, %v4295_v44 }
0x1cee   :  { %7034 = vmatmul.mubr.msk.f32.vlgmr.msra.gmra.mxu0 %vm174_vm0, %v4300_v47  ;;  %v4207_v47 = vadd.f32 %v7950_v53, %v7968_v4 }
0x1cef   :  { %7044 = vmatpush3.msra.mxu0 %v6212_v46 }
0x1cf0   :  { %v7028_v57 = vpop.f32.mrf.mxu1  ;;  %7059 = vmatprep.subr.mxu0 %v6226_v48 }
0x1cf1   :  { %v4476_v10 = vadd.f32 %v7028_v57, %v6203_v56 }
0x1cf2   :  { %v4470_v11 = vpop.f32.mrf.mxu1 }
0x1cf3   :  { %v4471_v12 = vadd.f32 %v6203_v56, %v4470_v11  ;;  %7036 = vmatprep.subr.mxu1 %v4476_v10  ;;  %v6228_v11 = vld [vmem:[%s8152_s17 + $0x7] ss:$0 sm:$0xff] }
0x1cf4   :  { %7037 = vmatpush3.msra.mxu1 %v4476_v10 }
0x1cf5   :  { %7038 = vmatprep.subr.mxu1 %v4471_v12 }
0x1cf6   :  { %7039 = vmatpush3.msra.mxu1 %v4471_v12 }
0x1cf7   :  { %7048 = vmatprep.subr.mxu1 %v6218_v30 }
0x1dae   :  { %v7035_v13 = vpop.f32.mrf.mxu0 }
0x1daf   :  { %v4563_v14 = vadd.f32 %v7881_v28, %v7035_v13 }
0x1db0   :  { %v4557_v15 = vpop.f32.mrf.mxu0 }
0x1db1   :  { %v4558_v16 = vadd.f32 %v7885_v31, %v4557_v15  ;;  %v4569_v17 = vsel %vm1042_vm8, %v4563_v14, -inf }
0x1db2   :  { %4570 = vmax.xlane.f32.xlu1 %v4569_v17 }
0x1db3   :  { %v4566_v18 = vsel %vm1042_vm8, %v4558_v16, -inf }
0x1db4   :  { %4567 = vmax.xlane.f32.xlu0 %v4566_v18 }
0x1e3b   :  { %v4571_v27 = vpop.xlane.xlu1 %4570 }
0x1e3c   :  { %v4573_v19 = vsub.f32 %v4563_v14, %v4571_v27 }
0x1e3d   :  { %v4568_v26 = vpop.xlane.xlu0 %4567 }
0x1e3e   :  { %v4576_v20 = vmul.f32 1.442695, %v4573_v19  ;;  %v4572_v21 = vsub.f32 %v4558_v16, %v4568_v26 }
0x1e40   :  { %7266 = vpow2.f32 %v4576_v20  ;;  %v4574_v22 = vmul.f32 1.442695, %v4572_v21 }
0x1e42   :  { %7268 = vpow2.f32 %v4574_v22 }
0x1e4d   :  { %v7267_v23 = vpop.eup %7266 }
0x1e4e   :  { %v4581_v24 = vsel %vm1042_vm8, %v7267_v23, 0.0 }
0x1e4f   :  { %v7269_v25 = vpop.eup %7268  ;;  %4582 = vadd.xlane.f32.xlu1 %v4581_v24 }
0x1e50   :  { %v4578_v29 = vsel %vm1042_vm8, %v7269_v25, 0.0 }
0x1e51   :  { %4579 = vadd.xlane.f32.xlu0 %v4578_v29 }
0x1ed8   :  { %v4583_v32 = vpop.xlane.xlu1 %4582 }
0x1ed9   :  { %7270 = vrcp.f32 %v4583_v32 }
0x1eda   :  { %v4580_v33 = vpop.xlane.xlu0 %4579 }
0x1edb   :  { %7272 = vrcp.f32 %v4580_v33 }
0x1ee6   :  { %v7271_v34 = vpop.eup %7270 }
0x1ee7   :  { %v4587_v37 = vmul.f32 %v7271_v34, %v7267_v23  ;;  %v6245_v34 = vld [vmem:[%s8154_s25 + $0x38] sm:$0xff] }
0x1ee8   :  { %v7273_v35 = vpop.eup %7272 }
0x1ee9   :  { %v4586_v36 = vmul.f32 %v7273_v35, %v7269_v25 }
0x1eeb   :  { %7040 = vmatprep.mubr.msk.f32.mxu1 %vm1042_vm8, %v4586_v36 }
0x1eec   :  { %7041 = vmatmul.mubr.msk.f32.vlgmr.msra.gmra.mxu1 %vm1042_vm8, %v4587_v37 }
0x1eed   :  { %7049 = vmatpush3.msra.mxu1 %v6218_v30  ;;  %7056 = vmatprep.mubr.msk.f32.mxu1 %vm255_vm2, %v7844_v7 }
0x1eee   :  { %7050 = vmatprep.subr.mxu1 %v6217_v38 }
0x1eef   :  { %7051 = vmatpush3.msra.mxu1 %v6217_v38  ;;  %v6249_v38 = vld [vmem:[%s8155_s29 + $0x1] ss:$0 sm:$0xff] }
0x1ef0   :  { %7052 = vmatprep.subr.mxu1 %v6216_v39 }
0x1ef1   :  { %7053 = vmatpush3.msra.mxu1 %v6216_v39 }
0x1ef2   :  { %7054 = vmatprep.subr.mxu1 %v6215_v40 }
0x1ef3   :  { %7055 = vmatpush3.msra.mxu1 %v6215_v40 }
0x1ef4   :  { %7057 = vmatmul.mubr.msk.f32.vlgmr.msra.gmra.mxu1 %vm255_vm2, %v7846_v8  ;;  %7070 = vmatprep.subr.mxu1 %v6234_v41 }
0x1ef5   :  { %7071 = vmatpush3.msra.mxu1 %v6234_v41  ;;  %7078 = vmatprep.mubr.msk.f32.mxu1 %vm255_vm2, %v7844_v7 }
0x1ef6   :  { %7072 = vmatprep.subr.mxu1 %v6233_v42 }
0x1ef7   :  { %7073 = vmatpush3.msra.mxu1 %v6233_v42 }
0x1ef8   :  { %7074 = vmatprep.subr.mxu1 %v6232_v43 }
0x1ef9   :  { %7075 = vmatpush3.msra.mxu1 %v6232_v43 }
0x1efa   :  { %7076 = vmatprep.subr.mxu1 %v6231_v45 }
0x1efb   :  { %7077 = vmatpush3.msra.mxu1 %v6231_v45 }
0x1efc   :  { %7079 = vmatmul.mubr.msk.f32.vlgmr.msra.gmra.mxu1 %vm255_vm2, %v7846_v8 }
0x1fac   :  { %v7042_v49 = vpop.f32.mrf.mxu1 }
0x1fae   :  { %v4660_v50 = vpop.f32.mrf.mxu1 }
0x1faf   :  { %7045 = vmatprep.mubr.msk.f32.mxu0 %vm174_vm0, %v4660_v50 }
0x1fb0   :  { %7046 = vmatmul.mubr.msk.f32.vlgmr.msra.gmra.mxu0 %vm174_vm0, %v7042_v49 }
0x1fb1   :  { %7060 = vmatpush3.msra.mxu0 %v6226_v48  ;;  %7067 = vmatprep.mubr.msk.f32.mxu0 %vm255_vm2, %v7844_v7 }
0x1fb2   :  { %7061 = vmatprep.subr.mxu0 %v6225_v61 }
0x1fb3   :  { %7062 = vmatpush3.msra.mxu0 %v6225_v61 }
0x1fb4   :  { %v7058_v55 = vpop.f32.mrf.mxu1  ;;  %7063 = vmatprep.subr.mxu0 %v6224_v60 }
0x1fb5   :  { %v4839_v58 = vadd.f32 %v7058_v55, %v6220_v52  ;;  %7064 = vmatpush3.msra.mxu0 %v6224_v60 }
0x1fb6   :  { %v4833_v59 = vpop.f32.mrf.mxu1  ;;  %7065 = vmatprep.subr.mxu0 %v6223_v54 }
0x1fb7   :  { %v4834_v62 = vadd.f32 %v6220_v52, %v4833_v59  ;;  %7066 = vmatpush3.msra.mxu0 %v6223_v54 }
0x1fb8   :  { %7068 = vmatmul.mubr.msk.f32.vlgmr.msra.gmra.mxu0 %vm255_vm2, %v7846_v8 }
0x1fb9   :  { %7085 = vmatprep.mubr.msk.f32.mxu0 %vm174_vm0, %v4834_v62  ;;  %v6257_v62 = vld [vmem:[%s8156_s14 + $0x38] sm:$0xff] }
0x1fbc   :  { %v7080_v0 = vpop.f32.mrf.mxu1 }
0x1fbd   :  { %v5015_v1 = vadd.f32 %v7080_v0, %v6236_v63  ;;  %v6255_v0 = vld [vmem:[%s8156_s14 + $0x28] sm:$0xff] }
0x1fbe   :  { %v5009_v5 = vpop.f32.mrf.mxu1 }
0x1fbf   :  { %v5010_v6 = vadd.f32 %v6236_v63, %v5009_v5  ;;  %7088 = vmatprep.subr.mxu1 %v5015_v1  ;;  %v6256_v63 = vld [vmem:[%s8156_s14 + $0x30] sm:$0xff]  ;;  %v6269_v5 = vld [vmem:[%s8157_s19 + $0x78] sm:$0xff] }
0x1fc0   :  { %7089 = vmatpush3.msra.mxu1 %v5015_v1  ;;  %v6254_v1 = vld [vmem:[%s8156_s14 + $0x20] sm:$0xff] }
0x1fc1   :  { %7090 = vmatprep.subr.mxu1 %v5010_v6 }
0x1fc2   :  { %7091 = vmatpush3.msra.mxu1 %v5010_v6  ;;  %v6268_v6 = vld [vmem:[%s8157_s19 + $0x70] sm:$0xff] }
0x1fc3   :  { %7100 = vmatprep.subr.mxu1 %v6257_v62 }
0x2070   :  { %v7047_v44 = vpop.f32.mrf.mxu0 }
0x2071   :  { %v4753_v56 = vadd.f32 %v7047_v44, %v4212_v9  ;;  %v6267_v9 = vld [vmem:[%s8157_s19 + $0x68] sm:$0xff]  ;;  %v6266_v44 = vld [vmem:[%s8157_s19 + $0x60] sm:$0xff] }
0x2072   :  { %v4743_v57 = vpop.f32.mrf.mxu0 }
0x2073   :  { %v4752_v10 = vadd.f32 %v4743_v57, %v4207_v47 }
0x2078   :  { %v7069_v12 = vpop.f32.mrf.mxu0 }
0x2079   :  { %v4927_v13 = vadd.f32 %v7069_v12, %v6228_v11 }
0x207a   :  { %v4921_v14 = vpop.f32.mrf.mxu0 }
0x207b   :  { %v4922_v15 = vadd.f32 %v6228_v11, %v4921_v14  ;;  %7081 = vmatprep.subr.msk.mxu0 %vm174_vm0, %v4927_v13  ;;  %v6252_v14 = vld [vmem:[%s8158_s24 + $0x1] ss:$0 sm:$0xff] }
0x207c   :  { %7082 = vmatpush3.xpose.msk.msra.mxu0 %vm174_vm0, %v4927_v13 }
0x207d   :  { %7083 = vmatprep.subr.msk.mxu0 %vm174_vm0, %v4922_v15 }
0x2080   :  { %7084 = vmatpush3.xpose.msk.msra.mxu0 %vm174_vm0, %v4922_v15 }
0x2081   :  { %7095 = vmatprep.subr.mxu0 %v6245_v34 }
0x2083   :  { %7086 = vmatmul.mubr.msk.f32.vlgmr.msra.gmra.mxu0 %vm174_vm0, %v4839_v58 }
0x2084   :  { %7096 = vmatpush3.msra.mxu0 %v6245_v34 }
0x2085   :  { %7111 = vmatprep.subr.mxu0 %v6269_v5 }
0x2143   :  { %v7087_v51 = vpop.f32.mrf.mxu0 }
0x2144   :  { %v5102_v53 = vadd.f32 %v7881_v28, %v7087_v51 }
0x2145   :  { %v5096_v3 = vpop.f32.mrf.mxu0 }
0x2146   :  { %v5097_v4 = vadd.f32 %v7885_v31, %v5096_v3  ;;  %v5108_v16 = vsel %vm1042_vm8, %v5102_v53, -inf }
0x2147   :  { %5109 = vmax.xlane.f32.xlu1 %v5108_v16 }
0x2148   :  { %v5105_v17 = vsel %vm1042_vm8, %v5097_v4, -inf }
0x2149   :  { %5106 = vmax.xlane.f32.xlu0 %v5105_v17 }
0x21d0   :  { %v5110_v18 = vpop.xlane.xlu1 %5109 }
0x21d1   :  { %v5112_v27 = vsub.f32 %v5102_v53, %v5110_v18 }
0x21d2   :  { %v5107_v19 = vpop.xlane.xlu0 %5106 }
0x21d3   :  { %v5115_v26 = vmul.f32 1.442695, %v5112_v27  ;;  %v5111_v20 = vsub.f32 %v5097_v4, %v5107_v19  ;;  %v6253_v4 = vld [vmem:[%s8159_s30 + $0x1] ss:$0 sm:$0xff]  ;;  %v6265_v27 = vld [vmem:[%s8157_s19 + $0x58] sm:$0xff]  ;;  %v6264_v19 = vld [vmem:[%s8157_s19 + $0x50] sm:$0xff] }
0x21d5   :  { %7274 = vpow2.f32 %v5115_v26  ;;  %v5113_v21 = vmul.f32 1.442695, %v5111_v20  ;;  %v6263_v26 = vld [vmem:[%s8157_s19 + $0x48] sm:$0xff]  ;;  %v6262_v20 = vld [vmem:[%s8157_s19 + $0x40] sm:$0xff] }
0x21d7   :  { %7276 = vpow2.f32 %v5113_v21  ;;  %v6259_v21 = vld [vmem:[%s8160_s6 + $0x1] ss:$0 sm:$0xff] }
0x21e2   :  { %v7275_v22 = vpop.eup %7274 }
0x21e3   :  { %v5120_v28 = vsel %vm1042_vm8, %v7275_v22, 0.0 }
0x21e4   :  { %v7277_v23 = vpop.eup %7276  ;;  %5121 = vadd.xlane.f32.xlu1 %v5120_v28 }
0x21e5   :  { %v5117_v31 = vsel %vm1042_vm8, %v7277_v23, 0.0 }
0x21e6   :  { %5118 = vadd.xlane.f32.xlu0 %v5117_v31 }
0x226d   :  { %v5122_v24 = vpop.xlane.xlu1 %5121 }
0x226e   :  { %7278 = vrcp.f32 %v5122_v24 }
0x226f   :  { %v5119_v25 = vpop.xlane.xlu0 %5118 }
0x2270   :  { %7280 = vrcp.f32 %v5119_v25 }
0x227b   :  { %v7279_v29 = vpop.eup %7278 }
0x227c   :  { %v5126_v33 = vmul.f32 %v7279_v29, %v7275_v22  ;;  %v6271_v29 = vld [vmem:[%s8161_s12 + $0x1] ss:$0 sm:$0xff] }
0x227d   :  { %v7281_v30 = vpop.eup %7280 }
0x227e   :  { %v5125_v32 = vmul.f32 %v7281_v30, %v7277_v23 }
0x2280   :  { %7092 = vmatprep.mubr.msk.f32.mxu1 %vm1042_vm8, %v5125_v32 }
0x2281   :  { %7093 = vmatmul.mubr.msk.f32.vlgmr.msra.gmra.mxu1 %vm1042_vm8, %v5126_v33 }
0x2282   :  { %7101 = vmatpush3.msra.mxu1 %v6257_v62 }
0x2283   :  { %7102 = vmatprep.subr.mxu1 %v6256_v63 }
0x2284   :  { %7103 = vmatpush3.msra.mxu1 %v6256_v63  ;;  %v6277_v63 = vld [vmem:[%s8163_s10 + $0x1] ss:$0 sm:$0xff] }
0x2285   :  { %7104 = vmatprep.subr.mxu1 %v6255_v0 }
0x2286   :  { %7105 = vmatpush3.msra.mxu1 %v6255_v0 }
0x2287   :  { %7106 = vmatprep.subr.mxu1 %v6254_v1 }
0x2288   :  { %7107 = vmatpush3.msra.mxu1 %v6254_v1 }
0x2289   :  { %7130 = vmatprep.subr.mxu1 %v7351_v2 }
0x2341   :  { %v7094_v35 = vpop.f32.mrf.mxu1 }
0x2343   :  { %v5199_v36 = vpop.f32.mrf.mxu1 }
0x2344   :  { %7097 = vmatprep.mubr.msk.f32.mxu0 %vm174_vm0, %v5199_v36 }
0x2345   :  { %7098 = vmatmul.mubr.msk.f32.vlgmr.msra.gmra.mxu0 %vm174_vm0, %v7094_v35 }
0x2346   :  { %7112 = vmatpush3.msra.mxu0 %v6269_v5 }
0x2347   :  { %7113 = vmatprep.subr.mxu0 %v6268_v6 }
0x2348   :  { %7114 = vmatpush3.msra.mxu0 %v6268_v6 }
0x2349   :  { %7115 = vmatprep.subr.mxu0 %v6267_v9 }
0x234a   :  { %7116 = vmatpush3.msra.mxu0 %v6267_v9 }
0x234b   :  { %7117 = vmatprep.subr.mxu0 %v6266_v44 }
0x234c   :  { %7118 = vmatpush3.msra.mxu0 %v6266_v44  ;;  %v5593_v44 = vld [vmem:[%s8164_s20] sm:$0x3] }
0x234d   :  { %7119 = vmatprep.subr.mxu0 %v6265_v27 }
0x234e   :  { %7120 = vmatpush3.msra.mxu0 %v6265_v27  ;;  %v5679_v27 = vld [vmem:[%s7537_s8 + $0x10] sm:$0xff] }
0x234f   :  { %7121 = vmatprep.subr.mxu0 %v6264_v19 }
0x2350   :  { %7122 = vmatpush3.msra.mxu0 %v6264_v19  ;;  %v5678_v19 = vld [vmem:[%s7537_s8 + $0x8] sm:$0xff] }
0x2351   :  { %7123 = vmatprep.subr.mxu0 %v6263_v26 }
0x2352   :  { %7124 = vmatpush3.msra.mxu0 %v6263_v26  ;;  %v5677_v26 = vld [vmem:[%s7537_s8] sm:$0xff] }
0x2353   :  { %7125 = vmatprep.subr.mxu0 %v6262_v20 }
0x2354   :  { %7126 = vmatpush3.msra.mxu0 %v6262_v20  ;;  %v6281_v20 = vld [vmem:[%s7532_s3] ss:$0 sm:$0xff] }
0x2355   :  { %7148 = vmatprep.subr.mxu0 %v7351_v2 }
0x2405   :  { %v7099_v37 = vpop.f32.mrf.mxu0 }
0x2406   :  { %v5292_v39 = vadd.f32 %v7099_v37, %v4753_v56 }
0x2407   :  { %v5282_v40 = vpop.f32.mrf.mxu0 }
0x2408   :  { %v5302_v41 = vadd.f32 %v6249_v38, %v5292_v39  ;;  %v5291_v42 = vadd.f32 %v5282_v40, %v4752_v10 }
0x240a   :  { %v5301_v43 = vadd.f32 %v6249_v38, %v5291_v42  ;;  %v5304_v45 = vadd.f32 %v5302_v41, %v7846_v8 }
0x240c   :  { %v5312_v46 = vsel %vm255_vm2, %v5304_v45, 0.0  ;;  %v5303_v48 = vadd.f32 %v5301_v43, %v7844_v7 }
0x240d   :  { %5313 = vadd.xlane.f32.xlu1 %v5312_v46 }
0x240e   :  { %v5309_v49 = vsel %vm255_vm2, %v5303_v48, 0.0 }
0x240f   :  { %5310 = vadd.xlane.f32.xlu0 %v5309_v49 }
0x2496   :  { %v5314_v50 = vpop.xlane.xlu1 %5313 }
0x2497   :  { %v5316_v61 = vmul.f32 0.03125, %v5314_v50 }
0x2498   :  { %v5311_v60 = vpop.xlane.xlu0 %5310 }
0x2499   :  { %v5318_v52 = vsub.f32 %v5304_v45, %v5316_v61  ;;  %v5315_v54 = vmul.f32 0.03125, %v5311_v60 }
0x249b   :  { %v5317_v55 = vsub.f32 %v5303_v48, %v5315_v54  ;;  %v5320_v58 = vmul.f32 %v5318_v52, %v5318_v52 }
0x249d   :  { %v5324_v8 = vsel %vm255_vm2, %v5320_v58, 0.0  ;;  %v5319_v59 = vmul.f32 %v5317_v55, %v5317_v55 }
0x249e   :  { %5325 = vadd.xlane.f32.xlu1 %v5324_v8 }
0x249f   :  { %v5321_v7 = vsel %vm255_vm2, %v5319_v59, 0.0  ;;  %v6276_v59 = vld [vmem:[%s8162_s7 + $0x1] ss:$0 sm:$0xff] }
0x24a0   :  { %5322 = vadd.xlane.f32.xlu0 %v5321_v7 }
0x2527   :  { %v5326_v47 = vpop.xlane.xlu1 %5325 }
0x2528   :  { %v5328_v56 = vmul.f32 0.03125, %v5326_v47  ;;  %v5670_v47 = vld [vmem:[%s8165_s11 + $0x18] sm:$0xff] }
0x2529   :  { %v5323_v57 = vpop.xlane.xlu0 %5322 }
0x252a   :  { %v5330_v10 = vadd.f32 1e-05, %v5328_v56  ;;  %v5327_v11 = vmul.f32 0.03125, %v5323_v57  ;;  %v5669_v56 = vld [vmem:[%s8165_s11 + $0x10] sm:$0xff]  ;;  %v5668_v57 = vld [vmem:[%s8165_s11 + $0x8] sm:$0xff] }
0x252c   :  { %7282 = vrsqrt.f32 %v5330_v10  ;;  %v5329_v12 = vadd.f32 1e-05, %v5327_v11  ;;  %v5667_v10 = vld [vmem:[%s8165_s11] sm:$0xff]  ;;  %v5675_v11 = vld [vmem:[%s8166_s15 + $0x18] sm:$0xff] }
0x252e   :  { %7284 = vrsqrt.f32 %v5329_v12 }
0x2539   :  { %v7283_v13 = vpop.eup %7282 }
0x253a   :  { %v5334_v15 = vmul.f32 %v7283_v13, %v5318_v52 }
0x253b   :  { %v7285_v51 = vpop.eup %7284 }
0x253c   :  { %v5333_v53 = vmul.f32 %v7285_v51, %v5317_v55  ;;  %v5342_v3 = vmul.f32 %v6252_v14, %v5334_v15  ;;  %v5673_v15 = vld [vmem:[%s8166_s15 + $0x8] sm:$0xff]  ;;  %v5672_v51 = vld [vmem:[%s8166_s15] sm:$0xff] }
0x253e   :  { %v5341_v16 = vmul.f32 %v6252_v14, %v5333_v53  ;;  %v5350_v18 = vadd.f32 %v6253_v4, %v5342_v3  ;;  %v5674_v14 = vld [vmem:[%s8166_s15 + $0x10] sm:$0xff]  ;;  %v5680_v53 = vld [vmem:[%s7537_s8 + $0x18] sm:$0xff]  ;;  %v6279_v3 = vld [vmem:[%s8167_s16] ss:$0 sm:$0xff] }
0x2540   :  { %v5349_v17 = vadd.f32 %v6253_v4, %v5341_v16 }
0x2542   :  { %7108 = vmatprep.mubr.msk.f32.mxu1 %vm255_vm2, %v5349_v17 }
0x2543   :  { %7109 = vmatmul.mubr.msk.f32.vlgmr.msra.gmra.mxu1 %vm255_vm2, %v5350_v18 }
0x2544   :  { %7134 = vmatprep.mubr.msk.f32.mxu1 %vm7352_vm1, %v7351_v2 }
0x2603   :  { %v7110_v22 = vpop.f32.mrf.mxu1 }
0x2604   :  { %v5442_v28 = vadd.f32 %v7110_v22, %v6259_v21 }
0x2605   :  { %v5436_v23 = vpop.f32.mrf.mxu1 }
0x2606   :  { %v5437_v31 = vadd.f32 %v6259_v21, %v5436_v23  ;;  %v5446_v25 = vmax.f32 %v5442_v28, 0.0 }
0x2608   :  { %v5445_v24 = vmax.f32 %v5437_v31, 0.0  ;;  %v6283_v31 = vld [vmem:[%s7542_s27] ss:$0 sm:$0xff] }
0x260a   :  { %7127 = vmatprep.mubr.msk.f32.mxu0 %vm605_vm7, %v5445_v24 }
0x260b   :  { %7128 = vmatmul.mubr.msk.f32.vlgmr.msra.gmra.mxu0 %vm605_vm7, %v5446_v25 }
0x260c   :  { %7156 = vmatprep.mubr.msk.f32.mxu0 %vm7352_vm1, %v7351_v2  ;;  %7149 = vmatpush3.msra.mxu0 %v5675_v11 }
0x260d   :  { %7150 = vmatprep.subr.mxu0 %v7351_v2 }
0x260e   :  { %7151 = vmatpush3.msra.mxu0 %v5674_v14 }
0x260f   :  { %7152 = vmatprep.subr.mxu0 %v7351_v2 }
0x2610   :  { %7153 = vmatpush3.msra.mxu0 %v5673_v15 }
0x2611   :  { %7154 = vmatprep.subr.mxu0 %v7351_v2 }
0x2612   :  { %7155 = vmatpush3.msra.mxu0 %v5672_v51 }
0x26cb   :  { %v7129_v30 = vpop.f32.mrf.mxu0 }
0x26cc   :  { %v5542_v32 = vadd.f32 %v7129_v30, %v6271_v29 }
0x26cd   :  { %v5536_v33 = vpop.f32.mrf.mxu0 }
0x26ce   :  { %v5537_v34 = vadd.f32 %v6271_v29, %v5536_v33  ;;  %v5546_v35 = vadd.f32 %v5542_v32, %v5350_v18 }
0x26d0   :  { %v5554_v36 = vsel %vm255_vm2, %v5546_v35, 0.0  ;;  %v5545_v37 = vadd.f32 %v5537_v34, %v5349_v17 }
0x26d1   :  { %5555 = vadd.xlane.f32.xlu0 %v5554_v36 }
0x26d2   :  { %v5551_v38 = vsel %vm255_vm2, %v5545_v37, 0.0 }
0x26d3   :  { %5552 = vadd.xlane.f32.xlu1 %v5551_v38 }
0x275a   :  { %v5556_v39 = vpop.xlane.xlu0 %5555 }
0x275b   :  { %v5558_v40 = vmul.f32 0.03125, %v5556_v39 }
0x275c   :  { %v5553_v41 = vpop.xlane.xlu1 %5552 }
0x275d   :  { %v5560_v42 = vsub.f32 %v5546_v35, %v5558_v40  ;;  %v5557_v43 = vmul.f32 0.03125, %v5553_v41 }
0x275f   :  { %v5559_v45 = vsub.f32 %v5545_v37, %v5557_v43  ;;  %v5562_v46 = vmul.f32 %v5560_v42, %v5560_v42 }
0x2761   :  { %v5566_v48 = vsel %vm255_vm2, %v5562_v46, 0.0  ;;  %v5561_v49 = vmul.f32 %v5559_v45, %v5559_v45 }
0x2762   :  { %5567 = vadd.xlane.f32.xlu0 %v5566_v48 }
0x2763   :  { %v5563_v50 = vsel %vm255_vm2, %v5561_v49, 0.0 }
0x2764   :  { %5564 = vadd.xlane.f32.xlu1 %v5563_v50 }
0x27eb   :  { %v5568_v61 = vpop.xlane.xlu0 %5567 }
0x27ec   :  { %v5570_v60 = vmul.f32 0.03125, %v5568_v61 }
0x27ed   :  { %v5565_v52 = vpop.xlane.xlu1 %5564 }
0x27ee   :  { %v5572_v54 = vadd.f32 1e-05, %v5570_v60  ;;  %v5569_v55 = vmul.f32 0.03125, %v5565_v52 }
0x27f0   :  { %7286 = vrsqrt.f32 %v5572_v54  ;;  %v5571_v58 = vadd.f32 1e-05, %v5569_v55 }
0x27f2   :  { %7288 = vrsqrt.f32 %v5571_v58 }
0x27fd   :  { %v7287_v8 = vpop.eup %7286 }
0x27fe   :  { %v5576_v7 = vmul.f32 %v7287_v8, %v5560_v42 }
0x27ff   :  { %v7289_v62 = vpop.eup %7288 }
0x2800   :  { %v5584_v0 = vmul.f32 %v6276_v59, %v5576_v7  ;;  %v5575_v1 = vmul.f32 %v7289_v62, %v5559_v45 }
0x2802   :  { %v5592_v5 = vadd.f32 %v6277_v63, %v5584_v0  ;;  %v5583_v6 = vmul.f32 %v6276_v59, %v5575_v1 }
0x2804   :  { %7131 = vmatpush3.msra.mxu1 %v5592_v5  ;;  %v5591_v9 = vadd.f32 %v6277_v63, %v5583_v6 }
0x2805   :  { %7132 = vmatprep.subr.mxu1 %v7351_v2 }
0x2806   :  { %7133 = vmatpush3.msra.mxu1 %v5591_v9 }
0x2807   :  { %7135 = vmatmul.mubr.msk.f32.vlgmr.msra.gmra.mxu1 %vm1042_vm8, %v5593_v44  ;;  %7137 = vmatprep.subr.mxu1 %v7351_v2 }
0x2808   :  { %7138 = vmatpush3.msra.mxu1 %v5670_v47  ;;  %7145 = vmatprep.mubr.msk.f32.mxu1 %vm7352_vm1, %v7351_v2 }
0x2809   :  { %7139 = vmatprep.subr.mxu1 %v7351_v2 }
0x280a   :  { %7140 = vmatpush3.msra.mxu1 %v5669_v56 }
0x280b   :  { %7141 = vmatprep.subr.mxu1 %v7351_v2 }
0x280c   :  { %7142 = vmatpush3.msra.mxu1 %v5668_v57 }
0x280d   :  { %7143 = vmatprep.subr.mxu1 %v7351_v2 }
0x280e   :  { %7144 = vmatpush3.msra.mxu1 %v5667_v10 }
0x280f   :  { %7159 = vmatprep.subr.mxu1 %v7351_v2 }
0x28c7   :  { %v5663_v12 = vpop.f32.mrf.mxu1 }
0x28c8   :  { %7146 = vmatmul.mubr.msk.f32.vlgmr.msra.gmra.mxu1 %vm255_vm2, %v5663_v12 }
0x28c9   :  { %v7136_v13 = vpop.f32.mrf.mxu1  ;;  %7167 = vmatprep.mubr.msk.f32.mxu1 %vm7352_vm1, %v7351_v2  ;;  %7160 = vmatpush3.msra.mxu1 %v5680_v53 }
0x28ca   :  { %7161 = vmatprep.subr.mxu1 %v7351_v2 }
0x28cb   :  { %7162 = vmatpush3.msra.mxu1 %v5679_v27 }
0x28cc   :  { %7163 = vmatprep.subr.mxu1 %v7351_v2 }
0x28cd   :  { %7164 = vmatpush3.msra.mxu1 %v5678_v19 }
0x28ce   :  { %7165 = vmatprep.subr.mxu1 %v7351_v2 }
0x28cf   :  { %7166 = vmatpush3.msra.mxu1 %v5677_v26 }
0x2988   :  { %v5757_v4 = vpop.f32.mrf.mxu1 }
0x2989   :  { %v5758_v16 = vadd.f32 %v6279_v3, %v5757_v4 }
0x298a   :  { %v7147_v17 = vpop.f32.mrf.mxu1 }
0x298b   :  { %v5761_v18 = vmax.f32 %v5758_v16, 0.0 }
0x298d   :  { %7157 = vmatmul.mubr.msk.f32.vlgmr.msra.gmra.mxu0 %vm255_vm2, %v5761_v18 }
0x2a4d   :  { %v5837_v21 = vpop.f32.mrf.mxu0 }
0x2a4e   :  { %v5838_v22 = vadd.f32 %v6281_v20, %v5837_v21 }
0x2a4f   :  { %v7158_v28 = vpop.f32.mrf.mxu0 }
0x2a50   :  { %v5841_v23 = vmax.f32 %v5838_v22, 0.0 }
0x2a52   :  { %7168 = vmatmul.mubr.msk.f32.vlgmr.msra.gmra.mxu1 %vm255_vm2, %v5841_v23 }
0x2b12   :  { %v5917_v24 = vpop.f32.mrf.mxu1 }
0x2b13   :  { %v5918_v25 = vadd.f32 %v6283_v31, %v5917_v24 }
0x2b14   :  { %v7169_v29 = vpop.f32.mrf.mxu1 }
0x2b15   :  { %5922 = vst.msk [vmem:[#allocation2] sm:$0x3] %vm5921_vm9, %v5918_v25 }
0x2b16   :  { %7303 = shalt.err (!%p7300_p4)
}
0x2b17   :  { %5932 = dma.vmem_to_hbm [thread:$0]  %s5930_s22, 32, %s7547_s4, [#allocation3]  }
0x2b18   :  { %7312 = dma.done.wait [#allocation3], 32  }
0x2b19   :  { %7313 = vsyncadd [#allocation3], 4294967264 }
0x2b1a   :  { %5936 = vsyncpa [#allocation3], 1 }

</bundles_post_ra>
